<compile_context>
chip_gen: v6e
topology: v6e:2x2x1
jax: 0.10.0
libtpu: 0.0.40
codegen_flags: <defaults>
</compile_context>

<pallas_src>
import jax
import jax.numpy as jnp
from jax import lax
from jax.experimental import pallas as pl
from jax.experimental.pallas import tpu as pltpu

# ----------------------------- configuration --------------------------------
N_HIDDEN = 1
HIDDEN_DIM = 32
DELAYED_DIRECTION = True
DELAYED_DENSITY = True
N_SEGMENTS = 2
POS_FREQS = 4                        # positional encoder frequencies
DIR_FREQS = 2                        # directional encoder frequencies
POS_DIM = 3 + 3 * 2 * POS_FREQS      # 27  (position_encoder.output_dim)
DIR_DIM = 3 + 3 * 2 * DIR_FREQS      # 15  (direction_encoder.output_dim)

TILE_N = 512                         # rays per grid step (lanes) — sweepable 512..2048

# --- packed encoder weights (transposed): wenc_T is (ENC_OUT, FEAT_ROWS) = (96, 72) ----
#   feature block b (8 rows of the staged feature matrix):
#     b = 0      : identity of the raw ray block [pos(3), dir(3), 1, 0]
#     b = 1 + 2l : sin(2^l * ray block)
#     b = 2 + 2l : cos(2^l * ray block)
#   e_ref rows  0:32  -> (pos_enc @ W0A + b0a).T   (segment-0 first Linear)
#   e_ref rows 32:64  -> (pos_enc @ W1P + b1a).T   (segment-1 first Linear, pos part)
#   e_ref rows 64:96  -> (dir_enc @ WC1D + bc1).T  (color head, dir part; rows 80:96 zero)
NUM_FEAT_BLOCKS = 1 + 2 * POS_FREQS  # 9
FEAT_ROWS = 8 * NUM_FEAT_BLOCKS      # 72
ENC_OUT = 96

# --- packed "rest" buffer: (REST_ROWS, 32); every slab is 8-row aligned ----------------
OFF_W0B = 0                          # w0b.T               (32, 32)
OFF_W1Z = 32                         # w1z.T               (32, 32)
OFF_W1B = 64                         # w1b.T               (32, 32)
OFF_WC1Z = 96                        # wc1z.T  (16,32) zero-padded to (32, 32)
OFF_WC2 = 128                        # wc2.T   (4,16)  zero-padded to (8, 32)
OFF_BIAS = 136                       # bias block (32,32): col0=b0b, col1=b1b, col2[0:4]=bc2
REST_ROWS = 168
REST_COLS = 32


# ------------------------------ Pallas kernel -------------------------------
def nerf_kernel(x_ref, wenc_ref, w_ref, out_ref, feat_ref, e_ref):
    f32 = jnp.float32
    x = x_ref[...]                                   # (8, T): [px,py,pz,dx,dy,dz,1,0]

    # Fused frequency encoding, rays-along-lanes (dense vregs).
    feat_ref[0:8, :] = x
    for l in range(POS_FREQS):
        s = x * (2.0 ** l)
        feat_ref[8 * (1 + 2 * l):8 * (1 + 2 * l) + 8, :] = jnp.sin(s)
        feat_ref[8 * (2 + 2 * l):8 * (2 + 2 * l) + 8, :] = jnp.cos(s)

    # One MXU matmul realizes all three encoder-consuming Linear inputs at once
    # (first-layer biases are folded in via the constant-1 ray row).
    e_ref[...] = jnp.dot(wenc_ref[...], feat_ref[...], preferred_element_type=f32)

    def w32(off):                                    # (32, 32) weight slab
        return w_ref[off:off + 32, :]

    b0b = w_ref[OFF_BIAS:OFF_BIAS + 32, 0:1]         # (32, 1)
    b1b = w_ref[OFF_BIAS:OFF_BIAS + 32, 1:2]         # (32, 1)
    bc2 = w_ref[OFF_BIAS:OFF_BIAS + 8, 2:3]          # (8, 1)  rows 4:8 zero

    # --- segment 0: Linear(pos_enc -> H) -> ReLU -> Linear(H -> H), inter-segment ReLU --
    z = jnp.maximum(e_ref[0:32, :], 0.0)
    z = jnp.maximum(jnp.dot(w32(OFF_W0B), z, preferred_element_type=f32) + b0b, 0.0)

    # --- segment 1: input = cat(z, pos_enc) as split matmul; no trailing ReLU -----------
    h = jnp.maximum(jnp.dot(w32(OFF_W1Z), z, preferred_element_type=f32)
                    + e_ref[32:64, :], 0.0)
    z = jnp.dot(w32(OFF_W1B), h, preferred_element_type=f32) + b1b

    # --- color head: input = cat(z, dir_enc) as split matmul (rows 16:32 stay zero) -----
    h = jnp.maximum(jnp.dot(w32(OFF_WC1Z), z, preferred_element_type=f32)
                    + e_ref[64:96, :], 0.0)
    o = jnp.dot(w_ref[OFF_WC2:OFF_WC2 + 8, :], h, preferred_element_type=f32) + bc2  # (8, T)

    # rows 0:3 -> rgb (sigmoid); row 3 -> density (Softplus(beta=1, threshold=8));
    # rows 4:7 are don't-care padding (sliced away in the wrapper).
    row = lax.broadcasted_iota(jnp.int32, o.shape, 0)
    softp = jnp.where(o > 8.0, o, jnp.log1p(jnp.exp(jnp.minimum(o, 8.0))))
    out_ref[...] = jnp.where(row < 3, jax.nn.sigmoid(o), softp)


# ------------------------------ parameter packing ----------------------------
def init_linear(key, fan_in, fan_out):
    """Deterministic torch.nn.Linear-style init: U(-1/sqrt(fan_in), 1/sqrt(fan_in))."""
    kw, kb = jax.random.split(key)
    bound = 1.0 / (fan_in ** 0.5)
    w = jax.random.uniform(kw, (fan_in, fan_out), jnp.float32, -bound, bound)
    b = jax.random.uniform(kb, (1, fan_out), jnp.float32, -bound, bound)
    return w, b


def init_params(key):
    keys = jax.random.split(key, 6)
    # segment 0: Linear(POS_DIM, H) -> ReLU -> Linear(H, H)
    w0a, b0a = init_linear(keys[0], POS_DIM, HIDDEN_DIM)
    w0b, b0b = init_linear(keys[1], HIDDEN_DIM, HIDDEN_DIM)
    # segment 1: Linear(H + POS_DIM, H) -> ReLU -> Linear(H, H)
    w1, b1a = init_linear(keys[2], HIDDEN_DIM + POS_DIM, HIDDEN_DIM)
    w1z, w1p = w1[:HIDDEN_DIM], w1[HIDDEN_DIM:]               # cat(z, pos) split
    w1b, b1b = init_linear(keys[3], HIDDEN_DIM, HIDDEN_DIM)
    # color head: Linear(H + DIR_DIM, H//2) -> ReLU -> Linear(H//2, 3 + 1)
    wc1, bc1 = init_linear(keys[4], HIDDEN_DIM + DIR_DIM, HIDDEN_DIM // 2)
    wc1z, wc1d = wc1[:HIDDEN_DIM], wc1[HIDDEN_DIM:]           # cat(z, dir) split
    wc2, bc2 = init_linear(keys[5], HIDDEN_DIM // 2, 3 + int(DELAYED_DENSITY))
    return (w0a, b0a, w0b, b0b,
            w1z, w1p, b1a, w1b, b1b,
            wc1z, wc1d, bc1, wc2, bc2)


def pack_params(params):
    """Pack the 14 arrays into the 2 constant (transposed) buffers the kernel consumes."""
    (w0a, b0a, w0b, b0b, w1z, w1p, b1a, w1b, b1b,
     wc1z, wc1d, bc1, wc2, bc2) = params
    f32 = jnp.float32

    # encoder-consuming weights, permuted into 9 x 8-row feature blocks (row-major form)
    wenc = jnp.zeros((FEAT_ROWS, ENC_OUT), f32)               # (72, 96)
    for b in range(NUM_FEAT_BLOCKS):
        r = 8 * b
        wenc = wenc.at[r:r + 3, 0:32].set(w0a[3 * b:3 * b + 3])        # pos rows 0:3
        wenc = wenc.at[r:r + 3, 32:64].set(w1p[3 * b:3 * b + 3])
        if b < 1 + 2 * DIR_FREQS:                                      # dir uses only L=2
            wenc = wenc.at[r + 3:r + 6, 64:80].set(wc1d[3 * b:3 * b + 3])  # dir rows 3:6
    # fold the first-layer biases into the constant-1 ray row (row 6 of the identity block)
    wenc = wenc.at[6, 0:32].set(b0a[0])
    wenc = wenc.at[6, 32:64].set(b1a[0])
    wenc = wenc.at[6, 64:80].set(bc1[0])
    wenc_t = wenc.T                                            # (96, 72) for W.T @ feats

    # remaining weights / biases, transposed, stacked into one (REST_ROWS, 32) buffer
    rest = jnp.zeros((REST_ROWS, REST_COLS), f32)
    rest = rest.at[OFF_W0B:OFF_W0B + HIDDEN_DIM].set(w0b.T)
    rest = rest.at[OFF_W1Z:OFF_W1Z + HIDDEN_DIM].set(w1z.T)
    rest = rest.at[OFF_W1B:OFF_W1B + HIDDEN_DIM].set(w1b.T)
    rest = rest.at[OFF_WC1Z:OFF_WC1Z + HIDDEN_DIM // 2].set(wc1z.T)        # (16, 32)
    rest = rest.at[OFF_WC2:OFF_WC2 + 4, 0:HIDDEN_DIM // 2].set(wc2.T)      # (4, 16)
    rest = rest.at[OFF_BIAS:OFF_BIAS + HIDDEN_DIM, 0].set(b0b[0])
    rest = rest.at[OFF_BIAS:OFF_BIAS + HIDDEN_DIM, 1].set(b1b[0])
    rest = rest.at[OFF_BIAS:OFF_BIAS + 4, 2].set(bc2[0])
    return wenc_t, rest


# ------------------------------ JAX wrapper -----------------------------------
@jax.jit
def nerf_forward(pos, dir_, pixel_width, t_start, t_end, wenc_t, wrest):
    # TODO(synk): the original PositionalEncoding class is not provided; a standard
    # NeRF frequency encoding is used and pixel_width / t_start / t_end are unused.
    del pixel_width, t_start, t_end
    n = pos.shape[0]
    f32 = jnp.float32

    # Rays along lanes: one (8, n) f32 input [pos(3), dir(3), 1, 0]; the constant-1
    # row carries the folded first-layer biases through the encoder matmul.
    x_t = jnp.concatenate(
        [pos.astype(f32).T, dir_.astype(f32).T,
         jnp.ones((1, n), f32), jnp.zeros((1, n), f32)], axis=0)

    # Remainder handling: zero-pad rays to a multiple of TILE_N (finite pad -> no NaNs).
    n_pad = pl.cdiv(n, TILE_N) * TILE_N
    if n_pad != n:
        x_t = jnp.pad(x_t, ((0, 0), (0, n_pad - n)))

    out = pl.pallas_call(
        nerf_kernel,
        out_shape=jax.ShapeDtypeStruct((8, n_pad), jnp.float32),
        grid_spec=pltpu.PrefetchScalarGridSpec(
            num_scalar_prefetch=0,
            grid=(n_pad // TILE_N,),
            in_specs=[
                pl.BlockSpec((8, TILE_N), lambda i: (0, i)),             # rays (lanes)
                pl.BlockSpec((ENC_OUT, FEAT_ROWS), lambda i: (0, 0)),    # packed enc W.T
                pl.BlockSpec((REST_ROWS, REST_COLS), lambda i: (0, 0)),  # packed rest
            ],
            out_specs=pl.BlockSpec((8, TILE_N), lambda i: (0, i)),       # rows: r,g,b,density,pad
            scratch_shapes=[
                pltpu.VMEM((FEAT_ROWS, TILE_N), jnp.float32),            # staged features
                pltpu.VMEM((ENC_OUT, TILE_N), jnp.float32),              # encoder outputs
            ],
        ),
        compiler_params=pltpu.CompilerParams(
            dimension_semantics=("parallel",)),
    )(x_t, wenc_t, wrest)

    density = out[3, :n]                 # (N,)
    rgb = out[0:3, :n].T                 # (N, 3)
    return density, rgb                  # matches PyTorch: density, rgb


# ------------------------------ reference (pure JAX) -------------------------
def frequency_encode(x, n_freqs):
    feats = [x]
    for l in range(n_freqs):
        feats.append(jnp.sin((2.0 ** l) * x))
        feats.append(jnp.cos((2.0 ** l) * x))
    return jnp.concatenate(feats, axis=-1)


def nerf_forward_ref(pos, dir_, params):
    (w0a, b0a, w0b, b0b, w1z, w1p, b1a, w1b, b1b,
     wc1z, wc1d, bc1, wc2, bc2) = params
    p = frequency_encode(pos, POS_FREQS)
    d = frequency_encode(dir_, DIR_FREQS)
    z = jnp.maximum(p @ w0a + b0a, 0.0)
    z = jnp.maximum(z @ w0b + b0b, 0.0)
    h = jnp.maximum(z @ w1z + p @ w1p + b1a, 0.0)
    z = h @ w1b + b1b
    h = jnp.maximum(z @ wc1z + d @ wc1d + bc1, 0.0)
    out = h @ wc2 + bc2
    dd = out[:, -1]
    density = jnp.where(dd > 8.0, dd, jnp.log1p(jnp.exp(jnp.minimum(dd, 8.0))))
    rgb = jax.nn.sigmoid(out[:, :3])
    return density, rgb


# --------------------------------- main --------------------------------------
if __name__ == "__main__":
    key = jax.random.PRNGKey(0)
    k_pos, k_dir, k_pw, k_t, k_params = jax.random.split(key, 5)

    N = 1000   # deliberately not a multiple of TILE_N -> exercises the remainder path;
               # pads to 1024 -> 2 grid steps (keeps both v7x TensorCores busy)
    pos = jax.random.normal(k_pos, (N, 3), jnp.float32)
    dir_ = jax.random.normal(k_dir, (N, 3), jnp.float32)
    dir_ = dir_ / jnp.linalg.norm(dir_, axis=-1, keepdims=True)
    pixel_width = jax.random.uniform(k_pw, (N, 1), jnp.float32, 0.001, 0.01)
    t_start = jax.random.uniform(k_t, (N, 1), jnp.float32, 0.0, 1.0)
    t_end = t_start + 0.1

    params = init_params(k_params)
    wenc_t, wrest = pack_params(params)

    density, rgb = nerf_forward(pos, dir_, pixel_width, t_start, t_end, wenc_t, wrest)
    density = jax.block_until_ready(density)
    rgb = jax.block_until_ready(rgb)

    # sanity check against pure-JAX reference (tolerance covers the different but
    # mathematically-equivalent matmul decomposition at default MXU precision)
    d_ref, rgb_ref = nerf_forward_ref(pos, dir_, params)
    assert density.shape == (N,) and rgb.shape == (N, 3)
    assert jnp.allclose(density, d_ref, atol=5e-3, rtol=5e-3), \
        float(jnp.max(jnp.abs(density - d_ref)))
    assert jnp.allclose(rgb, rgb_ref, atol=5e-3, rtol=5e-3), \
        float(jnp.max(jnp.abs(rgb - rgb_ref)))

    print("KERNEL_OK")
</pallas_src>

<mosaic_0001>
module attributes {stable_mosaic.version = 11 : i64} {
  func.func @nerf_kernel(%arg0: i32, %arg1: memref<8x512xf32, #tpu.memory_space<vmem>>, %arg2: memref<96x72xf32, #tpu.memory_space<vmem>>, %arg3: memref<168x32xf32, #tpu.memory_space<vmem>>, %arg4: memref<8x512xf32, #tpu.memory_space<vmem>>, %arg5: memref<72x512xf32, #tpu.memory_space<vmem>>, %arg6: memref<96x512xf32, #tpu.memory_space<vmem>>) attributes {dimension_semantics = [#tpu.dimension_semantics<parallel>], iteration_bounds = array<i64: 2>, scalar_prefetch = 0 : i64, scratch_operands = 2 : i64, tpu.core_type = #tpu.core_type<tc>, window_params = [{transform_indices = @transform_0, window_bounds = array<i64: 8, 512>}, {pipeline_mode = #tpu.pipeline_mode<synchronous>, transform_indices = @transform_1, window_bounds = array<i64: 96, 72>}, {pipeline_mode = #tpu.pipeline_mode<synchronous>, transform_indices = @transform_2, window_bounds = array<i64: 168, 32>}, {transform_indices = @transform_3, window_bounds = array<i64: 8, 512>}]} {
    %c0 = arith.constant 0 : index
    %c0_0 = arith.constant 0 : index
    %0 = vector.load %arg1[%c0, %c0_0] : memref<8x512xf32, #tpu.memory_space<vmem>>, vector<8x512xf32>
    %c0_1 = arith.constant 0 : index
    %c0_2 = arith.constant 0 : index
    %1 = vector.load %arg5[%c0_1, %c0_2] : memref<72x512xf32, #tpu.memory_space<vmem>>, vector<8x512xf32>
    tpu.vector_store %arg5[%c0_1, %c0_2], %0 {strides = array<i32>} : memref<72x512xf32, #tpu.memory_space<vmem>>, vector<8x512xf32>,
    %cst = arith.constant 1.000000e+00 : f32
    %2 = vector.broadcast %cst : f32 to vector<8x512xf32>
    %3 = arith.mulf %0, %2 : vector<8x512xf32>
    %4 = math.sin %3 : vector<8x512xf32>
    %c8 = arith.constant 8 : index
    %c0_3 = arith.constant 0 : index
    %5 = vector.load %arg5[%c8, %c0_3] : memref<72x512xf32, #tpu.memory_space<vmem>>, vector<8x512xf32>
    tpu.vector_store %arg5[%c8, %c0_3], %4 {strides = array<i32>} : memref<72x512xf32, #tpu.memory_space<vmem>>, vector<8x512xf32>,
    %6 = math.cos %3 : vector<8x512xf32>
    %c16 = arith.constant 16 : index
    %c0_4 = arith.constant 0 : index
    %7 = vector.load %arg5[%c16, %c0_4] : memref<72x512xf32, #tpu.memory_space<vmem>>, vector<8x512xf32>
    tpu.vector_store %arg5[%c16, %c0_4], %6 {strides = array<i32>} : memref<72x512xf32, #tpu.memory_space<vmem>>, vector<8x512xf32>,
    %cst_5 = arith.constant 2.000000e+00 : f32
    %8 = vector.broadcast %cst_5 : f32 to vector<8x512xf32>
    %9 = arith.mulf %0, %8 : vector<8x512xf32>
    %10 = math.sin %9 : vector<8x512xf32>
    %c24 = arith.constant 24 : index
    %c0_6 = arith.constant 0 : index
    %11 = vector.load %arg5[%c24, %c0_6] : memref<72x512xf32, #tpu.memory_space<vmem>>, vector<8x512xf32>
    tpu.vector_store %arg5[%c24, %c0_6], %10 {strides = array<i32>} : memref<72x512xf32, #tpu.memory_space<vmem>>, vector<8x512xf32>,
    %12 = math.cos %9 : vector<8x512xf32>
    %c32 = arith.constant 32 : index
    %c0_7 = arith.constant 0 : index
    %13 = vector.load %arg5[%c32, %c0_7] : memref<72x512xf32, #tpu.memory_space<vmem>>, vector<8x512xf32>
    tpu.vector_store %arg5[%c32, %c0_7], %12 {strides = array<i32>} : memref<72x512xf32, #tpu.memory_space<vmem>>, vector<8x512xf32>,
    %cst_8 = arith.constant 4.000000e+00 : f32
    %14 = vector.broadcast %cst_8 : f32 to vector<8x512xf32>
    %15 = arith.mulf %0, %14 : vector<8x512xf32>
    %16 = math.sin %15 : vector<8x512xf32>
    %c40 = arith.constant 40 : index
    %c0_9 = arith.constant 0 : index
    %17 = vector.load %arg5[%c40, %c0_9] : memref<72x512xf32, #tpu.memory_space<vmem>>, vector<8x512xf32>
    tpu.vector_store %arg5[%c40, %c0_9], %16 {strides = array<i32>} : memref<72x512xf32, #tpu.memory_space<vmem>>, vector<8x512xf32>,
    %18 = math.cos %15 : vector<8x512xf32>
    %c48 = arith.constant 48 : index
    %c0_10 = arith.constant 0 : index
    %19 = vector.load %arg5[%c48, %c0_10] : memref<72x512xf32, #tpu.memory_space<vmem>>, vector<8x512xf32>
    tpu.vector_store %arg5[%c48, %c0_10], %18 {strides = array<i32>} : memref<72x512xf32, #tpu.memory_space<vmem>>, vector<8x512xf32>,
    %cst_11 = arith.constant 8.000000e+00 : f32
    %20 = vector.broadcast %cst_11 : f32 to vector<8x512xf32>
    %21 = arith.mulf %0, %20 : vector<8x512xf32>
    %22 = math.sin %21 : vector<8x512xf32>
    %c56 = arith.constant 56 : index
    %c0_12 = arith.constant 0 : index
    %23 = vector.load %arg5[%c56, %c0_12] : memref<72x512xf32, #tpu.memory_space<vmem>>, vector<8x512xf32>
    tpu.vector_store %arg5[%c56, %c0_12], %22 {strides = array<i32>} : memref<72x512xf32, #tpu.memory_space<vmem>>, vector<8x512xf32>,
    %24 = math.cos %21 : vector<8x512xf32>
    %c64 = arith.constant 64 : index
    %c0_13 = arith.constant 0 : index
    %25 = vector.load %arg5[%c64, %c0_13] : memref<72x512xf32, #tpu.memory_space<vmem>>, vector<8x512xf32>
    tpu.vector_store %arg5[%c64, %c0_13], %24 {strides = array<i32>} : memref<72x512xf32, #tpu.memory_space<vmem>>, vector<8x512xf32>,
    %c0_14 = arith.constant 0 : index
    %c0_15 = arith.constant 0 : index
    %26 = vector.load %arg2[%c0_14, %c0_15] : memref<96x72xf32, #tpu.memory_space<vmem>>, vector<96x72xf32>
    %c0_16 = arith.constant 0 : index
    %c0_17 = arith.constant 0 : index
    %27 = vector.load %arg5[%c0_16, %c0_17] : memref<72x512xf32, #tpu.memory_space<vmem>>, vector<72x512xf32>
    %cst_18 = arith.constant dense<0.000000e+00> : vector<96x512xf32>
    %28 = tpu.matmul %26, %27, %cst_18 {dimension_numbers = #tpu.dot_dimension_numbers<[1], [0], [0], [1], [0, 0, 1, 1], [], []>} : vector<96x72xf32>, vector<72x512xf32>, vector<96x512xf32> -> vector<96x512xf32>
    %c0_19 = arith.constant 0 : index
    %c0_20 = arith.constant 0 : index
    %29 = vector.load %arg6[%c0_19, %c0_20] : memref<96x512xf32, #tpu.memory_space<vmem>>, vector<96x512xf32>
    tpu.vector_store %arg6[%c0_19, %c0_20], %28 {strides = array<i32>} : memref<96x512xf32, #tpu.memory_space<vmem>>, vector<96x512xf32>,
    %c136 = arith.constant 136 : index
    %c0_21 = arith.constant 0 : index
    %30 = vector.load %arg3[%c136, %c0_21] : memref<168x32xf32, #tpu.memory_space<vmem>>, vector<32x1xf32>
    %c136_22 = arith.constant 136 : index
    %c1 = arith.constant 1 : index
    %31 = vector.load %arg3[%c136_22, %c1] : memref<168x32xf32, #tpu.memory_space<vmem>>, vector<32x1xf32>
    %c136_23 = arith.constant 136 : index
    %c2 = arith.constant 2 : index
    %32 = vector.load %arg3[%c136_23, %c2] : memref<168x32xf32, #tpu.memory_space<vmem>>, vector<8x1xf32>
    %c0_24 = arith.constant 0 : index
    %c0_25 = arith.constant 0 : index
    %33 = vector.load %arg6[%c0_24, %c0_25] : memref<96x512xf32, #tpu.memory_space<vmem>>, vector<32x512xf32>
    %cst_26 = arith.constant 0.000000e+00 : f32
    %34 = vector.broadcast %cst_26 : f32 to vector<32x512xf32>
    %35 = arith.maximumf %33, %34 : vector<32x512xf32>
    %c0_27 = arith.constant 0 : index
    %c0_28 = arith.constant 0 : index
    %36 = vector.load %arg3[%c0_27, %c0_28] : memref<168x32xf32, #tpu.memory_space<vmem>>, vector<32x32xf32>
    %cst_29 = arith.constant dense<0.000000e+00> : vector<32x512xf32>
    %37 = tpu.matmul %36, %35, %cst_29 {dimension_numbers = #tpu.dot_dimension_numbers<[1], [0], [0], [1], [0, 0, 1, 1], [], []>} : vector<32x32xf32>, vector<32x512xf32>, vector<32x512xf32> -> vector<32x512xf32>
    %38 = vector.broadcast %30 : vector<32x1xf32> to vector<32x512xf32>
    %39 = arith.addf %37, %38 : vector<32x512xf32>
    %cst_30 = arith.constant 0.000000e+00 : f32
    %40 = vector.broadcast %cst_30 : f32 to vector<32x512xf32>
    %41 = arith.maximumf %39, %40 : vector<32x512xf32>
    %c32_31 = arith.constant 32 : index
    %c0_32 = arith.constant 0 : index
    %42 = vector.load %arg3[%c32_31, %c0_32] : memref<168x32xf32, #tpu.memory_space<vmem>>, vector<32x32xf32>
    %cst_33 = arith.constant dense<0.000000e+00> : vector<32x512xf32>
    %43 = tpu.matmul %42, %41, %cst_33 {dimension_numbers = #tpu.dot_dimension_numbers<[1], [0], [0], [1], [0, 0, 1, 1], [], []>} : vector<32x32xf32>, vector<32x512xf32>, vector<32x512xf32> -> vector<32x512xf32>
    %c32_34 = arith.constant 32 : index
    %c0_35 = arith.constant 0 : index
    %44 = vector.load %arg6[%c32_34, %c0_35] : memref<96x512xf32, #tpu.memory_space<vmem>>, vector<32x512xf32>
    %45 = arith.addf %43, %44 : vector<32x512xf32>
    %cst_36 = arith.constant 0.000000e+00 : f32
    %46 = vector.broadcast %cst_36 : f32 to vector<32x512xf32>
    %47 = arith.maximumf %45, %46 : vector<32x512xf32>
    %c64_37 = arith.constant 64 : index
    %c0_38 = arith.constant 0 : index
    %48 = vector.load %arg3[%c64_37, %c0_38] : memref<168x32xf32, #tpu.memory_space<vmem>>, vector<32x32xf32>
    %cst_39 = arith.constant dense<0.000000e+00> : vector<32x512xf32>
    %49 = tpu.matmul %48, %47, %cst_39 {dimension_numbers = #tpu.dot_dimension_numbers<[1], [0], [0], [1], [0, 0, 1, 1], [], []>} : vector<32x32xf32>, vector<32x512xf32>, vector<32x512xf32> -> vector<32x512xf32>
    %50 = vector.broadcast %31 : vector<32x1xf32> to vector<32x512xf32>
    %51 = arith.addf %49, %50 : vector<32x512xf32>
    %c96 = arith.constant 96 : index
    %c0_40 = arith.constant 0 : index
    %52 = vector.load %arg3[%c96, %c0_40] : memref<168x32xf32, #tpu.memory_space<vmem>>, vector<32x32xf32>
    %cst_41 = arith.constant dense<0.000000e+00> : vector<32x512xf32>
    %53 = tpu.matmul %52, %51, %cst_41 {dimension_numbers = #tpu.dot_dimension_numbers<[1], [0], [0], [1], [0, 0, 1, 1], [], []>} : vector<32x32xf32>, vector<32x512xf32>, vector<32x512xf32> -> vector<32x512xf32>
    %c64_42 = arith.constant 64 : index
    %c0_43 = arith.constant 0 : index
    %54 = vector.load %arg6[%c64_42, %c0_43] : memref<96x512xf32, #tpu.memory_space<vmem>>, vector<32x512xf32>
    %55 = arith.addf %53, %54 : vector<32x512xf32>
    %cst_44 = arith.constant 0.000000e+00 : f32
    %56 = vector.broadcast %cst_44 : f32 to vector<32x512xf32>
    %57 = arith.maximumf %55, %56 : vector<32x512xf32>
    %c128 = arith.constant 128 : index
    %c0_45 = arith.constant 0 : index
    %58 = vector.load %arg3[%c128, %c0_45] : memref<168x32xf32, #tpu.memory_space<vmem>>, vector<8x32xf32>
    %cst_46 = arith.constant dense<0.000000e+00> : vector<8x512xf32>
    %59 = tpu.matmul %58, %57, %cst_46 {dimension_numbers = #tpu.dot_dimension_numbers<[1], [0], [0], [1], [0, 0, 1, 1], [], []>} : vector<8x32xf32>, vector<32x512xf32>, vector<8x512xf32> -> vector<8x512xf32>
    %60 = vector.broadcast %32 : vector<8x1xf32> to vector<8x512xf32>
    %61 = arith.addf %59, %60 : vector<8x512xf32>
    %62 = tpu.iota {dimensions = array<i32: 0>} : vector<8x512xi32>
    %cst_47 = arith.constant 8.000000e+00 : f32
    %63 = vector.broadcast %cst_47 : f32 to vector<8x512xf32>
    %64 = arith.cmpf ogt, %61, %63 : vector<8x512xf32>
    %cst_48 = arith.constant 8.000000e+00 : f32
    %65 = vector.broadcast %cst_48 : f32 to vector<8x512xf32>
    %66 = arith.minimumf %61, %65 : vector<8x512xf32>
    %67 = math.exp %66 : vector<8x512xf32>
    %68 = math.log1p %67 : vector<8x512xf32>
    %69 = arith.select %64, %61, %68 : vector<8x512xi1>, vector<8x512xf32>
    %c3_i32 = arith.constant 3 : i32
    %70 = vector.broadcast %c3_i32 : i32 to vector<8x512xi32>
    %71 = arith.cmpi slt, %62, %70 : vector<8x512xi32>
    %72 = arith.negf %61 : vector<8x512xf32>
    %73 = math.exp %72 : vector<8x512xf32>
    %cst_49 = arith.constant 1.000000e+00 : f32
    %74 = vector.broadcast %cst_49 : f32 to vector<8x512xf32>
    %75 = arith.addf %74, %73 : vector<8x512xf32>
    %76 = arith.divf %74, %75 : vector<8x512xf32>
    %77 = arith.select %71, %76, %69 : vector<8x512xi1>, vector<8x512xf32>
    %c0_50 = arith.constant 0 : index
    %c0_51 = arith.constant 0 : index
    %78 = vector.load %arg4[%c0_50, %c0_51] : memref<8x512xf32, #tpu.memory_space<vmem>>, vector<8x512xf32>
    tpu.vector_store %arg4[%c0_50, %c0_51], %77 {strides = array<i32>} : memref<8x512xf32, #tpu.memory_space<vmem>>, vector<8x512xf32>,
    return
  }
  func.func @transform_0(%arg0: i32) -> (i32, i32) {
    %c0_i32 = arith.constant 0 : i32
    %c0_i32_0 = arith.constant 0 : i32
    return %c0_i32, %arg0 : i32, i32
  }
  func.func @transform_1(%arg0: i32) -> (i32, i32) {
    %c0_i32 = arith.constant 0 : i32
    %c0_i32_0 = arith.constant 0 : i32
    %c0_i32_1 = arith.constant 0 : i32
    return %c0_i32, %c0_i32_0 : i32, i32
  }
  func.func @transform_2(%arg0: i32) -> (i32, i32) {
    %c0_i32 = arith.constant 0 : i32
    %c0_i32_0 = arith.constant 0 : i32
    %c0_i32_1 = arith.constant 0 : i32
    return %c0_i32, %c0_i32_0 : i32, i32
  }
  func.func @transform_3(%arg0: i32) -> (i32, i32) {
    %c0_i32 = arith.constant 0 : i32
    %c0_i32_0 = arith.constant 0 : i32
    return %c0_i32, %arg0 : i32, i32
  }
}

</mosaic_0001>

<bundles_post_ra>
// kernel: nerf_forward.1
= control target key start
LH: loop header
LB: loop body
LE: loop exit
PB: predicated region body
PF: predicated region fallthrough
CT: control target
= control target key end

     0   :  { %s5602_s12 = smov 0   ;;  %s7595_s0 = inlined_call_operand.vmem [shape: f32[8,1024], index: 0, kind: input, shape index: {}]   ;;  %s7596_s1 = inlined_call_operand.vmem [shape: f32[96,72], index: 1, kind: input, shape index: {}]   ;;  %s7597_s2 = inlined_call_operand.vmem [shape: f32[168,32], index: 2, kind: input, shape index: {}]   ;;  %s7598_s3 = inlined_call_operand.vmem [shape: f32[8,1024], index: 3, kind: output, shape index: {}]  }
   0x1 LB: > { %s5171_s13 = sadd.s32 4294967295, %s5570_s12   ;;  %p5175_p0 = scmp.ge.s32.totalorder %s5570_s12, 1  ;;  %s5570_s12 = sphi %s5602_s12, %s13_s12  }
   0x2   : > { %p138_p1 = scmp.lt.s32.totalorder %s5570_s12, 3 }
   0x4   : > { %p139_p2 = pnand %p5175_p0, %p138_p1 }
   0x6   : > { %142 = sbr.rel (%p139_p2) target bundleno = 1813 (0x715), region = 32 }
   0xb   : > { %s5176_s14 = sshll.u32 %s5171_s13, 2  ;;  %v5572_v32 = vmov 683565275   ;;  %v5573_v34 = vmov 2475754826  }
   0xc   : > { %p163_p3 = scmp.lt.s32.totalorder %s5176_s14, 7  ;;  %v5574_v36 = vmov 2131351028   ;;  %v5575_v38 = vmov 2102212464  }
   0xd   : > { %v5576_v40 = vmov 920167782   ;;  %v5577_v48 = vmov 1326507024  }
   0xe   : > { %s7634_s14 = smov (!%p163_p3, %s5176_s14), 7 }
   0xf   : > { %s5177_s15 = sshll.u32 %s7634_s14, 3 }
  0x10   : > { %s5618_s18 = scalar_lea.vmem %s7595_s0, %s5177_s15  ;;  %s7572_s13 = scalar_lea.vmem %s7598_s3, %s5177_s15 }
  0x11   : > { %v5621_v0 = vld [vmem:[%s5618_s18 + $0x8] sm:$0xff]  ;;  %v5624_v1 = vld [vmem:[%s5618_s18 + $0x18] sm:$0xff]  ;;  %v5627_v2 = vld [vmem:[%s5618_s18] sm:$0xff] }
  0x12   : > { %v5630_v3 = vmul.f32 8.0, %v5621_v0  ;;  %v5633_v4 = vmul.f32 8.0, %v5624_v1  ;;  %v5636_v5 = vmul.f32 8.0, %v5627_v2 }
  0x14   : > { %v2806_v6 = vand.u32 2147483647, %v5630_v3  ;;  %v2809_v7 = vand.u32 2139095040, %v5630_v3  ;;  %v3014_v8 = vand.u32 2147483647, %v5633_v4  ;;  %v3017_v9 = vand.u32 2139095040, %v5633_v4 }
  0x15   : > { %v2705_v14 = vand.u32 2139095040, %v5636_v5 }
  0x16   : > { %v2810_v10 = vshrl.u32 %v2809_v7, 23  ;;  %v2813_v11 = vand.u32 8388607, %v2806_v6  ;;  %v3018_v12 = vshrl.u32 %v3017_v9, 23  ;;  %v3021_v13 = vand.u32 8388607, %v3014_v8 }
  0x17   : > { %v2706_v17 = vshrl.u32 %v2705_v14, 23 }
  0x18   : > { %v5280_v15 = vadd.s32 4294967169, %v2810_v10  ;;  %v5288_v16 = vadd.s32 4294967169, %v3018_v12  ;;  %v2814_v19 = vor.u32 8388608, %v2813_v11  ;;  %v3022_v20 = vor.u32 8388608, %v3021_v13 }
  0x19   : > { %v5276_v22 = vadd.s32 4294967169, %v2706_v17 }
  0x1a   : > { %v2816_v18 = vadd.s32 1, %v5280_v15  ;;  %v3024_v21 = vadd.s32 1, %v5288_v16  ;;  %v5647_v27 = vshll.u32 %v2814_v19, 8  ;;  %v5649_v29 = vshll.u32 %v3022_v20, 8 }
  0x1b   : > { %v5651_v30 = vadd.s32 1, %v5276_v22 }
  0x1c   : > { %vm2817_vm0 = vcmp.gt.s32.totalorder %v2816_v18, 0  ;;  %vm3025_vm1 = vcmp.gt.s32.totalorder %v3024_v21, 0 }
  0x1d   : > { %v2818_v23 = vsel %vm2817_vm0, %v2816_v18, 0  ;;  %v3026_v26 = vsel %vm3025_vm1, %v3024_v21, 0  ;;  %vm2713_vm6 = vcmp.gt.s32.totalorder %v5651_v30, 0 }
  0x1e   : > { %v2819_v24 = vshrl.u32 %v2818_v23, 5  ;;  %v2820_v25 = vand.u32 31, %v2818_v23  ;;  %v3028_v28 = vand.u32 31, %v3026_v26  ;;  %v5658_v42 = vshrl.u32 %v3026_v26, 5 }
  0x20   : > { %v2821_v31 = vsub.s32 32, %v2820_v25  ;;  %v2823_v33 = vshll.u32 %v5572_v32, %v2820_v25  ;;  %v2826_v35 = vshll.u32 %v5573_v34, %v2820_v25  ;;  %v2829_v37 = vshll.u32 %v5574_v36, %v2820_v25 }
  0x21   : > { %v2832_v39 = vshll.u32 %v5575_v38, %v2820_v25  ;;  %v2835_v41 = vshll.u32 %v5576_v40, %v2820_v25  ;;  %vm2838_vm2 = vcmp.lt.s32.totalorder %v2819_v24, 1  ;;  %vm2839_vm3 = vcmp.lt.s32.totalorder %v2819_v24, 2 }
  0x22   : > { %v2822_v43 = vshrl.u32 %v5572_v32, %v2821_v31  ;;  %v2824_v44 = vshrl.u32 %v5573_v34, %v2821_v31  ;;  %v2827_v45 = vshrl.u32 %v5574_v36, %v2821_v31  ;;  %v2830_v46 = vshrl.u32 %v5575_v38, %v2821_v31 }
  0x23   : > { %v2833_v47 = vshrl.u32 %v5576_v40, %v2821_v31  ;;  %v2836_v49 = vshrl.u32 %v5577_v48, %v2821_v31  ;;  %vm2841_vm4 = vcmp.lt.s32.totalorder %v2819_v24, 4  ;;  %v3029_v53 = vsub.s32 32, %v3028_v28 }
  0x24   : > { %v2825_v50 = vor.u32 %v2824_v44, %v2823_v33  ;;  %v2828_v51 = vor.u32 %v2827_v45, %v2826_v35  ;;  %v2831_v52 = vor.u32 %v2830_v46, %v2829_v37  ;;  %vm2840_vm5 = vcmp.lt.s32.totalorder %v2819_v24, 3 }
  0x25   : > { %v2834_v54 = vor.u32 %v2833_v47, %v2832_v39  ;;  %v2837_v55 = vor.u32 %v2836_v49, %v2835_v41  ;;  %v3031_v56 = vshll.u32 %v5572_v32, %v3028_v28  ;;  %v3034_v7 = vshll.u32 %v5573_v34, %v3028_v28 }
  0x26   : > { %v2842_v57 = vsel %vm2838_vm2, %v2822_v43, %v2825_v50  ;;  %v2843_v58 = vsel %vm2841_vm4, %v2831_v52, 2102212464  ;;  %v2846_v59 = vsel %vm2838_vm2, %v2825_v50, %v2828_v51  ;;  %v2850_v60 = vsel %vm2838_vm2, %v2828_v51, %v2831_v52 }
  0x27   : > { %v2844_v61 = vsel %vm2840_vm5, %v2828_v51, %v2843_v58  ;;  %v2847_v62 = vsel %vm2841_vm4, %v2834_v54, 920167782  ;;  %v2851_v63 = vsel %vm2841_vm4, %v2837_v55, 1326507024  ;;  %v3030_v11 = vshrl.u32 %v5572_v32, %v3029_v53 }
  0x28   : > { %v2848_v9 = vsel %vm2840_vm5, %v2831_v52, %v2847_v62  ;;  %v2852_v10 = vsel %vm2840_vm5, %v2834_v54, %v2851_v63  ;;  %v3032_v12 = vshrl.u32 %v5573_v34, %v3029_v53  ;;  %v2845_v13 = vsel %vm2839_vm3, %v2842_v57, %v2844_v61 }
  0x29   : > { %v2849_v14 = vsel %vm2839_vm3, %v2846_v59, %v2848_v9  ;;  %v2853_v15 = vsel %vm2839_vm3, %v2850_v60, %v2852_v10  ;;  %v3035_v16 = vshrl.u32 %v5574_v36, %v3029_v53  ;;  %v3037_v23 = vshll.u32 %v5574_v36, %v3028_v28  ;;  %v5724_v10 = vld [vmem:[%s5618_s18 + $0x10] sm:$0xff] }
  0x2a   : > { %v5679_v17 = vmul.u32.u64.low %v5647_v27, %v2853_v15  ;;  %v5680_v18 = vmul.u32.u64.high %v5647_v27, %v2853_v15, %v5679_v17  ;;  %v5683_v19 = vmul.u32.u64.low %v5647_v27, %v2849_v14  ;;  %v5684_v20 = vmul.u32.u64.high %v5647_v27, %v2849_v14, %v5683_v19 }
  0x2b   : > { %v3033_v21 = vor.u32 %v3032_v12, %v3031_v56  ;;  %v3036_v22 = vor.u32 %v3035_v16, %v3034_v7  ;;  %v3038_v25 = vshrl.u32 %v5575_v38, %v3029_v53  ;;  %v3040_v24 = vshll.u32 %v5575_v38, %v3028_v28 }
  0x2c   : > { %v3041_v26 = vshrl.u32 %v5576_v40, %v3029_v53  ;;  %v3043_v31 = vshll.u32 %v5576_v40, %v3028_v28  ;;  %v3044_v33 = vshrl.u32 %v5577_v48, %v3029_v53  ;;  %v2861_v35 = vmul.u32 %v5647_v27, %v2845_v13 }
  0x2d   : > { %v3039_v37 = vor.u32 %v3038_v25, %v3037_v23  ;;  %vm3046_vm7 = vcmp.lt.s32.totalorder %v5658_v42, 1  ;;  %vm3047_vm8 = vcmp.lt.s32.totalorder %v5658_v42, 2  ;;  %vm2863_vm9 = vc.u32 %v5680_v18, %v5683_v19 }
  0x2e   : > { %v2864_v39 = vadd.s32 1, %v5684_v20  ;;  %v3042_v41 = vor.u32 %v3041_v26, %v3040_v24  ;;  %vm3048_vm10 = vcmp.lt.s32.totalorder %v5658_v42, 3  ;;  %v3045_v43 = vor.u32 %v3044_v33, %v3043_v31 }
  0x2f   : > { %vm3049_vm11 = vcmp.lt.s32.totalorder %v5658_v42, 4  ;;  %v3050_v28 = vsel %vm3046_vm7, %v3030_v11, %v3033_v21  ;;  %v3054_v44 = vsel %vm3046_vm7, %v3033_v21, %v3036_v22  ;;  %v3058_v47 = vsel %vm3046_vm7, %v3036_v22, %v3039_v37 }
  0x30   : > { %v2865_v27 = vsel %vm2863_vm9, %v2864_v39, %v5684_v20  ;;  %v3051_v45 = vsel %vm3049_vm11, %v3039_v37, 2102212464  ;;  %v3055_v46 = vsel %vm3049_vm11, %v3042_v41, 920167782  ;;  %v3059_v52 = vsel %vm3049_vm11, %v3045_v43, 1326507024 }
  0x31   : > { %v2866_v49 = vadd.s32 %v2865_v27, %v2861_v35  ;;  %v3052_v50 = vsel %vm3048_vm10, %v3036_v22, %v3051_v45  ;;  %v3056_v51 = vsel %vm3048_vm10, %v3039_v37, %v3055_v46  ;;  %v3060_v55 = vsel %vm3048_vm10, %v3042_v41, %v3059_v52 }
  0x32   : > { %v3053_v53 = vsel %vm3047_vm8, %v3050_v28, %v3052_v50  ;;  %v3057_v54 = vsel %vm3047_vm8, %v3054_v44, %v3056_v51  ;;  %v2714_v56 = vsel %vm2713_vm6, %v5651_v30, 0  ;;  %v3061_v58 = vsel %vm3047_vm8, %v3058_v47, %v3060_v55 }
  0x33   : > { %v2867_v57 = vadd.s32 536870912, %v2866_v49  ;;  %v5712_v59 = vmul.u32.u64.low %v5649_v29, %v3057_v54  ;;  %v5713_v60 = vmul.u32.u64.high %v5649_v29, %v3057_v54, %v5712_v59  ;;  %v2702_v63 = vand.u32 2147483647, %v5636_v5 }
  0x34   : > { %v5717_v61 = vmul.u32.u64.low %v5649_v29, %v3061_v58  ;;  %v5718_v62 = vmul.u32.u64.high %v5649_v29, %v3061_v58, %v5717_v61  ;;  %v2716_v9 = vand.u32 31, %v2714_v56  ;;  %v3069_v30 = vmul.u32 %v5649_v29, %v3053_v53 }
  0x35   : > { %v5721_v7 = vshrl.u32 %v2867_v57, 30  ;;  %v3072_v11 = vadd.s32 1, %v5713_v60  ;;  %v2709_v13 = vand.u32 8388607, %v2702_v63  ;;  %v5734_v14 = vmul.f32 8.0, %v5724_v10 }
  0x36   : > { %v2717_v12 = vsub.s32 32, %v2716_v9  ;;  %vm3071_vm12 = vc.u32 %v5718_v62, %v5712_v59  ;;  %v5739_v17 = vshrl.u32 %v2714_v56, 5  ;;  %v2719_v29 = vshll.u32 %v5572_v32, %v2716_v9 }
  0x37   : > { %v2869_v42 = vshll.u32 %v5721_v7, 30  ;;  %v3073_v16 = vsel %vm3071_vm12, %v3072_v11, %v5713_v60  ;;  %v2722_v22 = vshll.u32 %v5573_v34, %v2716_v9  ;;  %v2725_v24 = vshll.u32 %v5574_v36, %v2716_v9 }
  0x38   : > { %v3074_v20 = vadd.s32 %v3073_v16, %v3069_v30  ;;  %v2720_v21 = vshrl.u32 %v5573_v34, %v2717_v12  ;;  %v2723_v23 = vshrl.u32 %v5574_v36, %v2717_v12  ;;  %v5748_v26 = vmul.f32 4.0, %v5621_v0 }
  0x39   : > { %v5736_v15 = vsub.s32 %v2866_v49, %v2869_v42  ;;  %v2710_v33 = vor.u32 8388608, %v2709_v13  ;;  %v2726_v35 = vshrl.u32 %v5575_v38, %v2717_v12  ;;  %v2913_v37 = vand.u32 2139095040, %v5734_v14 }
  0x3a   : > { %v3075_v31 = vadd.s32 536870912, %v3074_v20  ;;  %v2721_v41 = vor.u32 %v2720_v21, %v2719_v29  ;;  %vm2734_vm13 = vcmp.lt.s32.totalorder %v5739_v17, 1  ;;  %vm2737_vm14 = vcmp.lt.s32.totalorder %v5739_v17, 4 }
  0x3b   : > { %v2872_v25 = vsub.s32 0, %v5736_v15  ;;  %v2724_v28 = vor.u32 %v2723_v23, %v2722_v22  ;;  %v2728_v44 = vshll.u32 %v5575_v38, %v2716_v9  ;;  %v2729_v0 = vshrl.u32 %v5576_v40, %v2717_v12 }
  0x3c   : > { %v5755_v43 = vshrl.u32 %v3075_v31, 30  ;;  %v2727_v45 = vor.u32 %v2726_v35, %v2725_v24  ;;  %v2731_v46 = vshll.u32 %v5576_v40, %v2716_v9  ;;  %v2732_v47 = vshrl.u32 %v5577_v48, %v2717_v12 }
  0x3d   : > { %v5281_v39 = vmin.u32 %v2872_v25, %v5736_v15  ;;  %v2730_v50 = vor.u32 %v2729_v0, %v2728_v44  ;;  %vm2736_vm15 = vcmp.lt.s32.totalorder %v5739_v17, 3  ;;  %v2914_v51 = vshrl.u32 %v2913_v37, 23 }
  0x3e   : > { %v3077_v49 = vshll.u32 %v5755_v43, 30  ;;  %vm2735_vm0 = vcmp.lt.s32.totalorder %v5739_v17, 2  ;;  %v5764_v53 = vshll.u32 %v2710_v33, 8  ;;  %v2910_v54 = vand.u32 2147483647, %v5734_v14 }
  0x3f   : > { %v2874_v27 = vclz %v5281_v39  ;;  %v2718_v56 = vshrl.u32 %v5572_v32, %v2717_v12  ;;  %v2742_v57 = vsel %vm2734_vm13, %v2721_v41, %v2724_v28  ;;  %v2743_v58 = vsel %vm2737_vm14, %v2730_v50, 920167782 }
  0x40   : > { %v5767_v55 = vsub.s32 %v3074_v20, %v3077_v49  ;;  %v2862_v60 = vadd.s32 %v5683_v19, %v5680_v18  ;;  %v2733_v61 = vor.u32 %v2732_v47, %v2731_v46  ;;  %v2744_v9 = vsel %vm2736_vm15, %v2727_v45, %v2743_v58 }
  0x41   : > { %v5282_v52 = vadd.s32 4294967294, %v2874_v27  ;;  %v2739_v11 = vsel %vm2737_vm14, %v2727_v45, 2102212464  ;;  %v5284_v12 = vadd.s32 4294967169, %v2914_v51  ;;  %v2745_v20 = vsel %vm2735_vm0, %v2742_v57, %v2744_v9 }
  0x42   : > { %v3080_v42 = vsub.s32 0, %v5767_v55  ;;  %v2738_v19 = vsel %vm2734_vm13, %v2718_v56, %v2721_v41  ;;  %v2746_v21 = vsel %vm2734_vm13, %v2724_v28, %v2727_v45  ;;  %v5791_v22 = vand.u32 8388607, %v2910_v54 }
  0x43   : > { %vm5283_vm1 = vcmp.lt.s32.totalorder %v5282_v52, 0  ;;  %vm2808_vm2 = vcmp.lt.s32.totalorder %v5630_v3, 0  ;;  %v2740_v25 = vsel %vm2736_vm15, %v2724_v28, %v2739_v11  ;;  %v2747_v24 = vsel %vm2737_vm14, %v2733_v61, 1326507024 }
  0x44   : > { %v2877_v30 = vsel %vm5283_vm1, 0, %v5282_v52  ;;  %v5289_v18 = vmin.u32 %v3080_v42, %v5767_v55  ;;  %v2748_v33 = vsel %vm2736_vm15, %v2730_v50, %v2747_v24  ;;  %v2920_v0 = vadd.s32 1, %v5284_v12 }
  0x45   : > { %v2878_v13 = vsub.s32 32, %v2877_v30  ;;  %v2879_v16 = vshll.u32 %v5736_v15, %v2877_v30  ;;  %v2882_v29 = vsub.s32 4294967266, %v2877_v30  ;;  %v2749_v44 = vsel %vm2735_vm0, %v2746_v21, %v2748_v33 }
  0x46   : > { %v3082_v31 = vclz %v5289_v18  ;;  %v5801_v35 = vmul.u32.u64.low %v5764_v53, %v2745_v20  ;;  %v5802_v37 = vmul.u32.u64.high %v5764_v53, %v2745_v20, %v5801_v35  ;;  %v2741_v28 = vsel %vm2735_vm0, %v2738_v19, %v2740_v25 }
  0x47   : > { %v2880_v23 = vshrl.u32 %v2862_v60, %v2878_v13  ;;  %v2883_v15 = vadd.s32 127, %v2882_v29  ;;  %v5810_v45 = vmul.u32.u64.low %v5764_v53, %v2749_v44  ;;  %v5811_v46 = vmul.u32.u64.high %v5764_v53, %v2749_v44, %v5810_v45 }
  0x48   : > { %v5290_v27 = vadd.s32 4294967294, %v3082_v31  ;;  %v2892_v50 = vsub.s32 4, %v5721_v7  ;;  %vm2921_vm3 = vcmp.gt.s32.totalorder %v2920_v0, 0  ;;  %v3070_v51 = vadd.s32 %v5712_v59, %v5718_v62 }
  0x49   : > { %v2881_v39 = vor.u32 %v2880_v23, %v2879_v16  ;;  %v2884_v41 = vshll.u32 %v2883_v15, 23  ;;  %v2760_v52 = vadd.s32 1, %v5802_v37  ;;  %v2922_v56 = vsel %vm2921_vm3, %v2920_v0, 0 }
  0x4a   : > { %vm5291_vm4 = vcmp.lt.s32.totalorder %v5290_v27, 0  ;;  %v2757_v17 = vmul.u32 %v5764_v53, %v2741_v28  ;;  %v2924_v60 = vand.u32 31, %v2922_v56  ;;  %vm5820_vm5 = vcmp.le.f32.partialorder %v2806_v6, 0.7853982 }
  0x4b   : > { %v2885_v47 = vor.u32 4788187, %v2884_v41  ;;  %v2888_v49 = vcvt.s32.f32 %v2881_v39  ;;  %v3085_v58 = vsel %vm5291_vm4, 0, %v5290_v27  ;;  %vm2759_vm6 = vc.u32 %v5811_v46, %v5801_v35 }
  0x4c   : > { %v3086_v9 = vsub.s32 32, %v3085_v58  ;;  %v3087_v30 = vshll.u32 %v5767_v55, %v3085_v58  ;;  %v3090_v42 = vsub.s32 4294967266, %v3085_v58  ;;  %v2918_v62 = vor.u32 8388608, %v5791_v22 }
  0x4d   : > { %v2886_v57 = vand.u32 2147483647, %v2885_v47  ;;  %v2925_v11 = vsub.s32 32, %v2924_v60  ;;  %v2893_v53 = vsel %vm2808_vm2, %v2892_v50, %v5721_v7  ;;  %v2761_v13 = vsel %vm2759_vm6, %v2760_v52, %v5802_v37 }
  0x4e   : > { %v3088_v12 = vshrl.u32 %v3070_v51, %v3086_v9  ;;  %v3091_v6 = vadd.s32 127, %v3090_v42  ;;  %vm3016_vm7 = vcmp.lt.s32.totalorder %v5633_v4, 0  ;;  %v3100_v55 = vsub.s32 4, %v5755_v43 }
  0x4f   : > { %v2889_v59 = vmul.f32 %v2888_v49, %v2886_v57  ;;  %v2762_v29 = vadd.s32 %v2761_v13, %v2757_v17  ;;  %v5834_v20 = vshrl.u32 %v2922_v56, 5  ;;  %vm5838_vm8 = vcmp.le.f32.partialorder %v3014_v8, 0.7853982 }
  0x50   : > { %v3089_v19 = vor.u32 %v3088_v12, %v3087_v30  ;;  %v3092_v7 = vshll.u32 %v3091_v6, 23  ;;  %v2927_v21 = vshll.u32 %v5572_v32, %v2924_v60  ;;  %v2930_v22 = vshll.u32 %v5573_v34, %v2924_v60 }
  0x51   : > { %v2890_v16 = vxor.u32 2147483648, %v2889_v59  ;;  %v2763_v15 = vadd.s32 536870912, %v2762_v29  ;;  %v2928_v25 = vshrl.u32 %v5573_v34, %v2925_v11  ;;  %v2931_v24 = vshrl.u32 %v5574_v36, %v2925_v11 }
  0x52   : > { %v3093_v31 = vor.u32 4788187, %v3092_v7  ;;  %v3096_v33 = vcvt.s32.f32 %v3089_v19  ;;  %v2933_v37 = vshll.u32 %v5574_v36, %v2924_v60  ;;  %v2934_v41 = vshrl.u32 %v5575_v38, %v2925_v11 }
  0x53   : > { %v2891_v23 = vsel %vm2808_vm2, %v2890_v16, %v2889_v59  ;;  %v5852_v39 = vshrl.u32 %v2763_v15, 30  ;;  %v2936_v44 = vshll.u32 %v5575_v38, %v2924_v60  ;;  %v2937_v27 = vshrl.u32 %v5576_v40, %v2925_v11 }
  0x54   : > { %v2894_v8 = vsel %vm5820_vm5, %v5630_v3, %v2891_v23  ;;  %v3094_v0 = vand.u32 2147483647, %v3093_v31  ;;  %v2939_v28 = vshll.u32 %v5576_v40, %v2924_v60  ;;  %v2895_v45 = vsel %vm5820_vm5, 0, %v2893_v53 }
  0x55   : > { %5460 = vcosq.f32 %v2894_v8  ;;  %v2765_v47 = vshll.u32 %v5852_v39, 30  ;;  %v2926_v49 = vshrl.u32 %v5572_v32, %v2925_v11  ;;  %v2940_v50 = vshrl.u32 %v5577_v48, %v2925_v11 }
  0x56   : > { %5462 = vsinq.f32 %v2894_v8  ;;  %v3097_v51 = vmul.f32 %v3096_v33, %v3094_v0  ;;  %v2929_v52 = vor.u32 %v2928_v25, %v2927_v21  ;;  %v2932_v56 = vor.u32 %v2931_v24, %v2930_v22 }
  0x57   : > { %v2938_v57 = vor.u32 %v2937_v27, %v2936_v44  ;;  %v5863_v58 = vsub.s32 %v2762_v29, %v2765_v47  ;;  %v2935_v17 = vor.u32 %v2934_v41, %v2933_v37  ;;  %vm2942_vm9 = vcmp.lt.s32.totalorder %v5834_v20, 1 }
  0x58   : > { %vm2945_vm10 = vcmp.lt.s32.totalorder %v5834_v20, 4  ;;  %v3318_v60 = vand.u32 3, %v2895_v45  ;;  %v3098_v61 = vxor.u32 2147483648, %v3097_v51  ;;  %v3101_v9 = vsel %vm3016_vm7, %v3100_v55, %v5755_v43 }
  0x59   : > { %v2941_v30 = vor.u32 %v2940_v50, %v2939_v28  ;;  %v2768_v42 = vsub.s32 0, %v5863_v58  ;;  %vm2944_vm11 = vcmp.lt.s32.totalorder %v5834_v20, 3  ;;  %v2947_v59 = vsel %vm2945_vm10, %v2935_v17, 2102212464 }
  0x5a   : > { %v2958_v11 = vshll.u32 %v2918_v62, 8  ;;  %v3099_v53 = vsel %vm3016_vm7, %v3098_v61, %v3097_v51  ;;  %vm2943_vm12 = vcmp.lt.s32.totalorder %v5834_v20, 2  ;;  %v2950_v12 = vsel %vm2942_vm9, %v2929_v52, %v2932_v56 }
  0x5b   : > { %v2951_v43 = vsel %vm2945_vm10, %v2938_v57, 920167782  ;;  %vm2898_vm13 = vweird.f32 %v5630_v3  ;;  %v3102_v6 = vsel %vm5838_vm8, %v5633_v4, %v3099_v53  ;;  %v5277_v13 = vmin.u32 %v2768_v42, %v5863_v58 }
  0x5c   : > { %v2946_v62 = vsel %vm2942_vm9, %v2926_v49, %v2929_v52  ;;  %v2954_v16 = vsel %vm2942_vm9, %v2932_v56, %v2935_v17  ;;  %5464 = vcosq.f32 %v3102_v6  ;;  %v2948_v55 = vsel %vm2944_vm11, %v2932_v56, %v2947_v59 }
  0x5d   : > { %v2952_v29 = vsel %vm2944_vm11, %v2935_v17, %v2951_v43  ;;  %v2955_v19 = vsel %vm2945_vm10, %v2941_v30, 1326507024  ;;  %5466 = vsinq.f32 %v3102_v6  ;;  %v2770_v7 = vclz %v5277_v13 }
  0x5e   : > { %v2953_v21 = vsel %vm2943_vm12, %v2950_v12, %v2952_v29  ;;  %v2956_v22 = vsel %vm2944_vm11, %v2938_v57, %v2955_v19  ;;  %v2899_v23 = vadd.s32 3, %v2895_v45  ;;  %v2949_v31 = vsel %vm2943_vm12, %v2946_v62, %v2948_v55 }
  0x5f   : > { %v2957_v15 = vsel %vm2943_vm12, %v2954_v16, %v2956_v22  ;;  %v5902_v25 = vmul.u32.u64.low %v2958_v11, %v2953_v21  ;;  %v5903_v24 = vmul.u32.u64.high %v2958_v11, %v2953_v21, %v5902_v25  ;;  %v5278_v8 = vadd.s32 4294967294, %v2770_v7 }
  0x60   : > { %v5908_v33 = vmul.u32.u64.low %v2958_v11, %v2957_v15  ;;  %v5909_v37 = vmul.u32.u64.high %v2958_v11, %v2957_v15, %v5908_v33  ;;  %vm3319_vm14 = vcmp.lt.s32.totalorder %v3318_v60, 2  ;;  %vm3320_vm15 = vcmp.eq.s32.totalorder %v3318_v60, 0 }
  0x61   : > { %vm3323_vm0 = vcmp.eq.s32.totalorder %v3318_v60, 2  ;;  %v3103_v44 = vsel %vm5838_vm8, 0, %v3101_v9  ;;  %v2758_v28 = vadd.s32 %v5801_v35, %v5811_v46  ;;  %vm5279_vm1 = vcmp.lt.s32.totalorder %v5278_v8, 0 }
  0x62   : > { %v5911_v41 = vpop.eup %5460  ;;  %v2788_v20 = vsub.s32 4, %v5852_v39  ;;  %v2773_v47 = vsel %vm5279_vm1, 0, %v5278_v8  ;;  %v2965_v49 = vmul.u32 %v2958_v11, %v2949_v31  ;;  %v2968_v50 = vadd.s32 1, %v5903_v24 }
  0x63   : > { %v5463_v0 = vpop.eup %5462  ;;  %v2906_v27 = vxor.u32 2147483648, %v5911_v41  ;;  %v2774_v52 = vsub.s32 32, %v2773_v47  ;;  %v2775_v56 = vshll.u32 %v5863_v58, %v2773_v47  ;;  %v2778_v18 = vsub.s32 4294967266, %v2773_v47 }
  0x64   : > { %v2903_v45 = vxor.u32 2147483648, %v5463_v0  ;;  %vm3106_vm2 = vweird.f32 %v5633_v4  ;;  %v3524_v17 = vand.u32 3, %v3103_v44  ;;  %vm2967_vm3 = vc.u32 %v5909_v37, %v5902_v25 }
  0x65   : > { %v3325_v51 = vsel %vm3323_vm0, %v2906_v27, %v5463_v0  ;;  %v2776_v46 = vshrl.u32 %v2758_v28, %v2774_v52  ;;  %v2779_v61 = vadd.s32 127, %v2778_v18  ;;  %v2969_v9 = vsel %vm2967_vm3, %v2968_v50, %v5903_v24 }
  0x66   : > { %v3322_v57 = vsel %vm3320_vm15, %v5911_v41, %v2903_v45  ;;  %vm2704_vm4 = vcmp.lt.s32.totalorder %v5636_v5, 0  ;;  %v2970_v58 = vadd.s32 %v2969_v9, %v2965_v49  ;;  %v2900_v42 = vand.u32 3, %v2899_v23 }
  0x67   : > { %v3326_v35 = vsel %vm3319_vm14, %v3322_v57, %v3325_v51  ;;  %vm5933_vm5 = vcmp.le.f32.partialorder %v2702_v63, 0.7853982  ;;  %v2777_v60 = vor.u32 %v2776_v46, %v2775_v56  ;;  %v2780_v11 = vshll.u32 %v2779_v61, 23 }
  0x68   : > { %v3327_v30 = vsel %vm2898_vm13, nan, %v3326_v35  ;;  %v2789_v53 = vsel %vm2704_vm4, %v2788_v20, %v5852_v39  ;;  %v3107_v12 = vadd.s32 3, %v3103_v44  ;;  %vm3525_vm6 = vcmp.lt.s32.totalorder %v3524_v17, 2 }
  0x69   : > { %3637 = vmatprep.subr.mxu0 %v3327_v30  ;;  %vm3526_vm7 = vcmp.eq.s32.totalorder %v3524_v17, 0  ;;  %v2971_v43 = vadd.s32 536870912, %v2970_v58  ;;  %v5940_v6 = vpop.eup %5464  ;;  %vm3529_vm8 = vcmp.eq.s32.totalorder %v3524_v17, 2  ;;  %v2781_v13 = vor.u32 4788187, %v2780_v11 }
  0x6a   : > { %v2784_v62 = vcvt.s32.f32 %v2777_v60  ;;  %v1969_v63 = vand.u32 2139095040, %v5748_v26  ;;  %v5943_v16 = vpop.eup %5466  ;;  %v3114_v55 = vxor.u32 2147483648, %v5940_v6  ;;  %v2791_v29 = vsel %vm5933_vm5, 0, %v2789_v53 }
  0x6b   : > { %v2972_v19 = vshrl.u32 %v2971_v43, 30  ;;  %vm2902_vm9 = vcmp.eq.s32.totalorder %v2900_v42, 0  ;;  %v3111_v39 = vxor.u32 2147483648, %v5943_v16  ;;  %v2782_v7 = vand.u32 2147483647, %v2781_v13 }
  0x6c   : > { %vm2905_vm10 = vcmp.eq.s32.totalorder %v2900_v42, 2  ;;  %v1970_v21 = vshrl.u32 %v1969_v63, 23  ;;  %v3531_v22 = vsel %vm3529_vm8, %v3114_v55, %v5943_v16  ;;  %vm2901_vm11 = vcmp.lt.s32.totalorder %v2900_v42, 2 }
  0x6d   : > { %v2973_v23 = vshll.u32 %v2972_v19, 30  ;;  %v5950_v15 = vand.u32 3, %v3107_v12  ;;  %v3528_v24 = vsel %vm3526_vm7, %v5940_v6, %v3111_v39  ;;  %v2785_v8 = vmul.f32 %v2784_v62, %v2782_v7 }
  0x6e   : > { %v1966_v31 = vand.u32 2147483647, %v5748_v26  ;;  %v5248_v33 = vadd.s32 4294967169, %v1970_v21  ;;  %v3532_v44 = vsel %vm3525_vm6, %v3528_v24, %v3531_v22  ;;  %v2904_v20 = vsel %vm2902_vm9, %v5911_v41, %v2903_v45 }
  0x6f   : > { %v5958_v28 = vsub.s32 %v2970_v58, %v2973_v23  ;;  %v2907_v47 = vsel %vm2905_vm10, %v2906_v27, %v5463_v0  ;;  %v3533_v49 = vsel %vm3106_vm2, nan, %v3532_v44  ;;  %v2786_v50 = vxor.u32 2147483648, %v2785_v8 }
  0x70   : > { %v2996_v51 = vsub.s32 4, %v2972_v19  ;;  %3774 = vmatprep.subr.mxu1 %v3533_v49  ;;  %vm5965_vm12 = vcmp.le.f32.partialorder %v2910_v54, 0.7853982  ;;  %v2795_v18 = vadd.s32 3, %v2791_v29  ;;  %v5971_v57 = vmul.f32 4.0, %v5624_v1 }
  0x71   : > { %v2976_v56 = vsub.s32 0, %v5958_v28  ;;  %v2787_v41 = vsel %vm2704_vm4, %v2786_v50, %v2785_v8  ;;  %vm2912_vm14 = vcmp.lt.s32.totalorder %v5734_v14, 0  ;;  %v2908_v0 = vsel %vm2901_vm11, %v2904_v20, %v2907_v47 }
  0x72   : > { %v1976_v27 = vadd.s32 1, %v5248_v33  ;;  %v2790_v54 = vsel %vm5933_vm5, %v5636_v5, %v2787_v41  ;;  %vm3113_vm15 = vcmp.eq.s32.totalorder %v5950_v15, 2  ;;  %v5984_v1 = vand.u32 8388607, %v1966_v31 }
  0x73   : > { %v5285_v45 = vmin.u32 %v2976_v56, %v5958_v28  ;;  %5468 = vcosq.f32 %v2790_v54  ;;  %v5986_v17 = vand.u32 3, %v2791_v29  ;;  %v2997_v35 = vsel %vm2912_vm14, %v2996_v51, %v2972_v19 }
  0x74   : > { %vm1977_vm0 = vcmp.gt.s32.totalorder %v1976_v27, 0  ;;  %5470 = vsinq.f32 %v2790_v54  ;;  %v5990_v61 = vand.u32 3, %v2795_v18  ;;  %v2966_v30 = vadd.s32 %v5902_v25, %v5909_v37 }
  0x75   : > { %v2978_v46 = vclz %v5285_v45  ;;  %v1978_v9 = vsel %vm1977_vm0, %v1976_v27, 0  ;;  %v5996_v58 = vsel %vm2898_vm13, nan, %v2908_v0  ;;  %v5999_v42 = vsel %vm3113_vm15, %v3114_v55, %v5943_v16 }
  0x76   : > { %v6001_v59 = vshrl.u32 %v1978_v9, 5  ;;  %v6005_v11 = vsel %vm5965_vm12, 0, %v2997_v35  ;;  %v1974_v53 = vor.u32 8388608, %v5984_v1  ;;  %v1980_v12 = vand.u32 31, %v1978_v9 }
  0x77   : > { %v5286_v60 = vadd.s32 4294967294, %v2978_v46  ;;  %v2174_v3 = vand.u32 2147483647, %v5971_v57  ;;  %vm3220_vm4 = vcmp.eq.s32.totalorder %v5986_v17, 2  ;;  %vm2801_vm6 = vcmp.eq.s32.totalorder %v5990_v61, 2 }
  0x78   : > { %vm1998_vm1 = vcmp.lt.s32.totalorder %v6001_v59, 1  ;;  %vm2000_vm3 = vcmp.lt.s32.totalorder %v6001_v59, 3  ;;  %vm2001_vm13 = vcmp.lt.s32.totalorder %v6001_v59, 4  ;;  %v1981_v25 = vsub.s32 32, %v1980_v12 }
  0x79   : > { %vm5287_vm5 = vcmp.lt.s32.totalorder %v5286_v60, 0  ;;  %v1983_v37 = vshll.u32 %v5572_v32, %v1980_v12  ;;  %v1986_v43 = vshll.u32 %v5573_v34, %v1980_v12  ;;  %vm3217_vm7 = vcmp.eq.s32.totalorder %v5986_v17, 0 }
  0x7a   : > { %v2981_v13 = vsel %vm5287_vm5, 0, %v5286_v60  ;;  %vm2798_vm8 = vcmp.eq.s32.totalorder %v5990_v61, 0  ;;  %v1989_v62 = vshll.u32 %v5574_v36, %v1980_v12  ;;  %v1992_v63 = vshll.u32 %v5575_v38, %v1980_v12 }
  0x7b   : > { %v1995_v55 = vshll.u32 %v5576_v40, %v1980_v12  ;;  %vm3216_vm9 = vcmp.lt.s32.totalorder %v5986_v17, 2  ;;  %v2982_v29 = vsub.s32 32, %v2981_v13  ;;  %v2983_v19 = vshll.u32 %v5958_v28, %v2981_v13 }
  0x7c   : > { %v2986_v7 = vsub.s32 4294967266, %v2981_v13  ;;  %vm2797_vm10 = vcmp.lt.s32.totalorder %v5990_v61, 2  ;;  %v1982_v21 = vshrl.u32 %v5572_v32, %v1981_v25  ;;  %vm2794_vm11 = vweird.f32 %v5636_v5 }
  0x7d   : > { %vm3110_vm15 = vcmp.eq.s32.totalorder %v5950_v15, 0  ;;  %v1984_v22 = vshrl.u32 %v5573_v34, %v1981_v25  ;;  %v1987_v23 = vshrl.u32 %v5574_v36, %v1981_v25  ;;  %v1990_v24 = vshrl.u32 %v5575_v38, %v1981_v25 }
  0x7e   : > { %v1993_v8 = vshrl.u32 %v5576_v40, %v1981_v25  ;;  %v2984_v33 = vshrl.u32 %v2966_v30, %v2982_v29  ;;  %v2987_v44 = vadd.s32 127, %v2986_v7  ;;  %v1996_v28 = vshrl.u32 %v5577_v48, %v1981_v25 }
  0x7f   : > { %v2177_v20 = vand.u32 2139095040, %v5971_v57  ;;  %v1985_v47 = vor.u32 %v1984_v22, %v1983_v37  ;;  %v1988_v49 = vor.u32 %v1987_v23, %v1986_v43  ;;  %v1991_v50 = vor.u32 %v1990_v24, %v1989_v62 }
  0x80   : > { %v1994_v51 = vor.u32 %v1993_v8, %v1992_v63  ;;  %v2985_v56 = vor.u32 %v2984_v33, %v2983_v19  ;;  %v2988_v18 = vshll.u32 %v2987_v44, 23  ;;  %vm3109_vm0 = vcmp.lt.s32.totalorder %v5950_v15, 2  ;;  %v5469_v1 = vpop.eup %5468 }
  0x81   : > { %v1997_v41 = vor.u32 %v1996_v28, %v1995_v55  ;;  %vm1999_vm5 = vcmp.lt.s32.totalorder %v6001_v59, 2  ;;  %v2003_v0 = vsel %vm2001_vm13, %v1991_v50, 2102212464  ;;  %v2006_v27 = vsel %vm1998_vm1, %v1985_v47, %v1988_v49  ;;  %v5471_v60 = vpop.eup %5470 }
  0x82   : > { %v2007_v54 = vsel %vm2001_vm13, %v1994_v51, 920167782  ;;  %v2178_v45 = vshrl.u32 %v2177_v20, 23  ;;  %v2989_v35 = vor.u32 4788187, %v2988_v18  ;;  %v2992_v46 = vcvt.s32.f32 %v2985_v56 }
  0x83   : > { %v2008_v9 = vsel %vm2000_vm3, %v1991_v50, %v2007_v54  ;;  %v2014_v30 = vshll.u32 %v1974_v53, 8  ;;  %v2802_v12 = vxor.u32 2147483648, %v5469_v1  ;;  %v2002_v25 = vsel %vm1998_vm1, %v1982_v21, %v1985_v47 }
  0x84   : > { %v2004_v37 = vsel %vm2000_vm3, %v1988_v49, %v2003_v0  ;;  %v2010_v43 = vsel %vm1998_vm1, %v1988_v49, %v1991_v50  ;;  %v2799_v13 = vxor.u32 2147483648, %v5471_v60  ;;  %v2990_v62 = vand.u32 2147483647, %v2989_v35 }
  0x85   : > { %v2009_v63 = vsel %vm1999_vm5, %v2006_v27, %v2008_v9  ;;  %v2011_v55 = vsel %vm2001_vm13, %v1997_v41, 1326507024  ;;  %v3222_v53 = vsel %vm3220_vm4, %v2802_v12, %v5471_v60  ;;  %v2803_v29 = vsel %vm2801_vm6, %v2802_v12, %v5471_v60 }
  0x86   : > { %v2012_v19 = vsel %vm2000_vm3, %v1994_v51, %v2011_v55  ;;  %v5256_v7 = vadd.s32 4294967169, %v2178_v45  ;;  %v3219_v21 = vsel %vm3217_vm7, %v5469_v1, %v2799_v13  ;;  %v2993_v22 = vmul.f32 %v2992_v46, %v2990_v62 }
  0x87   : > { %v2800_v23 = vsel %vm2798_vm8, %v5469_v1, %v2799_v13  ;;  %v2013_v24 = vsel %vm1999_vm5, %v2010_v43, %v2012_v19  ;;  %v3223_v8 = vsel %vm3216_vm9, %v3219_v21, %v3222_v53  ;;  %v3112_v49 = vsel %vm3110_vm15, %v5940_v6, %v3111_v39 }
  0x88   : > { %v2804_v33 = vsel %vm2797_vm10, %v2800_v23, %v2803_v29  ;;  %v6069_v44 = vmul.u32.u64.low %v2014_v30, %v2013_v24  ;;  %v6070_v28 = vmul.u32.u64.high %v2014_v30, %v2013_v24, %v6069_v44  ;;  %v3224_v20 = vsel %vm2794_vm11, nan, %v3223_v8 }
  0x89   : > { %v2994_v47 = vxor.u32 2147483648, %v2993_v22  ;;  %v2805_v17 = vsel %vm2794_vm11, nan, %v2804_v33  ;;  %3638 = vmatpush1.msra.mxu0 %v3224_v20  ;;  %v2005_v61 = vsel %vm1999_vm5, %v2002_v25, %v2004_v37  ;;  %v2184_v56 = vadd.s32 1, %v5256_v7 }
  0x8a   : > { %v6083_v50 = vmul.u32.u64.low %v2014_v30, %v2009_v63  ;;  %v6084_v51 = vmul.u32.u64.high %v2014_v30, %v2009_v63, %v6083_v50  ;;  %3639 = vmatprep.subr.mxu0 %v5996_v58  ;;  %v3003_v16 = vadd.s32 3, %v6005_v11  ;;  %v2181_v5 = vand.u32 8388607, %v2174_v3 }
  0x8b   : > { %v2995_v18 = vsel %vm2912_vm14, %v2994_v47, %v2993_v22  ;;  %v3116_v39 = vsel %vm3109_vm0, %v3112_v49, %v5999_v42  ;;  %3640 = vmatpush1.msra.mxu0 %v2805_v17  ;;  %vm2185_vm1 = vcmp.gt.s32.totalorder %v2184_v56, 0  ;;  %v6100_v59 = vmul.f32 4.0, %v5627_v2 }
  0x8c   : > { %v2998_v6 = vsel %vm5965_vm12, %v5734_v14, %v2995_v18  ;;  %v2021_v58 = vmul.u32 %v2014_v30, %v2005_v61  ;;  %vm2023_vm14 = vc.u32 %v6070_v28, %v6083_v50  ;;  %v2186_v41 = vsel %vm2185_vm1, %v2184_v56, 0 }
  0x8d   : > { %5472 = vcosq.f32 %v2998_v6  ;;  %v6105_v0 = vand.u32 3, %v6005_v11  ;;  %v2024_v52 = vadd.s32 1, %v6084_v51  ;;  %v2188_v27 = vand.u32 31, %v2186_v41 }
  0x8e   : > { %5474 = vsinq.f32 %v2998_v6  ;;  %v6110_v15 = vsel %vm3106_vm2, nan, %v3116_v39  ;;  %v6112_v42 = vand.u32 3, %v3003_v16  ;;  %v2182_v2 = vor.u32 8388608, %v2181_v5 }
  0x8f   : > { %v2187_v54 = vshrl.u32 %v2186_v41, 5  ;;  %v2025_v45 = vsel %vm2023_vm14, %v2024_v52, %v6084_v51  ;;  %v2189_v1 = vsub.s32 32, %v2188_v27  ;;  %v2191_v35 = vshll.u32 %v5572_v32, %v2188_v27 }
  0x90   : > { %v2194_v46 = vshll.u32 %v5573_v34, %v2188_v27  ;;  %v2026_v11 = vadd.s32 %v2025_v45, %v2021_v58  ;;  %v2197_v9 = vshll.u32 %v5574_v36, %v2188_v27  ;;  %v2200_v30 = vshll.u32 %v5575_v38, %v2188_v27 }
  0x91   : > { %v2203_v4 = vshll.u32 %v5576_v40, %v2188_v27  ;;  %vm3426_vm2 = vcmp.eq.s32.totalorder %v6105_v0, 2  ;;  %v2190_v60 = vshrl.u32 %v5572_v32, %v2189_v1  ;;  %v2192_v12 = vshrl.u32 %v5573_v34, %v2189_v1 }
  0x92   : > { %v2195_v25 = vshrl.u32 %v5574_v36, %v2189_v1  ;;  %v2198_v37 = vshrl.u32 %v5575_v38, %v2189_v1  ;;  %vm3423_vm12 = vcmp.eq.s32.totalorder %v6105_v0, 0  ;;  %v2027_v43 = vadd.s32 536870912, %v2026_v11 }
  0x93   : > { %v2201_v13 = vshrl.u32 %v5576_v40, %v2189_v1  ;;  %v2204_v62 = vshrl.u32 %v5577_v48, %v2189_v1  ;;  %vm2206_vm3 = vcmp.lt.s32.totalorder %v2187_v54, 1  ;;  %vm3422_vm13 = vcmp.lt.s32.totalorder %v6105_v0, 2 }
  0x94   : > { %vm3005_vm4 = vcmp.lt.s32.totalorder %v6112_v42, 2  ;;  %v2193_v63 = vor.u32 %v2192_v12, %v2191_v35  ;;  %v2196_v55 = vor.u32 %v2195_v25, %v2194_v46  ;;  %v2199_v53 = vor.u32 %v2198_v37, %v2197_v9 }
  0x95   : > { %vm3002_vm6 = vweird.f32 %v5734_v14  ;;  %v6131_v29 = vshrl.u32 %v2027_v43, 30  ;;  %v2202_v19 = vor.u32 %v2201_v13, %v2200_v30  ;;  %v2205_v7 = vor.u32 %v2204_v62, %v2203_v4 }
  0x96   : > { %vm2208_vm7 = vcmp.lt.s32.totalorder %v2187_v54, 3  ;;  %vm2207_vm8 = vcmp.lt.s32.totalorder %v2187_v54, 2  ;;  %vm2209_vm9 = vcmp.lt.s32.totalorder %v2187_v54, 4  ;;  %v2214_v21 = vsel %vm2206_vm3, %v2193_v63, %v2196_v55 }
  0x97   : > { %v2222_v22 = vshll.u32 %v2182_v2, 8  ;;  %v2029_v23 = vshll.u32 %v6131_v29, 30  ;;  %v2210_v24 = vsel %vm2206_vm3, %v2190_v60, %v2193_v63  ;;  %v2211_v8 = vsel %vm2209_vm9, %v2199_v53, 2102212464 }
  0x98   : > { %v2215_v33 = vsel %vm2209_vm9, %v2202_v19, 920167782  ;;  %v2212_v44 = vsel %vm2208_vm7, %v2196_v55, %v2211_v8  ;;  %v2218_v47 = vsel %vm2206_vm3, %v2196_v55, %v2199_v53  ;;  %v2219_v49 = vsel %vm2209_vm9, %v2205_v7, 1326507024 }
  0x99   : > { %v2216_v20 = vsel %vm2208_vm7, %v2199_v53, %v2215_v33  ;;  %vm3006_vm10 = vcmp.eq.s32.totalorder %v6112_v42, 0  ;;  %v6140_v17 = vsub.s32 %v2026_v11, %v2029_v23  ;;  %v1865_v51 = vand.u32 2139095040, %v6100_v59 }
  0x9a   : > { %v2217_v61 = vsel %vm2207_vm8, %v2214_v21, %v2216_v20  ;;  %v5473_v56 = vpop.eup %5472  ;;  %vm3009_vm11 = vcmp.eq.s32.totalorder %v6112_v42, 2  ;;  %v2220_v18 = vsel %vm2208_vm7, %v2202_v19, %v2219_v49  ;;  %v2213_v41 = vsel %vm2207_vm8, %v2210_v24, %v2212_v44 }
  0x9b   : > { %v6146_v16 = vmul.u32.u64.low %v2222_v22, %v2217_v61  ;;  %v6147_v5 = vmul.u32.u64.high %v2222_v22, %v2217_v61, %v6146_v16  ;;  %v5475_v6 = vpop.eup %5474  ;;  %v3010_v39 = vxor.u32 2147483648, %v5473_v56  ;;  %v2032_v58 = vsub.s32 0, %v6140_v17 }
  0x9c   : > { %v2221_v52 = vsel %vm2207_vm8, %v2218_v47, %v2220_v18  ;;  %v3007_v27 = vxor.u32 2147483648, %v5475_v6  ;;  %v1862_v1 = vand.u32 2147483647, %v6100_v59  ;;  %v1866_v9 = vshrl.u32 %v1865_v51, 23 }
  0x9d   : > { %v6152_v2 = vmul.u32.u64.low %v2222_v22, %v2221_v52  ;;  %v6153_v45 = vmul.u32.u64.high %v2222_v22, %v2221_v52, %v6152_v2  ;;  %v3428_v35 = vsel %vm3426_vm2, %v3010_v39, %v5475_v6  ;;  %v3011_v46 = vsel %vm3009_vm11, %v3010_v39, %v5475_v6 }
  0x9e   : > { %v5249_v11 = vmin.u32 %v2032_v58, %v6140_v17  ;;  %v3425_v30 = vsel %vm3423_vm12, %v5473_v56, %v3007_v27  ;;  %v3008_v54 = vsel %vm3006_vm10, %v5473_v56, %v3007_v27  ;;  %v2229_v4 = vmul.u32 %v2222_v22, %v2213_v41 }
  0x9f   : > { %v6164_v60 = vmul.f32 4.0, %v5724_v10  ;;  %v3429_v12 = vsel %vm3422_vm13, %v3425_v30, %v3428_v35  ;;  %v3012_v25 = vsel %vm3005_vm4, %v3008_v54, %v3011_v46  ;;  %v2232_v43 = vadd.s32 1, %v6147_v5 }
  0xa0   : > { %v2034_v37 = vclz %v5249_v11  ;;  %v3430_v13 = vsel %vm3002_vm6, nan, %v3429_v12  ;;  %v3013_v62 = vsel %vm3002_vm6, nan, %v3012_v25  ;;  %v2052_v63 = vsub.s32 4, %v6131_v29 }
  0xa1   : > { %vm2231_vm15 = vc.u32 %v6153_v45, %v6146_v16  ;;  %3775 = vmatpush1.msra.mxu1 %v3430_v13  ;;  %v5244_v55 = vadd.s32 4294967169, %v1866_v9  ;;  %v2073_v53 = vand.u32 2139095040, %v6164_v60  ;;  %vm1968_vm0 = vcmp.lt.s32.totalorder %v5748_v26, 0 }
  0xa2   : > { %v5250_v10 = vadd.s32 4294967294, %v2034_v37  ;;  %v2233_v0 = vsel %vm2231_vm15, %v2232_v43, %v6147_v5  ;;  %3776 = vmatprep.subr.mxu1 %v6110_v15  ;;  %v2022_v14 = vadd.s32 %v6083_v50, %v6070_v28  ;;  %v2053_v21 = vsel %vm1968_vm0, %v2052_v63, %v6131_v29 }
  0xa3   : > { %v2234_v42 = vadd.s32 %v2233_v0, %v2229_v4  ;;  %3777 = vmatpush1.msra.mxu1 %v3013_v62  ;;  %v1872_v19 = vadd.s32 1, %v5244_v55  ;;  %v1869_v15 = vand.u32 8388607, %v1862_v1  ;;  %v2074_v28 = vshrl.u32 %v2073_v53, 23 }
  0xa4   : > { %vm5251_vm5 = vcmp.lt.s32.totalorder %v5250_v10, 0  ;;  %vm6193_vm14 = vcmp.le.f32.partialorder %v1966_v31, 0.7853982  ;;  %v2070_v39 = vand.u32 2147483647, %v6164_v60  ;;  %vm2176_vm6 = vcmp.lt.s32.totalorder %v5971_v57, 0 }
  0xa5   : > { %v2037_v7 = vsel %vm5251_vm5, 0, %v5250_v10  ;;  %v2235_v22 = vadd.s32 536870912, %v2234_v42  ;;  %vm1873_vm1 = vcmp.gt.s32.totalorder %v1872_v19, 0  ;;  %v6199_v49 = vsel %vm6193_vm14, 0, %v2053_v21 }
  0xa6   : > { %v2038_v23 = vsub.s32 32, %v2037_v7  ;;  %v2039_v24 = vshll.u32 %v6140_v17, %v2037_v7  ;;  %v2042_v8 = vsub.s32 4294967266, %v2037_v7  ;;  %v1874_v44 = vsel %vm1873_vm1, %v1872_v19, 0 }
  0xa7   : > { %v6189_v33 = vshrl.u32 %v2235_v22, 30  ;;  %v1876_v47 = vand.u32 31, %v1874_v44  ;;  %v2230_v17 = vadd.s32 %v6146_v16, %v6153_v45  ;;  %v1870_v18 = vor.u32 8388608, %v1869_v15 }
  0xa8   : > { %v2040_v29 = vshrl.u32 %v2022_v14, %v2038_v23  ;;  %v2043_v20 = vadd.s32 127, %v2042_v8  ;;  %v5252_v58 = vadd.s32 4294967169, %v2074_v28  ;;  %v1875_v45 = vshrl.u32 %v1874_v44, 5 }
  0xa9   : > { %v2237_v61 = vshll.u32 %v6189_v33, 30  ;;  %v1877_v5 = vsub.s32 32, %v1876_v47  ;;  %v1879_v31 = vshll.u32 %v5572_v32, %v1876_v47  ;;  %v1882_v27 = vshll.u32 %v5573_v34, %v1876_v47 }
  0xaa   : > { %v2041_v51 = vor.u32 %v2040_v29, %v2039_v24  ;;  %v2044_v56 = vshll.u32 %v2043_v20, 23  ;;  %v1885_v2 = vshll.u32 %v5574_v36, %v1876_v47  ;;  %v1888_v30 = vshll.u32 %v5575_v38, %v1876_v47 }
  0xab   : > { %v6203_v6 = vsub.s32 %v2234_v42, %v2237_v61  ;;  %v1880_v35 = vshrl.u32 %v5573_v34, %v1877_v5  ;;  %v1883_v46 = vshrl.u32 %v5574_v36, %v1877_v5  ;;  %v1886_v9 = vshrl.u32 %v5575_v38, %v1877_v5 }
  0xac   : > { %v2045_v41 = vor.u32 4788187, %v2044_v56  ;;  %v2048_v52 = vcvt.s32.f32 %v2041_v51  ;;  %v1889_v54 = vshrl.u32 %v5576_v40, %v1877_v5  ;;  %v2260_v12 = vsub.s32 4, %v6189_v33 }
  0xad   : > { %v2240_v16 = vsub.s32 0, %v6203_v6  ;;  %v1878_v25 = vshrl.u32 %v5572_v32, %v1877_v5  ;;  %v6218_v37 = vshll.u32 %v1870_v18, 8  ;;  %v1881_v13 = vor.u32 %v1880_v35, %v1879_v31 }
  0xae   : > { %v2046_v11 = vand.u32 2147483647, %v2045_v41  ;;  %v1884_v62 = vor.u32 %v1883_v46, %v1882_v27  ;;  %v1887_v63 = vor.u32 %v1886_v9, %v1885_v2  ;;  %v1890_v0 = vor.u32 %v1889_v54, %v1888_v30 }
  0xaf   : > { %v5257_v4 = vmin.u32 %v2240_v16, %v6203_v6  ;;  %v1891_v55 = vshll.u32 %v5576_v40, %v1876_v47  ;;  %v1892_v42 = vshrl.u32 %v5577_v48, %v1877_v5  ;;  %vm1894_vm2 = vcmp.lt.s32.totalorder %v1875_v45, 1 }
  0xb0   : > { %v2049_v43 = vmul.f32 %v2048_v52, %v2046_v11  ;;  %vm1896_vm12 = vcmp.lt.s32.totalorder %v1875_v45, 3  ;;  %v2080_v14 = vadd.s32 1, %v5252_v58  ;;  %vm1895_vm3 = vcmp.lt.s32.totalorder %v1875_v45, 2 }
  0xb1   : > { %v2242_v10 = vclz %v5257_v4  ;;  %v1893_v7 = vor.u32 %v1892_v42, %v1891_v55  ;;  %vm1897_vm13 = vcmp.lt.s32.totalorder %v1875_v45, 4  ;;  %v1902_v15 = vsel %vm1894_vm2, %v1881_v13, %v1884_v62 }
  0xb2   : > { %v2050_v53 = vxor.u32 2147483648, %v2049_v43  ;;  %v1899_v22 = vsel %vm1897_vm13, %v1887_v63, 2102212464  ;;  %v1903_v23 = vsel %vm1897_vm13, %v1890_v0, 920167782  ;;  %v1898_v8 = vsel %vm1894_vm2, %v1878_v25, %v1881_v13 }
  0xb3   : > { %v5258_v19 = vadd.s32 4294967294, %v2242_v10  ;;  %v1904_v44 = vsel %vm1896_vm12, %v1887_v63, %v1903_v23  ;;  %v1900_v29 = vsel %vm1896_vm12, %v1884_v62, %v1899_v22  ;;  %v1906_v56 = vsel %vm1894_vm2, %v1884_v62, %v1887_v63 }
  0xb4   : > { %v2051_v21 = vsel %vm1968_vm0, %v2050_v53, %v2049_v43  ;;  %v1905_v20 = vsel %vm1895_vm3, %v1902_v15, %v1904_v44  ;;  %v1907_v50 = vsel %vm1897_vm13, %v1893_v7, 1326507024  ;;  %v2478_v52 = vand.u32 3, %v6199_v49 }
  0xb5   : > { %v2054_v24 = vsel %vm6193_vm14, %v5748_v26, %v2051_v21  ;;  %vm5259_vm4 = vcmp.lt.s32.totalorder %v5258_v19, 0  ;;  %v6238_v18 = vmul.u32.u64.low %v6218_v37, %v1905_v20  ;;  %v6239_v5 = vmul.u32.u64.high %v6218_v37, %v1905_v20, %v6238_v18 }
  0xb6   : > { %5476 = vcosq.f32 %v2054_v24  ;;  %v2245_v28 = vsel %vm5259_vm4, 0, %v5258_v19  ;;  %v1908_v41 = vsel %vm1896_vm12, %v1890_v0, %v1907_v50  ;;  %vm2081_vm7 = vcmp.gt.s32.totalorder %v2080_v14, 0 }
  0xb7   : > { %5478 = vsinq.f32 %v2054_v24  ;;  %v2246_v47 = vsub.s32 32, %v2245_v28  ;;  %v2247_v61 = vshll.u32 %v6203_v6, %v2245_v28  ;;  %v2250_v51 = vsub.s32 4294967266, %v2245_v28 }
  0xb8   : > { %v1901_v6 = vsel %vm1895_vm3, %v1898_v8, %v1900_v29  ;;  %v1909_v27 = vsel %vm1895_vm3, %v1906_v56, %v1908_v41  ;;  %v1920_v11 = vadd.s32 1, %v6239_v5  ;;  %v2077_v9 = vand.u32 8388607, %v2070_v39 }
  0xb9   : > { %v2248_v31 = vshrl.u32 %v2230_v17, %v2246_v47  ;;  %v2251_v58 = vadd.s32 127, %v2250_v51  ;;  %v6248_v35 = vmul.u32.u64.low %v6218_v37, %v1909_v27  ;;  %v6249_v46 = vmul.u32.u64.high %v6218_v37, %v1909_v27, %v6248_v35 }
  0xba   : > { %v2261_v17 = vsel %vm2176_vm6, %v2260_v12, %v6189_v33  ;;  %v2082_v30 = vsel %vm2081_vm7, %v2080_v14, 0  ;;  %v1917_v4 = vmul.u32 %v6218_v37, %v1901_v6  ;;  %vm2058_vm8 = vweird.f32 %v5748_v26 }
  0xbb   : > { %v2249_v2 = vor.u32 %v2248_v31, %v2247_v61  ;;  %v2252_v16 = vshll.u32 %v2251_v58, 23  ;;  %v2084_v25 = vand.u32 31, %v2082_v30  ;;  %vm2479_vm9 = vcmp.lt.s32.totalorder %v2478_v52, 2 }
  0xbc   : > { %vm2480_vm10 = vcmp.eq.s32.totalorder %v2478_v52, 0  ;;  %vm6261_vm11 = vcmp.le.f32.partialorder %v2174_v3, 0.7853982  ;;  %vm2483_vm15 = vcmp.eq.s32.totalorder %v2478_v52, 2  ;;  %vm1919_vm0 = vc.u32 %v6249_v46, %v6238_v18 }
  0xbd   : > { %v2253_v54 = vor.u32 4788187, %v2252_v16  ;;  %v2256_v45 = vcvt.s32.f32 %v2249_v2  ;;  %v2085_v12 = vsub.s32 32, %v2084_v25  ;;  %v2263_v37 = vsel %vm6261_vm11, 0, %v2261_v17 }
  0xbe   : > { %v1921_v13 = vsel %vm1919_vm0, %v1920_v11, %v6239_v5  ;;  %v2078_v62 = vor.u32 8388608, %v2077_v9  ;;  %v2087_v63 = vshll.u32 %v5572_v32, %v2084_v25  ;;  %v2083_v3 = vshrl.u32 %v2082_v30, 5 }
  0xbf   : > { %v2254_v33 = vand.u32 2147483647, %v2253_v54  ;;  %v1922_v0 = vadd.s32 %v1921_v13, %v1917_v4  ;;  %v2088_v55 = vshrl.u32 %v5573_v34, %v2085_v12  ;;  %v2090_v42 = vshll.u32 %v5573_v34, %v2084_v25 }
  0xc0   : > { %v2091_v53 = vshrl.u32 %v5574_v36, %v2085_v12  ;;  %v2093_v14 = vshll.u32 %v5574_v36, %v2084_v25  ;;  %v2094_v19 = vshrl.u32 %v5575_v38, %v2085_v12  ;;  %v2096_v15 = vshll.u32 %v5575_v38, %v2084_v25 }
  0xc1   : > { %v2257_v10 = vmul.f32 %v2256_v45, %v2254_v33  ;;  %v1923_v22 = vadd.s32 536870912, %v1922_v0  ;;  %v2097_v23 = vshrl.u32 %v5576_v40, %v2085_v12  ;;  %v2086_v44 = vshrl.u32 %v5572_v32, %v2085_v12 }
  0xc2   : > { %v2089_v28 = vor.u32 %v2088_v55, %v2087_v63  ;;  %v2099_v29 = vshll.u32 %v5576_v40, %v2084_v25  ;;  %v2100_v51 = vshrl.u32 %v5577_v48, %v2085_v12  ;;  %v2092_v5 = vor.u32 %v2091_v53, %v2090_v42 }
  0xc3   : > { %v6276_v7 = vpop.eup %5476  ;;  %v2258_v21 = vxor.u32 2147483648, %v2257_v10  ;;  %v6288_v61 = vshrl.u32 %v1923_v22, 30  ;;  %v2095_v31 = vor.u32 %v2094_v19, %v2093_v14  ;;  %v2098_v6 = vor.u32 %v2097_v23, %v2096_v15 }
  0xc4   : > { %v6280_v24 = vpop.eup %5478  ;;  %v2066_v8 = vxor.u32 2147483648, %v6276_v7  ;;  %v2101_v2 = vor.u32 %v2100_v51, %v2099_v29  ;;  %vm2102_vm5 = vcmp.lt.s32.totalorder %v2083_v3, 1  ;;  %vm2104_vm1 = vcmp.lt.s32.totalorder %v2083_v3, 3 }
  0xc5   : > { %v2063_v20 = vxor.u32 2147483648, %v6280_v24  ;;  %v2259_v47 = vsel %vm2176_vm6, %v2258_v21, %v2257_v10  ;;  %v1925_v41 = vshll.u32 %v6288_v61, 30  ;;  %vm2105_vm14 = vcmp.lt.s32.totalorder %v2083_v3, 4 }
  0xc6   : > { %v2485_v56 = vsel %vm2483_vm15, %v2066_v8, %v6280_v24  ;;  %v2262_v50 = vsel %vm6261_vm11, %v5971_v57, %v2259_v47  ;;  %v2107_v17 = vsel %vm2105_vm14, %v2095_v31, 2102212464  ;;  %v2118_v11 = vshll.u32 %v2078_v62, 8 }
  0xc7   : > { %v2482_v58 = vsel %vm2480_vm10, %v6276_v7, %v2063_v20  ;;  %5480 = vcosq.f32 %v2262_v50  ;;  %v6306_v35 = vsub.s32 %v1922_v0, %v1925_v41  ;;  %v2059_v9 = vadd.s32 3, %v6199_v49 }
  0xc8   : > { %v2486_v27 = vsel %vm2479_vm9, %v2482_v58, %v2485_v56  ;;  %5482 = vsinq.f32 %v2262_v50  ;;  %vm2103_vm2 = vcmp.lt.s32.totalorder %v2083_v3, 2  ;;  %v2110_v52 = vsel %vm2102_vm5, %v2089_v28, %v2092_v5 }
  0xc9   : > { %v2487_v16 = vsel %vm2058_vm8, nan, %v2486_v27  ;;  %v1928_v30 = vsub.s32 0, %v6306_v35  ;;  %v2111_v54 = vsel %vm2105_vm14, %v2098_v6, 920167782  ;;  %v2114_v4 = vsel %vm2102_vm5, %v2092_v5, %v2095_v31 }
  0xca   : > { %3641 = vmatprep.subr.mxu0 %v2487_v16  ;;  %v2112_v45 = vsel %vm2104_vm1, %v2095_v31, %v2111_v54  ;;  %v2115_v25 = vsel %vm2105_vm14, %v2101_v2, 1326507024  ;;  %v2267_v43 = vadd.s32 3, %v2263_v37  ;;  %v2106_v12 = vsel %vm2102_vm5, %v2086_v44, %v2089_v28 }
  0xcb   : > { %v5245_v33 = vmin.u32 %v1928_v30, %v6306_v35  ;;  %v2108_v13 = vsel %vm2104_vm1, %v2092_v5, %v2107_v17  ;;  %v2684_v62 = vand.u32 3, %v2263_v37  ;;  %v2113_v49 = vsel %vm2103_vm2, %v2110_v52, %v2112_v45 }
  0xcc   : > { %v2116_v63 = vsel %vm2104_vm1, %v2098_v6, %v2115_v25  ;;  %v6318_v10 = vand.u32 3, %v2059_v9  ;;  %v6321_v42 = vmul.u32.u64.low %v2118_v11, %v2113_v49  ;;  %v6322_v53 = vmul.u32.u64.high %v2118_v11, %v2113_v49, %v6321_v42  ;;  %v6360_v25 = vld [vmem:[%s5618_s18 + $0x18] sm:$0xff] }
  0xcd   : > { %v1930_v0 = vclz %v5245_v33  ;;  %v2117_v55 = vsel %vm2103_vm2, %v2114_v4, %v2116_v63  ;;  %v2109_v14 = vsel %vm2103_vm2, %v2106_v12, %v2108_v13  ;;  %v2268_v22 = vand.u32 3, %v2267_v43 }
  0xce   : > { %v6326_v19 = vmul.u32.u64.low %v2118_v11, %v2117_v55  ;;  %v6327_v21 = vmul.u32.u64.high %v2118_v11, %v2117_v55, %v6326_v19  ;;  %vm2266_vm12 = vweird.f32 %v5971_v57  ;;  %vm2685_vm3 = vcmp.lt.s32.totalorder %v2684_v62, 2 }
  0xcf   : > { %v5246_v37 = vadd.s32 4294967294, %v1930_v0  ;;  %vm2686_vm13 = vcmp.eq.s32.totalorder %v2684_v62, 0  ;;  %vm2689_vm4 = vcmp.eq.s32.totalorder %v2684_v62, 2  ;;  %vm1864_vm6 = vcmp.lt.s32.totalorder %v6100_v59, 0 }
  0xd0   : > { %v1918_v15 = vadd.s32 %v6238_v18, %v6249_v46  ;;  %v2125_v23 = vmul.u32 %v2118_v11, %v2109_v14  ;;  %v2128_v3 = vadd.s32 1, %v6322_v53  ;;  %vm2062_vm9 = vcmp.eq.s32.totalorder %v6318_v10, 0 }
  0xd1   : > { %vm5247_vm7 = vcmp.lt.s32.totalorder %v5246_v37, 0  ;;  %vm2127_vm10 = vc.u32 %v6327_v21, %v6321_v42  ;;  %vm2270_vm11 = vcmp.eq.s32.totalorder %v2268_v22, 0  ;;  %vm2273_vm15 = vcmp.eq.s32.totalorder %v2268_v22, 2 }
  0xd2   : > { %v1933_v28 = vsel %vm5247_vm7, 0, %v5246_v37  ;;  %v1948_v50 = vsub.s32 4, %v6288_v61  ;;  %v2129_v5 = vsel %vm2127_vm10, %v2128_v3, %v6322_v53  ;;  %vm2269_vm0 = vcmp.lt.s32.totalorder %v2268_v22, 2 }
  0xd3   : > { %v1934_v51 = vsub.s32 32, %v1933_v28  ;;  %v1935_v56 = vshll.u32 %v6306_v35, %v1933_v28  ;;  %v1938_v18 = vsub.s32 4294967266, %v1933_v28  ;;  %v2130_v6 = vadd.s32 %v2129_v5, %v2125_v23  ;;  %v6345_v35 = vld [vmem:[%s5618_s18 + $0x8] sm:$0xff] }
  0xd4   : > { %v5481_v44 = vpop.eup %5480  ;;  %v6348_v17 = vmul.f32 2.0, %v6345_v35  ;;  %v1949_v45 = vsel %vm1864_vm6, %v1948_v50, %v6288_v61  ;;  %v6363_v43 = vmul.f32 2.0, %v6360_v25  ;;  %vm2065_vm5 = vcmp.eq.s32.totalorder %v6318_v10, 2 }
  0xd5   : > { %v5483_v29 = vpop.eup %5482  ;;  %v2274_v47 = vxor.u32 2147483648, %v5481_v44  ;;  %v1936_v58 = vshrl.u32 %v1918_v15, %v1934_v51  ;;  %v1939_v41 = vadd.s32 127, %v1938_v18  ;;  %v2131_v52 = vadd.s32 536870912, %v2130_v6 }
  0xd6   : > { %v2271_v46 = vxor.u32 2147483648, %v5483_v29  ;;  %v1126_v62 = vand.u32 2147483647, %v6348_v17  ;;  %v1129_v49 = vand.u32 2139095040, %v6348_v17  ;;  %vm6370_vm1 = vcmp.le.f32.partialorder %v1862_v1, 0.7853982 }
  0xd7   : > { %v2691_v31 = vsel %vm2689_vm4, %v2274_v47, %v5483_v29  ;;  %v2275_v16 = vsel %vm2273_vm15, %v2274_v47, %v5483_v29  ;;  %v1937_v9 = vor.u32 %v1936_v58, %v1935_v56  ;;  %v1940_v30 = vshll.u32 %v1939_v41, 23 }
  0xd8   : > { %v2688_v27 = vsel %vm2686_vm13, %v5481_v44, %v2271_v46  ;;  %v2272_v2 = vsel %vm2270_vm11, %v5481_v44, %v2271_v46  ;;  %v2132_v13 = vshrl.u32 %v2131_v52, 30  ;;  %vm2061_vm14 = vcmp.lt.s32.totalorder %v6318_v10, 2 }
  0xd9   : > { %v2692_v11 = vsel %vm2685_vm3, %v2688_v27, %v2691_v31  ;;  %v6357_v4 = vsel %vm2269_vm0, %v2272_v2, %v2275_v16  ;;  %v1941_v33 = vor.u32 4788187, %v1940_v30  ;;  %v1944_v12 = vcvt.s32.f32 %v1937_v9 }
  0xda   : > { %v2693_v54 = vsel %vm2266_vm12, nan, %v2692_v11  ;;  %v2133_v0 = vshll.u32 %v2132_v13, 30  ;;  %v1951_v55 = vsel %vm6370_vm1, 0, %v1949_v45  ;;  %v2064_v53 = vsel %vm2062_vm9, %v6276_v7, %v2063_v20 }
  0xdb   : > { %3778 = vmatprep.subr.mxu1 %v2693_v54  ;;  %v1942_v63 = vand.u32 2147483647, %v1941_v33  ;;  %v1130_v14 = vshrl.u32 %v1129_v49, 23  ;;  %v1337_v19 = vand.u32 2139095040, %v6363_v43  ;;  %v2067_v37 = vsel %vm2065_vm5, %v2066_v8, %v6280_v24 }
  0xdc   : > { %v6383_v22 = vsub.s32 %v2130_v6, %v2133_v0  ;;  %v1133_v15 = vand.u32 8388607, %v1126_v62  ;;  %v2156_v23 = vsub.s32 4, %v2132_v13  ;;  %vm2072_vm2 = vcmp.lt.s32.totalorder %v6164_v60, 0  ;;  %v5558_v6 = vld [vmem:[%s5618_s18] sm:$0xff] }
  0xdd   : > { %v1945_v1 = vmul.f32 %v1944_v12, %v1942_v63  ;;  %v5216_v3 = vadd.s32 4294967169, %v1130_v14  ;;  %v1338_v44 = vshrl.u32 %v1337_v19, 23  ;;  %vm6394_vm3 = vcmp.le.f32.partialorder %v2070_v39, 0.7853982 }
  0xde   : > { %v2136_v20 = vsub.s32 0, %v6383_v22  ;;  %v2068_v7 = vsel %vm2061_vm14, %v2064_v53, %v2067_v37  ;;  %v1955_v24 = vadd.s32 3, %v1951_v55  ;;  %v1134_v56 = vor.u32 8388608, %v1133_v15 }
  0xdf   : > { %v1946_v28 = vxor.u32 2147483648, %v1945_v1  ;;  %v1136_v8 = vadd.s32 1, %v5216_v3  ;;  %v1334_v18 = vand.u32 2147483647, %v6363_v43  ;;  %v2157_v46 = vsel %vm2072_vm2, %v2156_v23, %v2132_v13 }
  0xe0   : > { %v5253_v51 = vmin.u32 %v2136_v20, %v6383_v22  ;;  %v5224_v10 = vadd.s32 4294967169, %v1338_v44  ;;  %v6409_v50 = vand.u32 3, %v1951_v55  ;;  %v6413_v58 = vsel %vm2058_vm8, nan, %v2068_v7 }
  0xe1   : > { %v1947_v47 = vsel %vm1864_vm6, %v1946_v28, %v1945_v1  ;;  %vm1137_vm13 = vcmp.gt.s32.totalorder %v1136_v8, 0  ;;  %v6415_v41 = vand.u32 3, %v1955_v24  ;;  %v6418_v27 = vmul.f32 2.0, %v5558_v6 }
  0xe2   : > { %v1950_v39 = vsel %vm6370_vm1, %v6100_v59, %v1947_v47  ;;  %v2138_v5 = vclz %v5253_v51  ;;  %v1138_v31 = vsel %vm1137_vm13, %v1136_v8, 0  ;;  %v2126_v2 = vadd.s32 %v6321_v42, %v6327_v21 }
  0xe3   : > { %5484 = vcosq.f32 %v1950_v39  ;;  %v6424_v11 = vsel %vm6394_vm3, 0, %v2157_v46  ;;  %v1140_v9 = vand.u32 31, %v1138_v31  ;;  %v6426_v30 = vshrl.u32 %v1138_v31, 5 }
  0xe4   : > { %5486 = vsinq.f32 %v1950_v39  ;;  %v5254_v16 = vadd.s32 4294967294, %v2138_v5  ;;  %v6428_v52 = vshll.u32 %v1134_v56, 8  ;;  %v6432_v26 = vand.u32 8388607, %v1334_v18 }
  0xe5   : > { %v6434_v54 = vadd.s32 1, %v5224_v10  ;;  %v1141_v45 = vsub.s32 32, %v1140_v9  ;;  %v1143_v42 = vshll.u32 %v5572_v32, %v1140_v9  ;;  %v1146_v21 = vshll.u32 %v5573_v34, %v1140_v9 }
  0xe6   : > { %vm5255_vm8 = vcmp.lt.s32.totalorder %v5254_v16, 0  ;;  %vm2380_vm4 = vcmp.eq.s32.totalorder %v6409_v50, 2  ;;  %vm1961_vm6 = vcmp.eq.s32.totalorder %v6415_v41, 2  ;;  %v1149_v12 = vshll.u32 %v5574_v36, %v1140_v9 }
  0xe7   : > { %v2141_v33 = vsel %vm5255_vm8, 0, %v5254_v16  ;;  %v1152_v13 = vshll.u32 %v5575_v38, %v1140_v9  ;;  %v1155_v49 = vshll.u32 %v5576_v40, %v1140_v9  ;;  %vm2377_vm7 = vcmp.eq.s32.totalorder %v6409_v50, 0 }
  0xe8   : > { %v2142_v61 = vsub.s32 32, %v2141_v33  ;;  %v2143_v63 = vshll.u32 %v6383_v22, %v2141_v33  ;;  %v2146_v0 = vsub.s32 4294967266, %v2141_v33  ;;  %vm1958_vm9 = vcmp.eq.s32.totalorder %v6415_v41, 0 }
  0xe9   : > { %v1142_v55 = vshrl.u32 %v5572_v32, %v1141_v45  ;;  %vm2376_vm10 = vcmp.lt.s32.totalorder %v6409_v50, 2  ;;  %vm1957_vm11 = vcmp.lt.s32.totalorder %v6415_v41, 2  ;;  %v1144_v53 = vshrl.u32 %v5573_v34, %v1141_v45 }
  0xea   : > { %v1147_v14 = vshrl.u32 %v5574_v36, %v1141_v45  ;;  %v1150_v19 = vshrl.u32 %v5575_v38, %v1141_v45  ;;  %v1153_v1 = vshrl.u32 %v5576_v40, %v1141_v45  ;;  %vm1954_vm15 = vweird.f32 %v6100_v59 }
  0xeb   : > { %v2144_v22 = vshrl.u32 %v2126_v2, %v2142_v61  ;;  %v2147_v37 = vadd.s32 127, %v2146_v0  ;;  %v1156_v15 = vshrl.u32 %v5577_v48, %v1141_v45  ;;  %vm1158_vm0 = vcmp.lt.s32.totalorder %v6426_v30, 1 }
  0xec   : > { %v1145_v23 = vor.u32 %v1144_v53, %v1143_v42  ;;  %v1148_v3 = vor.u32 %v1147_v14, %v1146_v21  ;;  %v1151_v44 = vor.u32 %v1150_v19, %v1149_v12  ;;  %v1154_v28 = vor.u32 %v1153_v1, %v1152_v13 }
  0xed   : > { %v2145_v20 = vor.u32 %v2144_v22, %v2143_v63  ;;  %v2148_v7 = vshll.u32 %v2147_v37, 23  ;;  %v1157_v24 = vor.u32 %v1156_v15, %v1155_v49  ;;  %vm1159_vm5 = vcmp.lt.s32.totalorder %v6426_v30, 2 }
  0xee   : > { %vm1160_vm1 = vcmp.lt.s32.totalorder %v6426_v30, 3  ;;  %vm1161_vm14 = vcmp.lt.s32.totalorder %v6426_v30, 4  ;;  %v1162_v8 = vsel %vm1158_vm0, %v1142_v55, %v1145_v23  ;;  %v1166_v47 = vsel %vm1158_vm0, %v1145_v23, %v1148_v3 }
  0xef   : > { %v2149_v51 = vor.u32 4788187, %v2148_v7  ;;  %v2152_v56 = vcvt.s32.f32 %v2145_v20  ;;  %v1163_v39 = vsel %vm1161_vm14, %v1151_v44, 2102212464  ;;  %v1167_v46 = vsel %vm1161_vm14, %v1154_v28, 920167782 }
  0xf0   : > { %v5485_v10 = vpop.eup %5484  ;;  %v1164_v5 = vsel %vm1160_vm1, %v1148_v3, %v1163_v39  ;;  %v1168_v31 = vsel %vm1160_vm1, %v1151_v44, %v1167_v46  ;;  %v1170_v6 = vsel %vm1158_vm0, %v1148_v3, %v1151_v44  ;;  %v1171_v2 = vsel %vm1161_vm14, %v1157_v24, 1326507024 }
  0xf1   : > { %v5487_v16 = vpop.eup %5486  ;;  %v1962_v9 = vxor.u32 2147483648, %v5485_v10  ;;  %v2150_v45 = vand.u32 2147483647, %v2149_v51  ;;  %v1165_v42 = vsel %vm1159_vm5, %v1162_v8, %v1164_v5  ;;  %v1169_v21 = vsel %vm1159_vm5, %v1166_v47, %v1168_v31 }
  0xf2   : > { %v1959_v33 = vxor.u32 2147483648, %v5487_v16  ;;  %v1172_v12 = vsel %vm1160_vm1, %v1154_v28, %v1171_v2  ;;  %v6476_v13 = vmul.u32.u64.low %v6428_v52, %v1169_v21  ;;  %v6477_v49 = vmul.u32.u64.high %v6428_v52, %v1169_v21, %v6476_v13 }
  0xf3   : > { %v2382_v61 = vsel %vm2380_vm4, %v1962_v9, %v5487_v16  ;;  %v2153_v63 = vmul.f32 %v2152_v56, %v2150_v45  ;;  %v1963_v0 = vsel %vm1961_vm6, %v1962_v9, %v5487_v16  ;;  %v1173_v55 = vsel %vm1159_vm5, %v1170_v6, %v1172_v12 }
  0xf4   : > { %v2379_v53 = vsel %vm2377_vm7, %v5485_v10, %v1959_v33  ;;  %v1960_v14 = vsel %vm1958_vm9, %v5485_v10, %v1959_v33  ;;  %v6491_v19 = vmul.u32.u64.low %v6428_v52, %v1173_v55  ;;  %v6492_v1 = vmul.u32.u64.high %v6428_v52, %v1173_v55, %v6491_v19 }
  0xf5   : > { %v2383_v22 = vsel %vm2376_vm10, %v2379_v53, %v2382_v61  ;;  %v2154_v37 = vxor.u32 2147483648, %v2153_v63  ;;  %v1964_v15 = vsel %vm1957_vm11, %v1960_v14, %v1963_v0  ;;  %v1181_v30 = vmul.u32 %v6428_v52, %v1165_v42 }
  0xf6   : > { %v2384_v23 = vsel %vm1954_vm15, nan, %v2383_v22  ;;  %v1965_v3 = vsel %vm1954_vm15, nan, %v1964_v15  ;;  %v1184_v44 = vadd.s32 1, %v6477_v49  ;;  %vm1345_vm13 = vcmp.gt.s32.totalorder %v6434_v54, 0 }
  0xf7   : > { %3642 = vmatpush1.msra.mxu0 %v2384_v23  ;;  %v2155_v50 = vsel %vm2072_vm2, %v2154_v37, %v2153_v63  ;;  %v6510_v41 = vsel %vm2266_vm12, nan, %v6357_v4  ;;  %v1346_v52 = vsel %vm1345_vm13, %v6434_v54, 0  ;;  %v6517_v28 = vand.u32 3, %v6424_v11 }
  0xf8   : > { %v2158_v59 = vsel %vm6394_vm3, %v6164_v60, %v2155_v50  ;;  %3643 = vmatprep.subr.mxu0 %v6413_v58  ;;  %vm1183_vm8 = vc.u32 %v6492_v1, %v6476_v13  ;;  %v1025_v20 = vand.u32 2139095040, %v6418_v27  ;;  %v1347_v4 = vshrl.u32 %v1346_v52, 5 }
  0xf9   : > { %5488 = vcosq.f32 %v2158_v59  ;;  %3644 = vmatpush1.msra.mxu0 %v1965_v3  ;;  %v1185_v57 = vsel %vm1183_vm8, %v1184_v44, %v6477_v49  ;;  %v1348_v54 = vand.u32 31, %v1346_v52  ;;  %v2163_v29 = vadd.s32 3, %v6424_v11 }
  0xfa   : > { %5490 = vsinq.f32 %v2158_v59  ;;  %v1186_v7 = vadd.s32 %v1185_v57, %v1181_v30  ;;  %v1342_v24 = vor.u32 8388608, %v6432_v26  ;;  %v1026_v10 = vshrl.u32 %v1025_v20, 23 }
  0xfb   : > { %v1349_v8 = vsub.s32 32, %v1348_v54  ;;  %v1351_v58 = vshll.u32 %v5572_v32, %v1348_v54  ;;  %v1354_v47 = vshll.u32 %v5573_v34, %v1348_v54  ;;  %v1357_v51 = vshll.u32 %v5574_v36, %v1348_v54 }
  0xfc   : > { %v1187_v56 = vadd.s32 536870912, %v1186_v7  ;;  %v1360_v39 = vshll.u32 %v5575_v38, %v1348_v54  ;;  %v1363_v46 = vshll.u32 %v5576_v40, %v1348_v54  ;;  %vm1366_vm12 = vcmp.lt.s32.totalorder %v1347_v4, 1 }
  0xfd   : > { %v1352_v5 = vshrl.u32 %v5573_v34, %v1349_v8  ;;  %v1355_v11 = vshrl.u32 %v5574_v36, %v1349_v8  ;;  %v1358_v31 = vshrl.u32 %v5575_v38, %v1349_v8  ;;  %v1350_v6 = vshrl.u32 %v5572_v32, %v1349_v8 }
  0xfe   : > { %v6534_v26 = vshrl.u32 %v1187_v56, 30  ;;  %v1361_v2 = vshrl.u32 %v5576_v40, %v1349_v8  ;;  %v1364_v16 = vshrl.u32 %v5577_v48, %v1349_v8  ;;  %vm2583_vm2 = vcmp.eq.s32.totalorder %v6517_v28, 0 }
  0xff   : > { %v1353_v9 = vor.u32 %v1352_v5, %v1351_v58  ;;  %v1356_v45 = vor.u32 %v1355_v11, %v1354_v47  ;;  %v1359_v42 = vor.u32 %v1358_v31, %v1357_v51  ;;  %vm1369_vm3 = vcmp.lt.s32.totalorder %v1347_v4, 4 }
 0x100   : > { %vm2582_vm4 = vcmp.lt.s32.totalorder %v6517_v28, 2  ;;  %v1189_v21 = vshll.u32 %v6534_v26, 30  ;;  %v1362_v33 = vor.u32 %v1361_v2, %v1360_v39  ;;  %v1365_v12 = vor.u32 %v1364_v16, %v1363_v46 }
 0x101   : > { %vm1368_vm6 = vcmp.lt.s32.totalorder %v1347_v4, 3  ;;  %vm2162_vm7 = vweird.f32 %v6164_v60  ;;  %vm1367_vm9 = vcmp.lt.s32.totalorder %v1347_v4, 2  ;;  %v1371_v49 = vsel %vm1369_vm3, %v1359_v42, 2102212464 }
 0x102   : > { %v1374_v61 = vsel %vm1366_vm12, %v1353_v9, %v1356_v45  ;;  %v1382_v63 = vshll.u32 %v1342_v24, 8  ;;  %v2164_v0 = vand.u32 3, %v2163_v29  ;;  %v6545_v55 = vsub.s32 %v1186_v7, %v1189_v21 }
 0x103   : > { %v1375_v53 = vsel %vm1369_vm3, %v1362_v33, 920167782  ;;  %v1378_v14 = vsel %vm1366_vm12, %v1356_v45, %v1359_v42  ;;  %v1370_v19 = vsel %vm1366_vm12, %v1350_v6, %v1353_v9  ;;  %v1372_v22 = vsel %vm1368_vm6, %v1356_v45, %v1371_v49 }
 0x104   : > { %v1376_v37 = vsel %vm1368_vm6, %v1359_v42, %v1375_v53  ;;  %v1379_v15 = vsel %vm1369_vm3, %v1365_v12, 1326507024  ;;  %v1192_v30 = vsub.s32 0, %v6545_v55  ;;  %v5212_v44 = vadd.s32 4294967169, %v1026_v10 }
 0x105   : > { %v1377_v23 = vsel %vm1367_vm9, %v1374_v61, %v1376_v37  ;;  %v1380_v3 = vsel %vm1368_vm6, %v1362_v33, %v1379_v15  ;;  %vm2586_vm10 = vcmp.eq.s32.totalorder %v6517_v28, 2  ;;  %vm2165_vm11 = vcmp.lt.s32.totalorder %v2164_v0, 2 }
 0x106   : > { %v1381_v50 = vsel %vm1367_vm9, %v1378_v14, %v1380_v3  ;;  %v6558_v52 = vmul.u32.u64.low %v1382_v63, %v1377_v23  ;;  %v6559_v59 = vmul.u32.u64.high %v1382_v63, %v1377_v23, %v6558_v52  ;;  %v5489_v20 = vpop.eup %5488  ;;  %vm2169_vm15 = vcmp.eq.s32.totalorder %v2164_v0, 2 }
 0x107   : > { %v5217_v57 = vmin.u32 %v1192_v30, %v6545_v55  ;;  %v1373_v54 = vsel %vm1367_vm9, %v1370_v19, %v1372_v22  ;;  %v5491_v29 = vpop.eup %5490  ;;  %v2170_v7 = vxor.u32 2147483648, %v5489_v20  ;;  %vm2166_vm0 = vcmp.eq.s32.totalorder %v2164_v0, 0 }
 0x108   : > { %v6564_v24 = vmul.u32.u64.low %v1382_v63, %v1381_v50  ;;  %v6565_v8 = vmul.u32.u64.high %v1382_v63, %v1381_v50, %v6564_v24  ;;  %v2167_v58 = vxor.u32 2147483648, %v5491_v29  ;;  %v1022_v51 = vand.u32 2147483647, %v6418_v27 }
 0x109   : > { %v1194_v47 = vclz %v5217_v57  ;;  %v1032_v56 = vadd.s32 1, %v5212_v44  ;;  %v2588_v39 = vsel %vm2586_vm10, %v2170_v7, %v5491_v29  ;;  %v2171_v46 = vsel %vm2169_vm15, %v2170_v7, %v5491_v29 }
 0x10a   : > { %v1389_v10 = vmul.u32 %v1382_v63, %v1373_v54  ;;  %v1392_v5 = vadd.s32 1, %v6559_v59  ;;  %v2585_v4 = vsel %vm2583_vm2, %v5489_v20, %v2167_v58  ;;  %v2168_v11 = vsel %vm2166_vm0, %v5489_v20, %v2167_v58  ;;  %v6588_v63 = vld [vmem:[%s5618_s18 + $0x10] sm:$0xff] }
 0x10b   : > { %v5218_v31 = vadd.s32 4294967294, %v1194_v47  ;;  %vm1033_vm5 = vcmp.gt.s32.totalorder %v1032_v56, 0  ;;  %v2589_v6 = vsel %vm2582_vm4, %v2585_v4, %v2588_v39  ;;  %v2172_v2 = vsel %vm2165_vm11, %v2168_v11, %v2171_v46 }
 0x10c   : > { %v1182_v16 = vadd.s32 %v6476_v13, %v6492_v1  ;;  %vm1391_vm1 = vc.u32 %v6565_v8, %v6558_v52  ;;  %v2590_v9 = vsel %vm2162_vm7, nan, %v2589_v6  ;;  %v2173_v45 = vsel %vm2162_vm7, nan, %v2172_v2 }
 0x10d   : > { %vm5219_vm14 = vcmp.lt.s32.totalorder %v5218_v31, 0  ;;  %v1393_v42 = vsel %vm1391_vm1, %v1392_v5, %v6559_v59  ;;  %3779 = vmatpush1.msra.mxu1 %v2590_v9  ;;  %v1034_v33 = vsel %vm1033_vm5, %v1032_v56, 0  ;;  %v6591_v60 = vmul.f32 2.0, %v6588_v63 }
 0x10e   : > { %v1197_v28 = vsel %vm5219_vm14, 0, %v5218_v31  ;;  %v1394_v21 = vadd.s32 %v1393_v42, %v1389_v10  ;;  %3780 = vmatprep.subr.mxu1 %v6510_v41  ;;  %v1036_v61 = vand.u32 31, %v1034_v33  ;;  %vm1128_vm13 = vcmp.lt.s32.totalorder %v6348_v17, 0 }
 0x10f   : > { %v1198_v13 = vsub.s32 32, %v1197_v28  ;;  %v1199_v1 = vshll.u32 %v6545_v55, %v1197_v28  ;;  %v1202_v12 = vsub.s32 4294967266, %v1197_v28  ;;  %3781 = vmatpush1.msra.mxu1 %v2173_v45  ;;  %v1029_v14 = vand.u32 8388607, %v1022_v51 }
 0x110   : > { %v1395_v49 = vadd.s32 536870912, %v1394_v21  ;;  %v1212_v41 = vsub.s32 4, %v6534_v26  ;;  %v1035_v55 = vshrl.u32 %v1034_v33, 5  ;;  %v1037_v22 = vsub.s32 32, %v1036_v61 }
 0x111   : > { %v1200_v0 = vshrl.u32 %v1182_v16, %v1198_v13  ;;  %v1203_v53 = vadd.s32 127, %v1202_v12  ;;  %vm6601_vm8 = vcmp.le.f32.partialorder %v1126_v62, 0.7853982  ;;  %v1039_v23 = vshll.u32 %v5572_v32, %v1036_v61 }
 0x112   : > { %v6597_v19 = vshrl.u32 %v1395_v49, 30  ;;  %v1042_v3 = vshll.u32 %v5573_v34, %v1036_v61  ;;  %v1040_v50 = vshrl.u32 %v5573_v34, %v1037_v22  ;;  %v1045_v59 = vshll.u32 %v5574_v36, %v1036_v61 }
 0x113   : > { %v1201_v15 = vor.u32 %v1200_v0, %v1199_v1  ;;  %v1204_v30 = vshll.u32 %v1203_v53, 23  ;;  %v1048_v20 = vshll.u32 %v5575_v38, %v1036_v61  ;;  %v1043_v62 = vshrl.u32 %v5574_v36, %v1037_v22 }
 0x114   : > { %v1397_v44 = vshll.u32 %v6597_v19, 30  ;;  %v1046_v29 = vshrl.u32 %v5575_v38, %v1037_v22  ;;  %v1213_v7 = vsel %vm1128_vm13, %v1212_v41, %v6534_v26  ;;  %v1030_v58 = vor.u32 8388608, %v1029_v14 }
 0x115   : > { %v1205_v57 = vor.u32 4788187, %v1204_v30  ;;  %v1208_v54 = vcvt.s32.f32 %v1201_v15  ;;  %v1049_v47 = vshrl.u32 %v5576_v40, %v1037_v22  ;;  %v1038_v39 = vshrl.u32 %v5572_v32, %v1037_v22 }
 0x116   : > { %v1398_v24 = vsub.s32 %v1394_v21, %v1397_v44  ;;  %v1041_v46 = vor.u32 %v1040_v50, %v1039_v23  ;;  %vm1054_vm12 = vcmp.lt.s32.totalorder %v1035_v55, 1  ;;  %v1044_v5 = vor.u32 %v1043_v62, %v1042_v3 }
 0x117   : > { %v1206_v56 = vand.u32 2147483647, %v1205_v57  ;;  %v1050_v4 = vor.u32 %v1049_v47, %v1048_v20  ;;  %v1051_v11 = vshll.u32 %v5576_v40, %v1036_v61  ;;  %v1047_v6 = vor.u32 %v1046_v29, %v1045_v59 }
 0x118   : > { %v1400_v10 = vsub.s32 0, %v1398_v24  ;;  %v1052_v2 = vshrl.u32 %v5577_v48, %v1037_v22  ;;  %vm1057_vm2 = vcmp.lt.s32.totalorder %v1035_v55, 4  ;;  %v1390_v26 = vadd.s32 %v6558_v52, %v6565_v8 }
 0x119   : > { %v1209_v31 = vmul.f32 %v1208_v54, %v1206_v56  ;;  %vm1056_vm3 = vcmp.lt.s32.totalorder %v1035_v55, 3  ;;  %v1070_v9 = vshll.u32 %v1030_v58, 8  ;;  %vm1055_vm4 = vcmp.lt.s32.totalorder %v1035_v55, 2 }
 0x11a   : > { %v5225_v16 = vmin.u32 %v1400_v10, %v1398_v24  ;;  %v1053_v42 = vor.u32 %v1052_v2, %v1051_v11  ;;  %v1059_v28 = vsel %vm1057_vm2, %v1047_v6, 2102212464  ;;  %v1058_v33 = vsel %vm1054_vm12, %v1038_v39, %v1041_v46 }
 0x11b   : > { %v1210_v45 = vxor.u32 2147483648, %v1209_v31  ;;  %v1062_v13 = vsel %vm1054_vm12, %v1041_v46, %v1044_v5  ;;  %v1063_v1 = vsel %vm1057_vm2, %v1050_v4, 920167782  ;;  %v1060_v52 = vsel %vm1056_vm3, %v1044_v5, %v1059_v28 }
 0x11c   : > { %v1402_v21 = vclz %v5225_v16  ;;  %v1064_v8 = vsel %vm1056_vm3, %v1047_v6, %v1063_v1  ;;  %v1066_v49 = vsel %vm1054_vm12, %v1044_v5, %v1047_v6  ;;  %v1067_v14 = vsel %vm1057_vm2, %v1053_v42, 1326507024 }
 0x11d   : > { %v1211_v12 = vsel %vm1128_vm13, %v1210_v45, %v1209_v31  ;;  %v1065_v53 = vsel %vm1055_vm4, %v1062_v13, %v1064_v8  ;;  %v1068_v41 = vsel %vm1056_vm3, %v1050_v4, %v1067_v14  ;;  %v1061_v30 = vsel %vm1055_vm4, %v1058_v33, %v1060_v52 }
 0x11e   : > { %v1214_v61 = vsel %vm6601_vm8, %v6348_v17, %v1211_v12  ;;  %v5226_v0 = vadd.s32 4294967294, %v1402_v21  ;;  %v6637_v22 = vmul.u32.u64.low %v1070_v9, %v1065_v53  ;;  %v6638_v15 = vmul.u32.u64.high %v1070_v9, %v1065_v53, %v6637_v22 }
 0x11f   : > { %5492 = vcosq.f32 %v1214_v61  ;;  %v1069_v23 = vsel %vm1055_vm4, %v1066_v49, %v1068_v41  ;;  %v1233_v59 = vand.u32 2139095040, %v6591_v60  ;;  %v1420_v62 = vsub.s32 4, %v6597_v19 }
 0x120   : > { %5494 = vsinq.f32 %v1214_v61  ;;  %vm5227_vm6 = vcmp.lt.s32.totalorder %v5226_v0, 0  ;;  %v6642_v44 = vmul.u32.u64.low %v1070_v9, %v1069_v23  ;;  %v6643_v50 = vmul.u32.u64.high %v1070_v9, %v1069_v23, %v6642_v44 }
 0x121   : > { %v1405_v3 = vsel %vm5227_vm6, 0, %v5226_v0  ;;  %v1077_v29 = vmul.u32 %v1070_v9, %v1061_v30  ;;  %v1080_v58 = vadd.s32 1, %v6638_v15  ;;  %v1234_v47 = vshrl.u32 %v1233_v59, 23 }
 0x122   : > { %v1406_v20 = vsub.s32 32, %v1405_v3  ;;  %v1407_v57 = vshll.u32 %v1398_v24, %v1405_v3  ;;  %v1410_v54 = vsub.s32 4294967266, %v1405_v3  ;;  %v1215_v56 = vsel %vm6601_vm8, 0, %v1213_v7 }
 0x123   : > { %vm1336_vm7 = vcmp.lt.s32.totalorder %v6363_v43, 0  ;;  %vm1079_vm9 = vc.u32 %v6643_v50, %v6637_v22  ;;  %v1230_v46 = vand.u32 2147483647, %v6591_v60  ;;  %v5220_v10 = vadd.s32 4294967169, %v1234_v47 }
 0x124   : > { %v1408_v55 = vshrl.u32 %v1390_v26, %v1406_v20  ;;  %v1411_v39 = vadd.s32 127, %v1410_v54  ;;  %v1421_v4 = vsel %vm1336_vm7, %v1420_v62, %v6597_v19  ;;  %v1081_v11 = vsel %vm1079_vm9, %v1080_v58, %v6638_v15 }
 0x125   : > { %v1638_v31 = vand.u32 3, %v1215_v56  ;;  %v1082_v37 = vadd.s32 %v1081_v11, %v1077_v29  ;;  %v1240_v7 = vadd.s32 1, %v5220_v10  ;;  %vm6659_vm10 = vcmp.le.f32.partialorder %v1334_v18, 0.7853982 }
 0x126   : > { %v1409_v24 = vor.u32 %v1408_v55, %v1407_v57  ;;  %v1412_v5 = vshll.u32 %v1411_v39, 23  ;;  %v1423_v16 = vsel %vm6659_vm10, 0, %v1421_v4  ;;  %v1237_v19 = vand.u32 8388607, %v1230_v46 }
 0x127   : > { %v1083_v9 = vadd.s32 536870912, %v1082_v37  ;;  %vm1241_vm11 = vcmp.gt.s32.totalorder %v1240_v7, 0  ;;  %vm1218_vm15 = vweird.f32 %v6348_v17  ;;  %vm1639_vm0 = vcmp.lt.s32.totalorder %v1638_v31, 2 }
 0x128   : > { %v1413_v2 = vor.u32 4788187, %v1412_v5  ;;  %v1416_v26 = vcvt.s32.f32 %v1409_v24  ;;  %v1242_v42 = vsel %vm1241_vm11, %v1240_v7, 0  ;;  %vm1640_vm5 = vcmp.eq.s32.totalorder %v1638_v31, 0 }
 0x129   : > { %v6668_v28 = vshrl.u32 %v1083_v9, 30  ;;  %v1244_v18 = vand.u32 31, %v1242_v42  ;;  %vm1643_vm1 = vcmp.eq.s32.totalorder %v1638_v31, 2  ;;  %v6672_v13 = vand.u32 3, %v1423_v16 }
 0x12a   : > { %v1414_v45 = vand.u32 2147483647, %v1413_v2  ;;  %v1238_v8 = vor.u32 8388608, %v1237_v19  ;;  %v6679_v53 = vadd.s32 3, %v1215_v56  ;;  %v1427_v14 = vadd.s32 3, %v1423_v16 }
 0x12b   : > { %v1085_v52 = vshll.u32 %v6668_v28, 30  ;;  %v1245_v49 = vsub.s32 32, %v1244_v18  ;;  %v1078_v15 = vadd.s32 %v6637_v22, %v6643_v50  ;;  %v1247_v23 = vshll.u32 %v5572_v32, %v1244_v18 }
 0x12c   : > { %v6670_v21 = vpop.eup %5492  ;;  %v1417_v33 = vmul.f32 %v1416_v26, %v1414_v45  ;;  %v1250_v20 = vshll.u32 %v5573_v34, %v1244_v18  ;;  %v6701_v54 = vshll.u32 %v1238_v8, 8  ;;  %v1243_v29 = vshrl.u32 %v1242_v42, 5 }
 0x12d   : > { %v6674_v1 = vpop.eup %5494  ;;  %v1226_v12 = vxor.u32 2147483648, %v6670_v21  ;;  %v6685_v30 = vsub.s32 %v1082_v37, %v1085_v52  ;;  %v1248_v59 = vshrl.u32 %v5573_v34, %v1245_v49  ;;  %v1251_v58 = vshrl.u32 %v5574_v36, %v1245_v49 }
 0x12e   : > { %v1223_v61 = vxor.u32 2147483648, %v6674_v1  ;;  %v1418_v0 = vxor.u32 2147483648, %v1417_v33  ;;  %v1246_v56 = vshrl.u32 %v5572_v32, %v1245_v49  ;;  %v6708_v55 = vand.u32 3, %v1427_v14 }
 0x12f   : > { %v1645_v41 = vsel %vm1643_vm1, %v1226_v12, %v6674_v1  ;;  %v1088_v50 = vsub.s32 0, %v6685_v30  ;;  %v1249_v39 = vor.u32 %v1248_v59, %v1247_v23  ;;  %v1252_v10 = vor.u32 %v1251_v58, %v1250_v20 }
 0x130   : > { %v1642_v3 = vsel %vm1640_vm5, %v6670_v21, %v1223_v61  ;;  %v1419_v44 = vsel %vm1336_vm7, %v1418_v0, %v1417_v33  ;;  %v1253_v24 = vshll.u32 %v5574_v36, %v1244_v18  ;;  %v1254_v5 = vshrl.u32 %v5575_v38, %v1245_v49 }
 0x131   : > { %v1646_v57 = vsel %vm1639_vm0, %v1642_v3, %v1645_v41  ;;  %v1422_v22 = vsel %vm6659_vm10, %v6363_v43, %v1419_v44  ;;  %v5213_v47 = vmin.u32 %v1088_v50, %v6685_v30  ;;  %v1256_v11 = vshll.u32 %v5575_v38, %v1244_v18 }
 0x132   : > { %v1647_v62 = vsel %vm1218_vm15, nan, %v1646_v57  ;;  %5496 = vcosq.f32 %v1422_v22  ;;  %v1257_v31 = vshrl.u32 %v5576_v40, %v1245_v49  ;;  %v1259_v37 = vshll.u32 %v5576_v40, %v1244_v18 }
 0x133   : > { %3645 = vmatprep.subr.mxu0 %v1647_v62  ;;  %5498 = vsinq.f32 %v1422_v22  ;;  %v1090_v4 = vclz %v5213_v47  ;;  %v1255_v7 = vor.u32 %v1254_v5, %v1253_v24  ;;  %v1260_v6 = vshrl.u32 %v5577_v48, %v1245_v49 }
 0x134   : > { %vm1262_vm14 = vcmp.lt.s32.totalorder %v1243_v29, 1  ;;  %v289_v2 = vand.u32 2139095040, %v6345_v35  ;;  %vm1849_vm13 = vcmp.eq.s32.totalorder %v6672_v13, 2  ;;  %v1258_v16 = vor.u32 %v1257_v31, %v1256_v11 }
 0x135   : > { %v5214_v26 = vadd.s32 4294967294, %v1090_v4  ;;  %vm1264_vm8 = vcmp.lt.s32.totalorder %v1243_v29, 3  ;;  %vm1265_vm12 = vcmp.lt.s32.totalorder %v1243_v29, 4  ;;  %vm1846_vm2 = vcmp.eq.s32.totalorder %v6672_v13, 0 }
 0x136   : > { %vm1024_vm3 = vcmp.lt.s32.totalorder %v6418_v27, 0  ;;  %v1261_v9 = vor.u32 %v1260_v6, %v1259_v37  ;;  %vm1263_vm4 = vcmp.lt.s32.totalorder %v1243_v29, 2  ;;  %v1267_v19 = vsel %vm1265_vm12, %v1255_v7, 2102212464 }
 0x137   : > { %v1270_v45 = vsel %vm1262_vm14, %v1249_v39, %v1252_v10  ;;  %vm1845_vm6 = vcmp.lt.s32.totalorder %v6672_v13, 2  ;;  %vm5215_vm7 = vcmp.lt.s32.totalorder %v5214_v26, 0  ;;  %v1266_v42 = vsel %vm1262_vm14, %v1246_v56, %v1249_v39 }
 0x138   : > { %v1268_v18 = vsel %vm1264_vm8, %v1252_v10, %v1267_v19  ;;  %v1271_v33 = vsel %vm1265_vm12, %v1258_v16, 920167782  ;;  %vm1426_vm9 = vweird.f32 %v6363_v43  ;;  %v1093_v52 = vsel %vm5215_vm7, 0, %v5214_v26 }
 0x139   : > { %v1272_v8 = vsel %vm1264_vm8, %v1255_v7, %v1271_v33  ;;  %v1274_v49 = vsel %vm1262_vm14, %v1252_v10, %v1255_v7  ;;  %v1275_v0 = vsel %vm1265_vm12, %v1261_v9, 1326507024  ;;  %v1094_v14 = vsub.s32 32, %v1093_v52 }
 0x13a   : > { %v1095_v41 = vshll.u32 %v6685_v30, %v1093_v52  ;;  %v1098_v23 = vsub.s32 4294967266, %v1093_v52  ;;  %v1273_v3 = vsel %vm1263_vm4, %v1270_v45, %v1272_v8  ;;  %vm6734_vm10 = vcmp.le.f32.partialorder %v1022_v51, 0.7853982 }
 0x13b   : > { %v1108_v59 = vsub.s32 4, %v6668_v28  ;;  %v1276_v20 = vsel %vm1264_vm8, %v1258_v16, %v1275_v0  ;;  %v6741_v57 = vmul.u32.u64.low %v6701_v54, %v1273_v3  ;;  %v6742_v22 = vmul.u32.u64.high %v6701_v54, %v1273_v3, %v6741_v57 }
 0x13c   : > { %v1096_v50 = vshrl.u32 %v1078_v15, %v1094_v14  ;;  %v1099_v30 = vadd.s32 127, %v1098_v23  ;;  %v1269_v62 = vsel %vm1263_vm4, %v1266_v42, %v1268_v18  ;;  %v1277_v58 = vsel %vm1263_vm4, %v1274_v49, %v1276_v20 }
 0x13d   : > { %v6748_v51 = vmul.u32.u64.low %v6701_v54, %v1277_v58  ;;  %v6749_v47 = vmul.u32.u64.high %v6701_v54, %v1277_v58, %v6748_v51  ;;  %v1220_v56 = vand.u32 3, %v6679_v53  ;;  %vm1429_vm11 = vcmp.lt.s32.totalorder %v6708_v55, 2 }
 0x13e   : > { %v1097_v10 = vor.u32 %v1096_v50, %v1095_v41  ;;  %v1100_v24 = vshll.u32 %v1099_v30, 23  ;;  %vm1433_vm0 = vcmp.eq.s32.totalorder %v6708_v55, 2  ;;  %v290_v5 = vshrl.u32 %v289_v2, 23 }
 0x13f   : > { %v5497_v39 = vpop.eup %5496  ;;  %v1285_v11 = vmul.u32 %v6701_v54, %v1269_v62  ;;  %v1288_v29 = vadd.s32 1, %v6742_v22  ;;  %vm1430_vm5 = vcmp.eq.s32.totalorder %v6708_v55, 0  ;;  %v1109_v53 = vsel %vm1024_vm3, %v1108_v59, %v6668_v28 }
 0x140   : > { %v5499_v15 = vpop.eup %5498  ;;  %v1434_v4 = vxor.u32 2147483648, %v5497_v39  ;;  %v1101_v37 = vor.u32 4788187, %v1100_v24  ;;  %v1104_v7 = vcvt.s32.f32 %v1097_v10  ;;  %vm1287_vm1 = vc.u32 %v6749_v47, %v6741_v57 }
 0x141   : > { %v1431_v31 = vxor.u32 2147483648, %v5499_v15  ;;  %v5184_v26 = vadd.s32 4294967169, %v290_v5  ;;  %v1289_v9 = vsel %vm1287_vm1, %v1288_v29, %v6742_v22  ;;  %vm1222_vm14 = vcmp.eq.s32.totalorder %v1220_v56, 0 }
 0x142   : > { %v1851_v6 = vsel %vm1849_vm13, %v1434_v4, %v5499_v15  ;;  %v1435_v2 = vsel %vm1433_vm0, %v1434_v4, %v5499_v15  ;;  %v1102_v16 = vand.u32 2147483647, %v1101_v37  ;;  %v1290_v42 = vadd.s32 %v1289_v9, %v1285_v11 }
 0x143   : > { %v1848_v54 = vsel %vm1846_vm2, %v5497_v39, %v1431_v31  ;;  %v1432_v19 = vsel %vm1430_vm5, %v5497_v39, %v1431_v31  ;;  %v1111_v52 = vsel %vm6734_vm10, 0, %v1109_v53  ;;  %vm1225_vm13 = vcmp.eq.s32.totalorder %v1220_v56, 2 }
 0x144   : > { %v1852_v45 = vsel %vm1845_vm6, %v1848_v54, %v1851_v6  ;;  %v6771_v28 = vsel %vm1429_vm11, %v1432_v19, %v1435_v2  ;;  %v1105_v33 = vmul.f32 %v1104_v7, %v1102_v16  ;;  %v1291_v8 = vadd.s32 536870912, %v1290_v42 }
 0x145   : > { %v1853_v18 = vsel %vm1426_vm9, nan, %v1852_v45  ;;  %v286_v49 = vand.u32 2147483647, %v6345_v35  ;;  %v296_v13 = vadd.s32 1, %v5184_v26  ;;  %vm1221_vm8 = vcmp.lt.s32.totalorder %v1220_v56, 2 }
 0x146   : > { %3782 = vmatprep.subr.mxu1 %v1853_v18  ;;  %v1106_v0 = vxor.u32 2147483648, %v1105_v33  ;;  %v1224_v55 = vsel %vm1222_vm14, %v6670_v21, %v1223_v61  ;;  %v6781_v14 = vshrl.u32 %v1291_v8, 30  ;;  %v1227_v41 = vsel %vm1225_vm13, %v1226_v12, %v6674_v1 }
 0x147   : > { %v1115_v23 = vadd.s32 3, %v1111_v52  ;;  %vm297_vm12 = vcmp.gt.s32.totalorder %v296_v13, 0  ;;  %v293_v61 = vand.u32 8388607, %v286_v49  ;;  %v6794_v50 = vand.u32 3, %v1111_v52 }
 0x148   : > { %v1107_v3 = vsel %vm1024_vm3, %v1106_v0, %v1105_v33  ;;  %v298_v59 = vsel %vm297_vm12, %v296_v13, 0  ;;  %v1293_v22 = vshll.u32 %v6781_v14, 30  ;;  %v1228_v21 = vsel %vm1221_vm8, %v1224_v55, %v1227_v41 }
 0x149   : > { %v1110_v20 = vsel %vm6734_vm10, %v6418_v27, %v1107_v3  ;;  %v300_v1 = vand.u32 31, %v298_v59  ;;  %v6798_v30 = vand.u32 3, %v1115_v23  ;;  %v6800_v62 = vshrl.u32 %v298_v59, 5 }
 0x14a   : > { %5500 = vcosq.f32 %v1110_v20  ;;  %v6796_v12 = vsub.s32 %v1290_v42, %v1293_v22  ;;  %v6807_v39 = vsel %vm1218_vm15, nan, %v1228_v21  ;;  %v294_v24 = vor.u32 8388608, %v293_v61 }
 0x14b   : > { %5502 = vsinq.f32 %v1110_v20  ;;  %v301_v58 = vsub.s32 32, %v300_v1  ;;  %v303_v44 = vshll.u32 %v5572_v32, %v300_v1  ;;  %v306_v51 = vshll.u32 %v5573_v34, %v300_v1 }
 0x14c   : > { %v1296_v56 = vsub.s32 0, %v6796_v12  ;;  %v309_v10 = vshll.u32 %v5574_v36, %v300_v1  ;;  %vm1540_vm2 = vcmp.eq.s32.totalorder %v6794_v50, 2  ;;  %v1286_v11 = vadd.s32 %v6741_v57, %v6749_v47 }
 0x14d   : > { %v304_v5 = vshrl.u32 %v5573_v34, %v301_v58  ;;  %v307_v15 = vshrl.u32 %v5574_v36, %v301_v58  ;;  %v310_v4 = vshrl.u32 %v5575_v38, %v301_v58  ;;  %vm1121_vm3 = vcmp.eq.s32.totalorder %v6798_v30, 2 }
 0x14e   : > { %v5221_v29 = vmin.u32 %v1296_v56, %v6796_v12  ;;  %vm318_vm15 = vcmp.lt.s32.totalorder %v6800_v62, 1  ;;  %vm1537_vm4 = vcmp.eq.s32.totalorder %v6794_v50, 0  ;;  %vm1118_vm6 = vcmp.eq.s32.totalorder %v6798_v30, 0 }
 0x14f   : > { %v302_v17 = vshrl.u32 %v5572_v32, %v301_v58  ;;  %v305_v31 = vor.u32 %v304_v5, %v303_v44  ;;  %v308_v37 = vor.u32 %v307_v15, %v306_v51  ;;  %v311_v7 = vor.u32 %v310_v4, %v309_v10 }
 0x150   : > { %vm1536_vm7 = vcmp.lt.s32.totalorder %v6794_v50, 2  ;;  %v1298_v53 = vclz %v5221_v29  ;;  %vm1117_vm10 = vcmp.lt.s32.totalorder %v6798_v30, 2  ;;  %v312_v57 = vshll.u32 %v5575_v38, %v300_v1 }
 0x151   : > { %v313_v47 = vshrl.u32 %v5576_v40, %v301_v58  ;;  %v315_v6 = vshll.u32 %v5576_v40, %v300_v1  ;;  %vm1114_vm11 = vweird.f32 %v6418_v27  ;;  %v1316_v2 = vsub.s32 4, %v6781_v14 }
 0x152   : > { %v316_v26 = vshrl.u32 %v5577_v48, %v301_v58  ;;  %v6830_v54 = vshll.u32 %v294_v24, 8  ;;  %v497_v16 = vand.u32 2139095040, %v6360_v25  ;;  %v5222_v9 = vadd.s32 4294967294, %v1298_v53 }
 0x153   : > { %v314_v19 = vor.u32 %v313_v47, %v312_v57  ;;  %vm319_vm0 = vcmp.lt.s32.totalorder %v6800_v62, 2  ;;  %vm320_vm5 = vcmp.lt.s32.totalorder %v6800_v62, 3  ;;  %vm321_vm1 = vcmp.lt.s32.totalorder %v6800_v62, 4 }
 0x154   : > { %v317_v45 = vor.u32 %v316_v26, %v315_v6  ;;  %v322_v42 = vsel %vm318_vm15, %v302_v17, %v305_v31  ;;  %v326_v18 = vsel %vm318_vm15, %v305_v31, %v308_v37  ;;  %vm1232_vm14 = vcmp.lt.s32.totalorder %v6591_v60, 0 }
 0x155   : > { %vm5223_vm13 = vcmp.lt.s32.totalorder %v5222_v9, 0  ;;  %v323_v33 = vsel %vm321_vm1, %v311_v7, 2102212464  ;;  %v327_v25 = vsel %vm321_vm1, %v314_v19, 920167782  ;;  %v330_v52 = vsel %vm318_vm15, %v308_v37, %v311_v7 }
 0x156   : > { %v1301_v8 = vsel %vm5223_vm13, 0, %v5222_v9  ;;  %v324_v13 = vsel %vm320_vm5, %v308_v37, %v323_v33  ;;  %v328_v0 = vsel %vm320_vm5, %v311_v7, %v327_v25  ;;  %v331_v55 = vsel %vm321_vm1, %v317_v45, 1326507024 }
 0x157   : > { %v5501_v41 = vpop.eup %5500  ;;  %v1302_v23 = vsub.s32 32, %v1301_v8  ;;  %v1303_v3 = vshll.u32 %v6796_v12, %v1301_v8  ;;  %v1306_v59 = vsub.s32 4294967266, %v1301_v8  ;;  %v498_v20 = vshrl.u32 %v497_v16, 23 }
 0x158   : > { %v5503_v22 = vpop.eup %5502  ;;  %v1122_v61 = vxor.u32 2147483648, %v5501_v41  ;;  %v325_v21 = vsel %vm319_vm0, %v322_v42, %v324_v13  ;;  %v329_v1 = vsel %vm319_vm0, %v326_v18, %v328_v0  ;;  %v332_v58 = vsel %vm320_vm5, %v314_v19, %v331_v55  ;;  %v6896_v19 = vld [vmem:[%s5618_s18 + $0x18] sm:$0xff] }
 0x159   : > { %v1119_v44 = vxor.u32 2147483648, %v5503_v22  ;;  %v1304_v51 = vshrl.u32 %v1286_v11, %v1302_v23  ;;  %v1307_v56 = vadd.s32 127, %v1306_v59  ;;  %v333_v10 = vsel %vm319_vm0, %v330_v52, %v332_v58 }
 0x15a   : > { %v1542_v12 = vsel %vm1540_vm2, %v1122_v61, %v5503_v22  ;;  %v1123_v24 = vsel %vm1121_vm3, %v1122_v61, %v5503_v22  ;;  %v6861_v5 = vmul.u32.u64.low %v6830_v54, %v333_v10  ;;  %v6862_v15 = vmul.u32.u64.high %v6830_v54, %v333_v10, %v6861_v5 }
 0x15b   : > { %v1539_v4 = vsel %vm1537_vm4, %v5501_v41, %v1119_v44  ;;  %v1305_v29 = vor.u32 %v1304_v51, %v1303_v3  ;;  %v1308_v17 = vshll.u32 %v1307_v56, 23  ;;  %v1120_v11 = vsel %vm1118_vm6, %v5501_v41, %v1119_v44  ;;  %v6914_v41 = vld [vmem:[%s5618_s18] sm:$0xff] }
 0x15c   : > { %v1543_v62 = vsel %vm1536_vm7, %v1539_v4, %v1542_v12  ;;  %v1124_v31 = vsel %vm1117_vm10, %v1120_v11, %v1123_v24  ;;  %v6873_v37 = vmul.u32.u64.low %v6830_v54, %v329_v1  ;;  %v6874_v7 = vmul.u32.u64.high %v6830_v54, %v329_v1, %v6873_v37 }
 0x15d   : > { %v1544_v53 = vsel %vm1114_vm11, nan, %v1543_v62  ;;  %v1309_v57 = vor.u32 4788187, %v1308_v17  ;;  %v1312_v47 = vcvt.s32.f32 %v1305_v29  ;;  %v1125_v6 = vsel %vm1114_vm11, nan, %v1124_v31 }
 0x15e   : > { %3646 = vmatpush1.msra.mxu0 %v1544_v53  ;;  %v1317_v50 = vsel %vm1232_vm14, %v1316_v2, %v6781_v14  ;;  %v5192_v30 = vadd.s32 4294967169, %v498_v20  ;;  %v341_v16 = vmul.u32 %v6830_v54, %v325_v21  ;;  %vm343_vm8 = vc.u32 %v6862_v15, %v6873_v37 }
 0x15f   : > { %v1310_v26 = vand.u32 2147483647, %v1309_v57  ;;  %3647 = vmatprep.subr.mxu0 %v6807_v39  ;;  %vm6890_vm12 = vcmp.le.f32.partialorder %v1230_v46, 0.7853982  ;;  %v344_v27 = vadd.s32 1, %v6874_v7  ;;  %v6907_v25 = vsel %vm1426_vm9, nan, %v6771_v28 }
 0x160   : > { %3648 = vmatpush1.msra.mxu0 %v1125_v6  ;;  %v494_v14 = vand.u32 2147483647, %v6896_v19  ;;  %v504_v39 = vadd.s32 1, %v5192_v30  ;;  %v1319_v54 = vsel %vm6890_vm12, 0, %v1317_v50  ;;  %v185_v23 = vand.u32 2139095040, %v6914_v41 }
 0x161   : > { %v1313_v2 = vmul.f32 %v1312_v47, %v1310_v26  ;;  %v345_v45 = vsel %vm343_vm8, %v344_v27, %v6874_v7  ;;  %v6902_v33 = vand.u32 3, %v1319_v54  ;;  %v1323_v0 = vadd.s32 3, %v1319_v54 }
 0x162   : > { %vm505_vm2 = vcmp.gt.s32.totalorder %v504_v39, 0  ;;  %v346_v42 = vadd.s32 %v345_v45, %v341_v16  ;;  %v501_v52 = vand.u32 8388607, %v494_v14  ;;  %v186_v62 = vshrl.u32 %v185_v23, 23 }
 0x163   : > { %v1314_v46 = vxor.u32 2147483648, %v1313_v2  ;;  %v506_v18 = vsel %vm505_vm2, %v504_v39, 0  ;;  %vm1746_vm9 = vcmp.eq.s32.totalorder %v6902_v33, 2  ;;  %v1324_v31 = vand.u32 3, %v1323_v0 }
 0x164   : > { %v508_v8 = vand.u32 31, %v506_v18  ;;  %v347_v55 = vadd.s32 536870912, %v346_v42  ;;  %v507_v22 = vshrl.u32 %v506_v18, 5  ;;  %v502_v51 = vor.u32 8388608, %v501_v52 }
 0x165   : > { %v1315_v13 = vsel %vm1232_vm14, %v1314_v46, %v1313_v2  ;;  %vm1743_vm15 = vcmp.eq.s32.totalorder %v6902_v33, 0  ;;  %vm1742_vm7 = vcmp.lt.s32.totalorder %v6902_v33, 2  ;;  %vm1322_vm11 = vweird.f32 %v6591_v60 }
 0x166   : > { %v1318_v3 = vsel %vm6890_vm12, %v6591_v60, %v1315_v13  ;;  %v509_v43 = vsub.s32 32, %v508_v8  ;;  %v511_v28 = vshll.u32 %v5572_v32, %v508_v8  ;;  %v514_v59 = vshll.u32 %v5573_v34, %v508_v8 }
 0x167   : > { %5504 = vcosq.f32 %v1318_v3  ;;  %v6922_v20 = vshrl.u32 %v347_v55, 30  ;;  %v520_v61 = vshll.u32 %v5575_v38, %v508_v8  ;;  %v517_v58 = vshll.u32 %v5574_v36, %v508_v8 }
 0x168   : > { %5506 = vsinq.f32 %v1318_v3  ;;  %v512_v21 = vshrl.u32 %v5573_v34, %v509_v43  ;;  %v515_v1 = vshrl.u32 %v5574_v36, %v509_v43  ;;  %v518_v56 = vshrl.u32 %v5575_v38, %v509_v43 }
 0x169   : > { %v349_v44 = vshll.u32 %v6922_v20, 30  ;;  %v521_v10 = vshrl.u32 %v5576_v40, %v509_v43  ;;  %v523_v5 = vshll.u32 %v5576_v40, %v508_v8  ;;  %v524_v4 = vshrl.u32 %v5577_v48, %v509_v43 }
 0x16a   : > { %v513_v12 = vor.u32 %v512_v21, %v511_v28  ;;  %v516_v24 = vor.u32 %v515_v1, %v514_v59  ;;  %v510_v17 = vshrl.u32 %v5572_v32, %v509_v43  ;;  %v519_v7 = vor.u32 %v518_v56, %v517_v58 }
 0x16b   : > { %v6933_v29 = vsub.s32 %v346_v42, %v349_v44  ;;  %v522_v11 = vor.u32 %v521_v10, %v520_v61  ;;  %v525_v53 = vor.u32 %v524_v4, %v523_v5  ;;  %vm526_vm3 = vcmp.lt.s32.totalorder %v507_v22, 1 }
 0x16c   : > { %vm528_vm4 = vcmp.lt.s32.totalorder %v507_v22, 3  ;;  %vm529_vm6 = vcmp.lt.s32.totalorder %v507_v22, 4  ;;  %v6939_v47 = vshll.u32 %v502_v51, 8  ;;  %vm527_vm10 = vcmp.lt.s32.totalorder %v507_v22, 2 }
 0x16d   : > { %v352_v57 = vsub.s32 0, %v6933_v29  ;;  %v531_v6 = vsel %vm529_vm6, %v519_v7, 2102212464  ;;  %v534_v50 = vsel %vm526_vm3, %v513_v12, %v516_v24  ;;  %v535_v30 = vsel %vm529_vm6, %v522_v11, 920167782 }
 0x16e   : > { %v530_v16 = vsel %vm526_vm3, %v510_v17, %v513_v12  ;;  %v182_v9 = vand.u32 2147483647, %v6914_v41  ;;  %v5180_v27 = vadd.s32 4294967169, %v186_v62  ;;  %v532_v39 = vsel %vm528_vm4, %v516_v24, %v531_v6  ;;  %v6989_v6 = vld [vmem:[%s5618_s18 + $0x8] sm:$0xff] }
 0x16f   : > { %v5185_v26 = vmin.u32 %v352_v57, %v6933_v29  ;;  %v536_v2 = vsel %vm528_vm4, %v519_v7, %v535_v30  ;;  %v538_v54 = vsel %vm526_vm3, %v516_v24, %v519_v7  ;;  %v539_v45 = vsel %vm529_vm6, %v525_v53, 1326507024 }
 0x170   : > { %vm1325_vm0 = vcmp.lt.s32.totalorder %v1324_v31, 2  ;;  %v537_v42 = vsel %vm527_vm10, %v534_v50, %v536_v2  ;;  %v540_v18 = vsel %vm528_vm4, %v522_v11, %v539_v45  ;;  %v533_v52 = vsel %vm527_vm10, %v530_v16, %v532_v39 }
 0x171   : > { %v354_v46 = vclz %v5185_v26  ;;  %v541_v8 = vsel %vm527_vm10, %v538_v54, %v540_v18  ;;  %v6955_v13 = vmul.u32.u64.low %v6939_v47, %v537_v42  ;;  %v6956_v0 = vmul.u32.u64.high %v6939_v47, %v537_v42, %v6955_v13 }
 0x172   : > { %v6960_v23 = vmul.u32.u64.low %v6939_v47, %v541_v8  ;;  %v6961_v3 = vmul.u32.u64.high %v6939_v47, %v541_v8, %v6960_v23  ;;  %v192_v43 = vadd.s32 1, %v5180_v27  ;;  %vm1326_vm5 = vcmp.eq.s32.totalorder %v1324_v31, 0 }
 0x173   : > { %v5186_v55 = vadd.s32 4294967294, %v354_v46  ;;  %vm1329_vm1 = vcmp.eq.s32.totalorder %v1324_v31, 2  ;;  %v342_v59 = vadd.s32 %v6873_v37, %v6862_v15  ;;  %v189_v22 = vand.u32 8388607, %v182_v9 }
 0x174   : > { %v5505_v28 = vpop.eup %5504  ;;  %vm193_vm13 = vcmp.gt.s32.totalorder %v192_v43, 0  ;;  %v549_v44 = vmul.u32 %v6939_v47, %v533_v52  ;;  %v552_v51 = vadd.s32 1, %v6956_v0  ;;  %v5578_v56 = vmov 0.0  }
 0x175   : > { %v5507_v61 = vpop.eup %5506  ;;  %v1330_v21 = vxor.u32 2147483648, %v5505_v28  ;;  %vm5187_vm14 = vcmp.lt.s32.totalorder %v5186_v55, 0  ;;  %3687 = vmatprep.mubr.f32.mxu0 %v5578_v56  ;;  %3824 = vmatprep.mubr.f32.mxu1 %v5578_v56  ;;  %v194_v17 = vsel %vm193_vm13, %v192_v43, 0  ;;  %vm551_vm8 = vc.u32 %v6961_v3, %v6955_v13 }
 0x176   : > { %v1327_v1 = vxor.u32 2147483648, %v5507_v61  ;;  %v357_v58 = vsel %vm5187_vm14, 0, %v5186_v55  ;;  %v553_v47 = vsel %vm551_vm8, %v552_v51, %v6956_v0  ;;  %vm288_vm12 = vcmp.lt.s32.totalorder %v6989_v6, 0 }
 0x177   : > { %v1748_v15 = vsel %vm1746_vm9, %v1330_v21, %v5507_v61  ;;  %v1331_v37 = vsel %vm1329_vm1, %v1330_v21, %v5507_v61  ;;  %v358_v10 = vsub.s32 32, %v357_v58  ;;  %v359_v12 = vshll.u32 %v6933_v29, %v357_v58 }
 0x178   : > { %v1745_v24 = vsel %vm1743_vm15, %v5505_v28, %v1327_v1  ;;  %v1328_v5 = vsel %vm1326_vm5, %v5505_v28, %v1327_v1  ;;  %v362_v4 = vsub.s32 4294967266, %v357_v58  ;;  %v554_v31 = vadd.s32 %v553_v47, %v549_v44 }
 0x179   : > { %v1749_v11 = vsel %vm1742_vm7, %v1745_v24, %v1748_v15  ;;  %v1332_v62 = vsel %vm1325_vm0, %v1328_v5, %v1331_v37  ;;  %v360_v7 = vshrl.u32 %v342_v59, %v358_v10  ;;  %v196_v50 = vand.u32 31, %v194_v17 }
 0x17a   : > { %v1750_v53 = vsel %vm1322_vm11, nan, %v1749_v11  ;;  %v1333_v29 = vsel %vm1322_vm11, nan, %v1332_v62  ;;  %v363_v57 = vadd.s32 127, %v362_v4  ;;  %vm6995_vm2 = vcmp.le.f32.partialorder %v286_v49, 0.7853982 }
 0x17b   : > { %3783 = vmatpush1.msra.mxu1 %v1750_v53  ;;  %v361_v33 = vor.u32 %v360_v7, %v359_v12  ;;  %v190_v26 = vor.u32 8388608, %v189_v22  ;;  %v393_v16 = vand.u32 2139095040, %v6588_v63  ;;  %v372_v27 = vsub.s32 4, %v6922_v20 }
 0x17c   : > { %3784 = vmatprep.subr.mxu1 %v6907_v25  ;;  %v364_v60 = vshll.u32 %v363_v57, 23  ;;  %v555_v39 = vadd.s32 536870912, %v554_v31  ;;  %v197_v2 = vsub.s32 32, %v196_v50  ;;  %v199_v54 = vshll.u32 %v5572_v32, %v196_v50 }
 0x17d   : > { %3785 = vmatpush1.msra.mxu1 %v1333_v29  ;;  %v368_v46 = vcvt.s32.f32 %v361_v33  ;;  %v202_v25 = vshll.u32 %v5573_v34, %v196_v50  ;;  %v208_v35 = vshll.u32 %v5575_v38, %v196_v50  ;;  %v195_v42 = vshrl.u32 %v194_v17, 5 }
 0x17e   : > { %v365_v45 = vor.u32 4788187, %v364_v60  ;;  %v7004_v49 = vshrl.u32 %v555_v39, 30  ;;  %v200_v18 = vshrl.u32 %v5573_v34, %v197_v2  ;;  %v203_v52 = vshrl.u32 %v5574_v36, %v197_v2 }
 0x17f   : > { %v205_v0 = vshll.u32 %v5574_v36, %v196_v50  ;;  %v206_v55 = vshrl.u32 %v5575_v38, %v197_v2  ;;  %v209_v23 = vshrl.u32 %v5576_v40, %v197_v2  ;;  %v211_v59 = vshll.u32 %v5576_v40, %v196_v50 }
 0x180   : > { %v366_v8 = vand.u32 2147483647, %v365_v45  ;;  %v557_v43 = vshll.u32 %v7004_v49, 30  ;;  %v201_v28 = vor.u32 %v200_v18, %v199_v54  ;;  %v7013_v22 = vshll.u32 %v190_v26, 8 }
 0x181   : > { %v204_v21 = vor.u32 %v203_v52, %v202_v25  ;;  %v210_v1 = vor.u32 %v209_v23, %v208_v35  ;;  %v212_v58 = vshrl.u32 %v5577_v48, %v197_v2  ;;  %v373_v44 = vsel %vm288_vm12, %v372_v27, %v6922_v20 }
 0x182   : > { %v369_v61 = vmul.f32 %v368_v46, %v366_v8  ;;  %v7019_v51 = vsub.s32 %v554_v31, %v557_v43  ;;  %vm214_vm9 = vcmp.lt.s32.totalorder %v195_v42, 1  ;;  %v394_v15 = vshrl.u32 %v393_v16, 23 }
 0x183   : > { %v198_v10 = vshrl.u32 %v5572_v32, %v197_v2  ;;  %v207_v12 = vor.u32 %v206_v55, %v205_v0  ;;  %vm215_vm3 = vcmp.lt.s32.totalorder %v195_v42, 2  ;;  %v213_v5 = vor.u32 %v212_v58, %v211_v59 }
 0x184   : > { %v370_v37 = vxor.u32 2147483648, %v369_v61  ;;  %v560_v24 = vsub.s32 0, %v7019_v51  ;;  %vm216_vm15 = vcmp.lt.s32.totalorder %v195_v42, 3  ;;  %vm217_vm4 = vcmp.lt.s32.totalorder %v195_v42, 4 }
 0x185   : > { %v219_v17 = vsel %vm217_vm4, %v207_v12, 2102212464  ;;  %v222_v20 = vsel %vm214_vm9, %v201_v28, %v204_v21  ;;  %v223_v11 = vsel %vm217_vm4, %v210_v1, 920167782  ;;  %v390_v53 = vand.u32 2147483647, %v6588_v63 }
 0x186   : > { %v371_v4 = vsel %vm288_vm12, %v370_v37, %v369_v61  ;;  %v5193_v7 = vmin.u32 %v560_v24, %v7019_v51  ;;  %v5188_v29 = vadd.s32 4294967169, %v394_v15  ;;  %v7035_v57 = vsel %vm6995_vm2, 0, %v373_v44  ;;  %v3538_v63 = vld [vmem:[%s7596_s1] sm:$0xff] }
 0x187   : > { %v374_v62 = vsel %vm6995_vm2, %v6989_v6, %v371_v4  ;;  %v218_v47 = vsel %vm214_vm9, %v198_v10, %v201_v28  ;;  %v224_v33 = vsel %vm216_vm15, %v207_v12, %v223_v11  ;;  %v220_v50 = vsel %vm216_vm15, %v204_v21, %v219_v17 }
 0x188   : > { %5508 = vcosq.f32 %v374_v62  ;;  %v562_v31 = vclz %v5193_v7  ;;  %v225_v60 = vsel %vm215_vm3, %v222_v20, %v224_v33  ;;  %v226_v26 = vsel %vm214_vm9, %v204_v21, %v207_v12 }
 0x189   : > { %5510 = vsinq.f32 %v374_v62  ;;  %v227_v16 = vsel %vm217_vm4, %v213_v5, 1326507024  ;;  %v7044_v27 = vmul.u32.u64.low %v7013_v22, %v225_v60  ;;  %v7045_v30 = vmul.u32.u64.high %v7013_v22, %v225_v60, %v7044_v27 }
 0x18a   : > { %v5194_v39 = vadd.s32 4294967294, %v562_v31  ;;  %v228_v2 = vsel %vm216_vm15, %v210_v1, %v227_v16  ;;  %v400_v54 = vadd.s32 1, %v5188_v29  ;;  %v798_v45 = vand.u32 3, %v7035_v57 }
 0x18b   : > { %v550_v46 = vadd.s32 %v6955_v13, %v6961_v3  ;;  %v221_v25 = vsel %vm215_vm3, %v218_v47, %v220_v50  ;;  %v229_v35 = vsel %vm215_vm3, %v226_v26, %v228_v2  ;;  %v240_v0 = vadd.s32 1, %v7045_v30 }
 0x18c   : > { %vm5195_vm6 = vcmp.lt.s32.totalorder %v5194_v39, 0  ;;  %v7055_v18 = vmul.u32.u64.low %v7013_v22, %v229_v35  ;;  %v7056_v52 = vmul.u32.u64.high %v7013_v22, %v229_v35, %v7055_v18  ;;  %vm401_vm7 = vcmp.gt.s32.totalorder %v400_v54, 0 }
 0x18d   : > { %v565_v8 = vsel %vm5195_vm6, 0, %v5194_v39  ;;  %v397_v55 = vand.u32 8388607, %v390_v53  ;;  %v402_v23 = vsel %vm401_vm7, %v400_v54, 0  ;;  %v237_v42 = vmul.u32 %v7013_v22, %v221_v25 }
 0x18e   : > { %v566_v43 = vsub.s32 32, %v565_v8  ;;  %v567_v13 = vshll.u32 %v7019_v51, %v565_v8  ;;  %v570_v3 = vsub.s32 4294967266, %v565_v8  ;;  %vm378_vm10 = vweird.f32 %v6989_v6 }
 0x18f   : > { %v404_v28 = vand.u32 31, %v402_v23  ;;  %vm799_vm11 = vcmp.lt.s32.totalorder %v798_v45, 2  ;;  %vm239_vm0 = vc.u32 %v7056_v52, %v7044_v27  ;;  %vm800_vm5 = vcmp.eq.s32.totalorder %v798_v45, 0 }
 0x190   : > { %v568_v59 = vshrl.u32 %v550_v46, %v566_v43  ;;  %v571_v61 = vadd.s32 127, %v570_v3  ;;  %vm803_vm1 = vcmp.eq.s32.totalorder %v798_v45, 2  ;;  %vm496_vm14 = vcmp.lt.s32.totalorder %v6896_v19, 0 }
 0x191   : > { %v241_v21 = vsel %vm239_vm0, %v240_v0, %v7045_v30  ;;  %v405_v1 = vsub.s32 32, %v404_v28  ;;  %vm7070_vm13 = vcmp.le.f32.partialorder %v494_v14, 0.7853982  ;;  %v398_v15 = vor.u32 8388608, %v397_v55 }
 0x192   : > { %v569_v58 = vor.u32 %v568_v59, %v567_v13  ;;  %v572_v44 = vshll.u32 %v571_v61, 23  ;;  %v242_v51 = vadd.s32 %v241_v21, %v237_v42  ;;  %v7074_v37 = vshrl.u32 %v402_v23, 5 }
 0x193   : > { %v407_v10 = vshll.u32 %v5572_v32, %v404_v28  ;;  %v410_v12 = vshll.u32 %v5573_v34, %v404_v28  ;;  %v413_v24 = vshll.u32 %v5574_v36, %v404_v28  ;;  %v408_v20 = vshrl.u32 %v5573_v34, %v405_v1 }
 0x194   : > { %v573_v4 = vor.u32 4788187, %v572_v44  ;;  %v576_v17 = vcvt.s32.f32 %v569_v58  ;;  %v243_v14 = vadd.s32 536870912, %v242_v51  ;;  %v411_v7 = vshrl.u32 %v5574_v36, %v405_v1 }
 0x195   : > { %v7079_v5 = vpop.eup %5508  ;;  %v414_v29 = vshrl.u32 %v5575_v38, %v405_v1  ;;  %v416_v47 = vshll.u32 %v5575_v38, %v404_v28  ;;  %v417_v60 = vshrl.u32 %v5576_v40, %v405_v1  ;;  %v580_v26 = vsub.s32 4, %v7004_v49 }
 0x196   : > { %v7082_v11 = vpop.eup %5510  ;;  %v386_v62 = vxor.u32 2147483648, %v7079_v5  ;;  %v574_v31 = vand.u32 2147483647, %v573_v4  ;;  %v7089_v50 = vshrl.u32 %v243_v14, 30  ;;  %v419_v36 = vshll.u32 %v5576_v40, %v404_v28 }
 0x197   : > { %v383_v33 = vxor.u32 2147483648, %v7082_v11  ;;  %v420_v16 = vshrl.u32 %v5577_v48, %v405_v1  ;;  %v409_v2 = vor.u32 %v408_v20, %v407_v10  ;;  %v412_v46 = vor.u32 %v411_v7, %v410_v12 }
 0x198   : > { %v805_v34 = vsel %vm803_vm1, %v386_v62, %v7082_v11  ;;  %v577_v30 = vmul.f32 %v576_v17, %v574_v31  ;;  %v245_v39 = vshll.u32 %v7089_v50, 30  ;;  %v415_v25 = vor.u32 %v414_v29, %v413_v24 }
 0x199   : > { %v802_v38 = vsel %vm800_vm5, %v7079_v5, %v383_v33  ;;  %v418_v35 = vor.u32 %v417_v60, %v416_v47  ;;  %vm422_vm8 = vcmp.lt.s32.totalorder %v7074_v37, 1  ;;  %v406_v48 = vshrl.u32 %v5572_v32, %v405_v1 }
 0x19a   : > { %v806_v54 = vsel %vm799_vm11, %v802_v38, %v805_v34  ;;  %v578_v40 = vxor.u32 2147483648, %v577_v30  ;;  %v246_v8 = vsub.s32 %v242_v51, %v245_v39  ;;  %v421_v0 = vor.u32 %v420_v16, %v419_v36 }
 0x19b   : > { %v807_v18 = vsel %vm378_vm10, nan, %v806_v54  ;;  %vm425_vm12 = vcmp.lt.s32.totalorder %v7074_v37, 4  ;;  %v438_v55 = vshll.u32 %v398_v15, 8  ;;  %vm424_vm2 = vcmp.lt.s32.totalorder %v7074_v37, 3 }
 0x19c   : > { %3649 = vmatprep.subr.mxu0 %v807_v18  ;;  %v579_v45 = vsel %vm496_vm14, %v578_v40, %v577_v30  ;;  %v248_v23 = vsub.s32 0, %v246_v8  ;;  %v427_v43 = vsel %vm425_vm12, %v415_v25, 2102212464  ;;  %vm423_vm9 = vcmp.lt.s32.totalorder %v7074_v37, 2 }
 0x19d   : > { %v582_v13 = vsel %vm7070_vm13, %v6896_v19, %v579_v45  ;;  %v430_v32 = vsel %vm422_vm8, %v409_v2, %v412_v46  ;;  %v431_v3 = vsel %vm425_vm12, %v418_v35, 920167782  ;;  %v426_v28 = vsel %vm422_vm8, %v406_v48, %v409_v2 }
 0x19e   : > { %5512 = vcosq.f32 %v582_v13  ;;  %v5181_v42 = vmin.u32 %v248_v23, %v246_v8  ;;  %v428_v59 = vsel %vm424_vm2, %v412_v46, %v427_v43  ;;  %v432_v61 = vsel %vm424_vm2, %v415_v25, %v431_v3 }
 0x19f   : > { %5514 = vsinq.f32 %v582_v13  ;;  %v433_v1 = vsel %vm423_vm9, %v430_v32, %v432_v61  ;;  %v434_v58 = vsel %vm422_vm8, %v412_v46, %v415_v25  ;;  %v435_v44 = vsel %vm425_vm12, %v421_v0, 1326507024 }
 0x1a0   : > { %v250_v21 = vclz %v5181_v42  ;;  %v581_v51 = vsel %vm496_vm14, %v580_v26, %v7004_v49  ;;  %v436_v15 = vsel %vm424_vm2, %v418_v35, %v435_v44  ;;  %v429_v4 = vsel %vm423_vm9, %v426_v28, %v428_v59 }
 0x1a1   : > { %v7140_v10 = vmul.u32.u64.low %v438_v55, %v433_v1  ;;  %v7141_v12 = vmul.u32.u64.high %v438_v55, %v433_v1, %v7140_v10  ;;  %v437_v17 = vsel %vm423_vm9, %v434_v58, %v436_v15  ;;  %v7152_v7 = vsel %vm7070_vm13, 0, %v581_v51 }
 0x1a2   : > { %v5182_v24 = vadd.s32 4294967294, %v250_v21  ;;  %v7147_v14 = vmul.u32.u64.low %v438_v55, %v437_v17  ;;  %v7148_v20 = vmul.u32.u64.high %v438_v55, %v437_v17, %v7147_v14  ;;  %v238_v49 = vadd.s32 %v7044_v27, %v7056_v52 }
 0x1a3   : > { %v445_v47 = vmul.u32 %v438_v55, %v429_v4  ;;  %v448_v31 = vadd.s32 1, %v7141_v12  ;;  %v1004_v37 = vand.u32 3, %v7152_v7  ;;  %vm586_vm11 = vweird.f32 %v6896_v19 }
 0x1a4   : > { %vm5183_vm3 = vcmp.lt.s32.totalorder %v5182_v24, 0  ;;  %vm447_vm15 = vc.u32 %v7148_v20, %v7140_v10  ;;  %vm184_vm0 = vcmp.lt.s32.totalorder %v6914_v41, 0  ;;  %v268_v43 = vsub.s32 4, %v7089_v50 }
 0x1a5   : > { %v253_v29 = vsel %vm5183_vm3, 0, %v5182_v24  ;;  %v449_v22 = vsel %vm447_vm15, %v448_v31, %v7141_v12  ;;  %vm1009_vm4 = vcmp.eq.s32.totalorder %v1004_v37, 2  ;;  %vm1006_vm6 = vcmp.eq.s32.totalorder %v1004_v37, 0 }
 0x1a6   : > { %v254_v60 = vsub.s32 32, %v253_v29  ;;  %v255_v34 = vshll.u32 %v246_v8, %v253_v29  ;;  %v258_v26 = vsub.s32 4294967266, %v253_v29  ;;  %v450_v38 = vadd.s32 %v449_v22, %v445_v47 }
 0x1a7   : > { %vm1005_vm7 = vcmp.lt.s32.totalorder %v1004_v37, 2  ;;  %vm183_vm5 = vcmp.le.f32.partialorder %v182_v9, 0.7853982  ;;  %v269_v28 = vsel %vm184_vm0, %v268_v43, %v7089_v50  ;;  %v379_v21 = vadd.s32 3, %v7035_v57  ;;  %v3539_v43 = vld [vmem:[%s7596_s1 + $0x8] sm:$0xff] }
 0x1a8   : > { %v256_v36 = vshrl.u32 %v238_v49, %v254_v60  ;;  %v259_v16 = vadd.s32 127, %v258_v26  ;;  %v451_v52 = vadd.s32 536870912, %v450_v38  ;;  %v271_v58 = vsel %vm183_vm5, 0, %v269_v28 }
 0x1a9   : > { %v380_v51 = vand.u32 3, %v379_v21  ;;  %v446_v15 = vadd.s32 %v7140_v10, %v7148_v20  ;;  %v275_v9 = vadd.s32 3, %v271_v58  ;;  %v695_v50 = vand.u32 3, %v271_v58 }
 0x1aa   : > { %v257_v30 = vor.u32 %v256_v36, %v255_v34  ;;  %v260_v39 = vshll.u32 %v259_v16, 23  ;;  %v7166_v18 = vshrl.u32 %v451_v52, 30 }
 0x1ab   : > { %v7160_v27 = vpop.eup %5512  ;;  %vm382_vm14 = vcmp.eq.s32.totalorder %v380_v51, 0  ;;  %vm385_vm13 = vcmp.eq.s32.totalorder %v380_v51, 2  ;;  %v276_v29 = vand.u32 3, %v275_v9  ;;  %vm381_vm8 = vcmp.lt.s32.totalorder %v380_v51, 2 }
 0x1ac   : > { %v7162_v2 = vpop.eup %5514  ;;  %v594_v54 = vxor.u32 2147483648, %v7160_v27  ;;  %v261_v46 = vor.u32 4788187, %v260_v39  ;;  %v264_v25 = vcvt.s32.f32 %v257_v30  ;;  %v453_v0 = vshll.u32 %v7166_v18, 30 }
 0x1ad   : > { %v591_v35 = vxor.u32 2147483648, %v7162_v2  ;;  %v384_v31 = vsel %vm382_vm14, %v7079_v5, %v383_v33  ;;  %v387_v10 = vsel %vm385_vm13, %v386_v62, %v7082_v11  ;;  %vm700_vm12 = vcmp.eq.s32.totalorder %v695_v50, 2  ;;  %v7194_v62 = vld [vmem:[%s5618_s18 + $0x10] sm:$0xff] }
 0x1ae   : > { %v1011_v40 = vsel %vm1009_vm4, %v594_v54, %v7162_v2  ;;  %v262_v8 = vand.u32 2147483647, %v261_v46  ;;  %v454_v13 = vsub.s32 %v450_v38, %v453_v0  ;;  %vm281_vm2 = vcmp.eq.s32.totalorder %v276_v29, 2 }
 0x1af   : > { %v1008_v48 = vsel %vm1006_vm6, %v7160_v27, %v591_v35  ;;  %vm696_vm9 = vcmp.lt.s32.totalorder %v695_v50, 2  ;;  %vm697_vm3 = vcmp.eq.s32.totalorder %v695_v50, 0  ;;  %vm278_vm15 = vcmp.eq.s32.totalorder %v276_v29, 0  ;;  %v3546_v50 = vld [vmem:[%s7596_s1 + $0x40] sm:$0xff] }
 0x1b0   : > { %v1012_v55 = vsel %vm1005_vm7, %v1008_v48, %v1011_v40  ;;  %v265_v45 = vmul.f32 %v264_v25, %v262_v8  ;;  %v456_v3 = vsub.s32 0, %v454_v13  ;;  %v388_v22 = vsel %vm381_vm8, %v384_v31, %v387_v10  ;;  %v7325_v10 = vld [vmem:[%s7597_s2 + $0x98] sm:$0xff] }
 0x1b1   : > { %v1013_v23 = vsel %vm586_vm11, nan, %v1012_v55  ;;  %vm277_vm4 = vcmp.lt.s32.totalorder %v276_v29, 2  ;;  %vm274_vm6 = vweird.f32 %v6914_v41  ;;  %vm392_vm7 = vcmp.lt.s32.totalorder %v7194_v62, 0  ;;  %v3549_v29 = vld [vmem:[%s7596_s1 + $0x58] sm:$0xff] }
 0x1b2   : > { %3786 = vmatprep.subr.mxu1 %v1013_v23  ;;  %v266_v32 = vxor.u32 2147483648, %v265_v45  ;;  %v5189_v61 = vmin.u32 %v456_v3, %v454_v13  ;;  %v476_v52 = vsub.s32 4, %v7166_v18  ;;  %v389_v46 = vsel %vm378_vm10, nan, %v388_v22  ;;  %v3541_v3 = vld [vmem:[%s7596_s1 + $0x18] sm:$0xff] }
 0x1b3   : > { %vm3586_vm10 = vcmask 588800   ;;  %v5579_v31 = vmov 0  }
 0x1b4   : > { %v267_v42 = vsel %vm184_vm0, %v266_v32, %v265_v45  ;;  %v458_v1 = vclz %v5189_v61  ;;  %vm7202_vm0 = vcmp.le.f32.partialorder %v390_v53, 0.7853982  ;;  %v477_v45 = vsel %vm392_vm7, %v476_v52, %v7166_v18  ;;  %5454 = vset.pattern.permute.xlu0 %v5579_v31  ;;  %5455 = vset.pattern.permute.xlu1 %v5579_v31 }
 0x1b5   : > { %v270_v59 = vsel %vm183_vm5, %v6914_v41, %v267_v42  ;;  %v587_v53 = vadd.s32 3, %v7152_v7  ;;  %v479_v18 = vsel %vm7202_vm0, 0, %v477_v45  ;;  %v3983_v45 = vld [vmem:[%s7597_s2 + $0x10] sm:$0xff] }
 0x1b6   : > { %5516 = vcosq.f32 %v270_v59  ;;  %v5190_v44 = vadd.s32 4294967294, %v458_v1  ;;  %v483_v32 = vadd.s32 3, %v479_v18 }
 0x1b7   : > { %5518 = vsinq.f32 %v270_v59 }
 0x1b8   : > { %vm5191_vm1 = vcmp.lt.s32.totalorder %v5190_v44, 0  ;;  %v484_v7 = vand.u32 3, %v483_v32 }
 0x1b9   : > { %v461_v12 = vsel %vm5191_vm1, 0, %v5190_v44 }
 0x1ba   : > { %v462_v24 = vsub.s32 32, %v461_v12  ;;  %v463_v4 = vshll.u32 %v454_v13, %v461_v12  ;;  %v466_v17 = vsub.s32 4294967266, %v461_v12  ;;  %v588_v13 = vand.u32 3, %v587_v53  ;;  %v3984_v53 = vld [vmem:[%s7597_s2 + $0x18] sm:$0xff] }
 0x1bb   : > { %vm489_vm8 = vcmp.eq.s32.totalorder %v484_v7, 2 }
 0x1bc   : > { %v464_v14 = vshrl.u32 %v446_v15, %v462_v24  ;;  %v467_v49 = vadd.s32 127, %v466_v17  ;;  %vm590_vm5 = vcmp.eq.s32.totalorder %v588_v13, 0  ;;  %vm593_vm1 = vcmp.eq.s32.totalorder %v588_v13, 2  ;;  %v3545_v17 = vld [vmem:[%s7596_s1 + $0x38] sm:$0xff] }
 0x1bd   : > { %vm589_vm14 = vcmp.lt.s32.totalorder %v588_v13, 2  ;;  %v592_v42 = vsel %vm590_vm5, %v7160_v27, %v591_v35  ;;  %v595_v28 = vsel %vm593_vm1, %v594_v54, %v7162_v2  ;;  %v3542_v27 = vld [vmem:[%s7596_s1 + $0x20] sm:$0xff] }
 0x1be   : > { %v465_v57 = vor.u32 %v464_v14, %v463_v4  ;;  %v468_v47 = vshll.u32 %v467_v49, 23  ;;  %v596_v58 = vsel %vm589_vm14, %v592_v42, %v595_v28  ;;  %v3543_v4 = vld [vmem:[%s7596_s1 + $0x28] sm:$0xff]  ;;  %v3548_v49 = vld [vmem:[%s7596_s1 + $0x50] sm:$0xff] }
 0x1bf   : > { %v597_v15 = vsel %vm586_vm11, nan, %v596_v58  ;;  %v3547_v14 = vld [vmem:[%s7596_s1 + $0x48] sm:$0xff]  ;;  %vm4005_vm11 = vcmask 261120  }
 0x1c0   : > { %v469_v60 = vor.u32 4788187, %v468_v47  ;;  %v472_v34 = vcvt.s32.f32 %v465_v57  ;;  %v7313_v57 = vld [vmem:[%s7597_s2 + $0xa0] sm:$0xff]  ;;  %v7318_v47 = vld [vmem:[%s7597_s2 + $0x90] sm:$0xff] }
 0x1c1   : > { %4002 = vperm.xlu0 %5454, %v7313_v57   ;;  %3992 = vperm.xlu1 %5455, %v7318_v47  }
 0x1c2   : > { %v470_v16 = vand.u32 2147483647, %v469_v60 }
 0x1c3   : > { %v5517_v20 = vpop.eup %5516 }
 0x1c4   : > { %v5519_v26 = vpop.eup %5518  ;;  %v282_v37 = vxor.u32 2147483648, %v5517_v20  ;;  %v473_v38 = vmul.f32 %v472_v34, %v470_v16 }
 0x1c5   : > { %v279_v36 = vxor.u32 2147483648, %v5519_v26  ;;  %3997 = vperm.xlu0 %5454, %v7325_v10  }
 0x1c6   : > { %v702_v33 = vsel %vm700_vm12, %v282_v37, %v5519_v26  ;;  %v283_v5 = vsel %vm281_vm2, %v282_v37, %v5519_v26  ;;  %v474_v48 = vxor.u32 2147483648, %v473_v38  ;;  %vm486_vm2 = vcmp.eq.s32.totalorder %v484_v7, 0 }
 0x1c7   : > { %v699_v11 = vsel %vm697_vm3, %v5517_v20, %v279_v36  ;;  %v280_v30 = vsel %vm278_vm15, %v5517_v20, %v279_v36  ;;  %vm485_vm3 = vcmp.lt.s32.totalorder %v484_v7, 2  ;;  %vm482_vm15 = vweird.f32 %v7194_v62  ;;  %v7330_v20 = vld [vmem:[%s7597_s2 + $0x88] sm:$0xff] }
 0x1c8   : > { %v703_v39 = vsel %vm696_vm9, %v699_v11, %v702_v33  ;;  %v284_v25 = vsel %vm277_vm4, %v280_v30, %v283_v5  ;;  %v475_v55 = vsel %vm392_vm7, %v474_v48, %v473_v38  ;;  %3987 = vperm.xlu1 %5455, %v7330_v20   ;;  %v3982_v48 = vld [vmem:[%s7597_s2 + $0x8] sm:$0xff] }
 0x1c9   : > { %v704_v40 = vsel %vm274_vm6, nan, %v703_v39  ;;  %v285_v0 = vsel %vm274_vm6, nan, %v284_v25  ;;  %v478_v23 = vsel %vm7202_vm0, %v7194_v62, %v475_v55  ;;  %v3981_v25 = vld [vmem:[%s7597_s2] sm:$0xff] }
 0x1ca   : > { %3650 = vmatpush1.msra.mxu0 %v704_v40  ;;  %5520 = vcosq.f32 %v478_v23 }
 0x1cb   : > { %3651 = vmatprep.subr.mxu0 %v389_v46  ;;  %5522 = vsinq.f32 %v478_v23 }
 0x1cc   : > { %3652 = vmatpush1.msra.mxu0 %v285_v0 }
 0x1cd   : > { %3653 = vmatprep.subr.mxu0 %v6989_v6  ;;  %v901_v6 = vand.u32 3, %v479_v18 }
 0x1ce   : > { %3654 = vmatpush1.msra.mxu0 %v6914_v41  ;;  %v3540_v41 = vld [vmem:[%s7596_s1 + $0x10] sm:$0xff] }
 0x1cf   : > { %5308 = vmatmul.mubr.msk.f32.vlgmr.msra.gmra.mxu0 %vm3586_vm10, %v3538_v63  ;;  %vm906_vm13 = vcmp.eq.s32.totalorder %v901_v6, 2  ;;  %vm903_vm12 = vcmp.eq.s32.totalorder %v901_v6, 0  ;;  %vm902_vm9 = vcmp.lt.s32.totalorder %v901_v6, 2 }
 0x1d0   : > { %3693 = vmatprep.mubr.f32.mxu0 %v5578_v56 }
 0x1d3   : > { %5309 = vmatmul.mubr.msk.f32.gmra.mxu0 %vm3586_vm10, %v3539_v43 }
 0x1d4   : > { %3699 = vmatprep.mubr.f32.mxu0 %v5578_v56 }
 0x1d7   : > { %5310 = vmatmul.mubr.msk.f32.gmra.mxu0 %vm3586_vm10, %v3540_v41  ;;  %v5521_v59 = vpop.eup %5520 }
 0x1d8   : > { %3705 = vmatprep.mubr.f32.mxu0 %v5578_v56  ;;  %v5523_v61 = vpop.eup %5522  ;;  %v490_v21 = vxor.u32 2147483648, %v5521_v59 }
 0x1d9   : > { %v487_v1 = vxor.u32 2147483648, %v5523_v61 }
 0x1da   : > { %v908_v2 = vsel %vm906_vm13, %v490_v21, %v5523_v61  ;;  %v491_v54 = vsel %vm489_vm8, %v490_v21, %v5523_v61 }
 0x1db   : > { %5311 = vmatmul.mubr.msk.f32.gmra.mxu0 %vm3586_vm10, %v3541_v3  ;;  %v905_v35 = vsel %vm903_vm12, %v5521_v59, %v487_v1  ;;  %v488_v44 = vsel %vm486_vm2, %v5521_v59, %v487_v1 }
 0x1dc   : > { %3711 = vmatprep.mubr.f32.mxu0 %v5578_v56  ;;  %v909_v51 = vsel %vm902_vm9, %v905_v35, %v908_v2  ;;  %v492_v9 = vsel %vm485_vm3, %v488_v44, %v491_v54 }
 0x1dd   : > { %v910_v12 = vsel %vm482_vm15, nan, %v909_v51  ;;  %v493_v24 = vsel %vm482_vm15, nan, %v492_v9 }
 0x1de   : > { %3787 = vmatpush1.msra.mxu1 %v910_v12 }
 0x1df   : > { %5312 = vmatmul.mubr.msk.f32.gmra.mxu0 %vm3586_vm10, %v3542_v27  ;;  %3788 = vmatprep.subr.mxu1 %v597_v15 }
 0x1e0   : > { %3717 = vmatprep.mubr.f32.mxu0 %v5578_v56  ;;  %3789 = vmatpush1.msra.mxu1 %v493_v24 }
 0x1e1   : > { %3790 = vmatprep.subr.mxu1 %v6896_v19  ;;  %v3544_v19 = vld [vmem:[%s7596_s1 + $0x30] sm:$0xff] }
 0x1e2   : > { %3791 = vmatpush1.msra.mxu1 %v7194_v62 }
 0x1e3   : > { %5313 = vmatmul.mubr.msk.f32.gmra.mxu0 %vm3586_vm10, %v3543_v4  ;;  %5320 = vmatmul.mubr.msk.f32.vlgmr.msra.gmra.mxu1 %vm3586_vm10, %v3538_v63 }
 0x1e4   : > { %3723 = vmatprep.mubr.f32.mxu0 %v5578_v56  ;;  %3830 = vmatprep.mubr.f32.mxu1 %v5578_v56 }
 0x1e7   : > { %5321 = vmatmul.mubr.msk.f32.gmra.mxu1 %vm3586_vm10, %v3539_v43  ;;  %5314 = vmatmul.mubr.msk.f32.gmra.mxu0 %vm3586_vm10, %v3544_v19 }
 0x1e8   : > { %3836 = vmatprep.mubr.f32.mxu1 %v5578_v56  ;;  %3729 = vmatprep.mubr.f32.mxu0 %v5578_v56 }
 0x1eb   : > { %5322 = vmatmul.mubr.msk.f32.gmra.mxu1 %vm3586_vm10, %v3540_v41  ;;  %5315 = vmatmul.mubr.msk.f32.gmra.mxu0 %vm3586_vm10, %v3545_v17 }
 0x1ec   : > { %3842 = vmatprep.mubr.f32.mxu1 %v5578_v56  ;;  %3735 = vmatprep.mubr.f32.mxu0 %v5578_v56 }
 0x1ef   : > { %5323 = vmatmul.mubr.msk.f32.gmra.mxu1 %vm3586_vm10, %v3541_v3  ;;  %5316 = vmatmul.mubr.msk.f32.gmra.mxu0 %vm3586_vm10, %v3546_v50 }
 0x1f0   : > { %3848 = vmatprep.mubr.f32.mxu1 %v5578_v56  ;;  %3741 = vmatprep.mubr.f32.mxu0 %v5578_v56 }
 0x1f3   : > { %5324 = vmatmul.mubr.msk.f32.gmra.mxu1 %vm3586_vm10, %v3542_v27  ;;  %5317 = vmatmul.mubr.msk.f32.gmra.mxu0 %vm3586_vm10, %v3547_v14 }
 0x1f4   : > { %3854 = vmatprep.mubr.f32.mxu1 %v5578_v56  ;;  %3747 = vmatprep.mubr.f32.mxu0 %v5578_v56 }
 0x1f7   : > { %5325 = vmatmul.mubr.msk.f32.gmra.mxu1 %vm3586_vm10, %v3543_v4  ;;  %5318 = vmatmul.mubr.msk.f32.gmra.mxu0 %vm3586_vm10, %v3548_v49 }
 0x1f8   : > { %3860 = vmatprep.mubr.f32.mxu1 %v5578_v56  ;;  %3753 = vmatprep.mubr.f32.mxu0 %v5578_v56 }
 0x1fb   : > { %5326 = vmatmul.mubr.msk.f32.gmra.mxu1 %vm3586_vm10, %v3544_v19  ;;  %5319 = vmatmul.mubr.msk.f32.gmra.mxu0 %vm3586_vm10, %v3549_v29 }
 0x1fc   : > { %3866 = vmatprep.mubr.f32.mxu1 %v5578_v56  ;;  %4082 = vmatprep.mubr.f32.mxu0 %v5578_v56 }
 0x1ff   : > { %5327 = vmatmul.mubr.msk.f32.gmra.mxu1 %vm3586_vm10, %v3545_v17 }
 0x200   : > { %3872 = vmatprep.mubr.f32.mxu1 %v5578_v56 }
 0x203   : > { %5328 = vmatmul.mubr.msk.f32.gmra.mxu1 %vm3586_vm10, %v3546_v50 }
 0x204   : > { %3878 = vmatprep.mubr.f32.mxu1 %v5578_v56 }
 0x207   : > { %5329 = vmatmul.mubr.msk.f32.gmra.mxu1 %vm3586_vm10, %v3547_v14 }
 0x208   : > { %3884 = vmatprep.mubr.f32.mxu1 %v5578_v56 }
 0x20b   : > { %5330 = vmatmul.mubr.msk.f32.gmra.mxu1 %vm3586_vm10, %v3548_v49 }
 0x20c   : > { %3890 = vmatprep.mubr.f32.mxu1 %v5578_v56 }
 0x20f   : > { %5331 = vmatmul.mubr.msk.f32.gmra.mxu1 %vm3586_vm10, %v3549_v29 }
 0x210   : > { %4171 = vmatprep.mubr.f32.mxu1 %v5578_v56 }
 0x28f   : > { %v3689_v60 = vpop.f32.mrf.mxu0 }
 0x290   : > { %v3965_v46 = vmax.f32 %v3689_v60, 0.0 }
 0x291   : > { %v3691_v34 = vpop.f32.mrf.mxu0 }
 0x292   : > { %v3966_v52 = vmax.f32 %v3691_v34, 0.0 }
 0x293   : > { %v3695_v26 = vpop.f32.mrf.mxu0 }
 0x294   : > { %v3969_v39 = vmax.f32 %v3695_v26, 0.0 }
 0x295   : > { %v3697_v37 = vpop.f32.mrf.mxu0 }
 0x296   : > { %v3970_v30 = vmax.f32 %v3697_v37, 0.0 }
 0x297   : > { %v3701_v36 = vpop.f32.mrf.mxu0 }
 0x298   : > { %v3973_v38 = vmax.f32 %v3701_v36, 0.0 }
 0x299   : > { %v3703_v16 = vpop.f32.mrf.mxu0 }
 0x29a   : > { %v3974_v62 = vmax.f32 %v3703_v16, 0.0 }
 0x29b   : > { %v3707_v22 = vpop.f32.mrf.mxu0 }
 0x29c   : > { %v3977_v11 = vmax.f32 %v3707_v22, 0.0 }
 0x29d   : > { %v3709_v33 = vpop.f32.mrf.mxu0 }
 0x29e   : > { %v3978_v5 = vmax.f32 %v3709_v33, 0.0 }
 0x29f   : > { %v7362_v59 = vpop.f32.mrf.mxu0 }
 0x2a0   : > { %4042 = vmatprep.subr.mxu0 %v3978_v5 }
 0x2a1   : > { %4043 = vmatpush1.msra.mxu0 %v3977_v11  ;;  %v7364_v61 = vpop.f32.mrf.mxu0 }
 0x2a2   : > { %4044 = vmatprep.subr.mxu0 %v3974_v62  ;;  %v4003_v62 = vpop.permute.xlu0 %4002 }
 0x2a3   : > { %4045 = vmatpush1.msra.mxu0 %v3973_v38  ;;  %v3826_v40 = vpop.f32.mrf.mxu1  ;;  %v7366_v21 = vpop.f32.mrf.mxu0 }
 0x2a4   : > { %4046 = vmatprep.subr.mxu0 %v3970_v30  ;;  %v3967_v28 = vmax.f32 %v3826_v40, 0.0 }
 0x2a5   : > { %4047 = vmatpush1.msra.mxu0 %v3969_v39  ;;  %v3828_v8 = vpop.f32.mrf.mxu1  ;;  %v7368_v1 = vpop.f32.mrf.mxu0 }
 0x2a6   : > { %4048 = vmatprep.subr.mxu0 %v3966_v52  ;;  %v3968_v42 = vmax.f32 %v3828_v8, 0.0  ;;  %v3993_v52 = vpop.permute.xlu1 %3992 }
 0x2a7   : > { %4049 = vmatpush1.msra.mxu0 %v3965_v46  ;;  %v3832_v0 = vpop.f32.mrf.mxu1  ;;  %v7370_v58 = vpop.f32.mrf.mxu0 }
 0x2a8   : > { %5332 = vmatmul.mubr.msk.f32.vlgmr.msra.gmra.mxu0 %vm4005_vm11, %v3981_v25  ;;  %v3971_v3 = vmax.f32 %v3832_v0, 0.0 }
 0x2a9   : > { %4088 = vmatprep.mubr.f32.mxu0 %v5578_v56  ;;  %v3834_v55 = vpop.f32.mrf.mxu1  ;;  %v7372_v27 = vpop.f32.mrf.mxu0 }
 0x2aa   : > { %v3972_v7 = vmax.f32 %v3834_v55, 0.0 }
 0x2ab   : > { %v3838_v23 = vpop.f32.mrf.mxu1  ;;  %v7376_v54 = vpop.f32.mrf.mxu0 }
 0x2ac   : > { %5333 = vmatmul.mubr.msk.f32.gmra.mxu0 %vm4005_vm11, %v3982_v48  ;;  %v3975_v6 = vmax.f32 %v3838_v23, 0.0 }
 0x2ad   : > { %4094 = vmatprep.mubr.f32.mxu0 %v5578_v56  ;;  %v3840_v63 = vpop.f32.mrf.mxu1  ;;  %v7380_v44 = vpop.f32.mrf.mxu0 }
 0x2ae   : > { %v3976_v41 = vmax.f32 %v3840_v63, 0.0  ;;  %v3988_v63 = vpop.permute.xlu1 %3987 }
 0x2af   : > { %v3844_v18 = vpop.f32.mrf.mxu1  ;;  %v7384_v15 = vpop.f32.mrf.mxu0 }
 0x2b0   : > { %5334 = vmatmul.mubr.msk.f32.gmra.mxu0 %vm4005_vm11, %v3983_v45  ;;  %v3979_v43 = vmax.f32 %v3844_v18, 0.0 }
 0x2b1   : > { %4100 = vmatprep.mubr.f32.mxu0 %v5578_v56  ;;  %v3846_v13 = vpop.f32.mrf.mxu1  ;;  %v7388_v12 = vpop.f32.mrf.mxu0 }
 0x2b2   : > { %v3980_v32 = vmax.f32 %v3846_v13, 0.0 }
 0x2b3   : > { %v7374_v2 = vpop.f32.mrf.mxu1  ;;  %v7392_v4 = vpop.f32.mrf.mxu0 }
 0x2b4   : > { %5335 = vmatmul.mubr.msk.f32.gmra.mxu0 %vm4005_vm11, %v3984_v53  ;;  %4131 = vmatprep.subr.mxu1 %v3980_v32 }
 0x2b5   : > { %4308 = vmatprep.mubr.f32.mxu0 %v5578_v56  ;;  %4132 = vmatpush1.msra.mxu1 %v3979_v43  ;;  %v7378_v35 = vpop.f32.mrf.mxu1  ;;  %v7396_v17 = vpop.f32.mrf.mxu0 }
 0x2b6   : > { %4133 = vmatprep.subr.mxu1 %v3976_v41 }
 0x2b7   : > { %4134 = vmatpush1.msra.mxu1 %v3975_v6  ;;  %v7382_v51 = vpop.f32.mrf.mxu1  ;;  %v7400_v14 = vpop.f32.mrf.mxu0 }
 0x2b8   : > { %4135 = vmatprep.subr.mxu1 %v3972_v7 }
 0x2b9   : > { %4136 = vmatpush1.msra.mxu1 %v3971_v3  ;;  %v7386_v9 = vpop.f32.mrf.mxu1  ;;  %v7404_v29 = vpop.f32.mrf.mxu0 }
 0x2ba   : > { %4137 = vmatprep.subr.mxu1 %v3968_v42 }
 0x2bb   : > { %4138 = vmatpush1.msra.mxu1 %v3967_v28  ;;  %v7390_v24 = vpop.f32.mrf.mxu1  ;;  %v7408_v60 = vpop.f32.mrf.mxu0 }
 0x2bc   : > { %5336 = vmatmul.mubr.msk.f32.vlgmr.msra.gmra.mxu1 %vm4005_vm11, %v3981_v25  ;;  %v3998_v25 = vpop.permute.xlu0 %3997 }
 0x2bd   : > { %4177 = vmatprep.mubr.f32.mxu1 %v5578_v56  ;;  %v7394_v19 = vpop.f32.mrf.mxu1  ;;  %v7412_v26 = vpop.f32.mrf.mxu0 }
 0x2bf   : > { %v7398_v50 = vpop.f32.mrf.mxu1 }
 0x2c0   : > { %5337 = vmatmul.mubr.msk.f32.gmra.mxu1 %vm4005_vm11, %v3982_v48 }
 0x2c1   : > { %4183 = vmatprep.mubr.f32.mxu1 %v5578_v56  ;;  %v7402_v49 = vpop.f32.mrf.mxu1 }
 0x2c3   : > { %v7406_v31 = vpop.f32.mrf.mxu1 }
 0x2c4   : > { %5338 = vmatmul.mubr.msk.f32.gmra.mxu1 %vm4005_vm11, %v3983_v45  ;;  %7629 = vst [vmem:[#allocation4_spill] sm:$0xff] %v7406_v31 }
 0x2c5   : > { %4189 = vmatprep.mubr.f32.mxu1 %v5578_v56  ;;  %v7410_v34 = vpop.f32.mrf.mxu1 }
 0x2c6   : > { %7630 = vst [vmem:[#allocation5_spill] sm:$0xff] %v7410_v34 }
 0x2c7   : > { %v7414_v37 = vpop.f32.mrf.mxu1 }
 0x2c8   : > { %5339 = vmatmul.mubr.msk.f32.gmra.mxu1 %vm4005_vm11, %v3984_v53 }
 0x2c9   : > { %4397 = vmatprep.mubr.f32.mxu1 %v5578_v56  ;;  %v7416_v22 = vpop.f32.mrf.mxu1 }
 0x2cb   : > { %v7418_v11 = vpop.f32.mrf.mxu1 }
 0x2cd   : > { %v7420_v39 = vpop.f32.mrf.mxu1 }
 0x2cf   : > { %v7422_v48 = vpop.f32.mrf.mxu1 }
 0x2d1   : > { %v7424_v13 = vpop.f32.mrf.mxu1 }
 0x368   : > { %v4084_v36 = vpop.f32.mrf.mxu0 }
 0x369   : > { %v4085_v7 = vadd.f32 %v4084_v36, %v3988_v63  ;;  %v4213_v36 = vld [vmem:[%s7597_s2 + $0x28] sm:$0xff] }
 0x36a   : > { %v4086_v16 = vpop.f32.mrf.mxu0 }
 0x36b   : > { %v4087_v41 = vadd.f32 %v4086_v16, %v3988_v63 }
 0x36c   : > { %v4090_v33 = vpop.f32.mrf.mxu0 }
 0x36d   : > { %v4091_v43 = vadd.f32 %v4090_v33, %v3993_v52  ;;  %v4212_v33 = vld [vmem:[%s7597_s2 + $0x20] sm:$0xff] }
 0x36e   : > { %v4092_v5 = vpop.f32.mrf.mxu0 }
 0x36f   : > { %v4093_v53 = vadd.f32 %v4092_v5, %v3993_v52  ;;  %v4200_v42 = vmax.f32 %v4091_v43, 0.0 }
 0x370   : > { %v4096_v38 = vpop.f32.mrf.mxu0 }
 0x371   : > { %v4097_v45 = vadd.f32 %v4096_v38, %v3998_v25  ;;  %v4201_v3 = vmax.f32 %v4093_v53, 0.0  ;;  %v4197_v38 = vmax.f32 %v4087_v41, 0.0 }
 0x372   : > { %v4098_v30 = vpop.f32.mrf.mxu0 }
 0x373   : > { %v4099_v55 = vadd.f32 %v4098_v30, %v3998_v25  ;;  %v4204_v6 = vmax.f32 %v4097_v45, 0.0  ;;  %v4196_v30 = vmax.f32 %v4085_v7, 0.0  ;;  %v4215_v45 = vld [vmem:[%s7597_s2 + $0x38] sm:$0xff] }
 0x374   : > { %v4102_v46 = vpop.f32.mrf.mxu0 }
 0x375   : > { %v4103_v40 = vadd.f32 %v4102_v46, %v4003_v62  ;;  %v4205_v32 = vmax.f32 %v4099_v55, 0.0 }
 0x376   : > { %v4104_v8 = vpop.f32.mrf.mxu0 }
 0x377   : > { %v4105_v0 = vadd.f32 %v4104_v8, %v4003_v62  ;;  %v4208_v18 = vmax.f32 %v4103_v40, 0.0  ;;  %v4214_v8 = vld [vmem:[%s7597_s2 + $0x30] sm:$0xff] }
 0x379   : > { %v4209_v23 = vmax.f32 %v4105_v0, 0.0 }
 0x37b   : > { %4268 = vmatprep.subr.mxu0 %v4209_v23 }
 0x37c   : > { %4269 = vmatpush1.msra.mxu0 %v4208_v18  ;;  %v4173_v28 = vpop.f32.mrf.mxu1 }
 0x37d   : > { %4270 = vmatprep.subr.mxu0 %v4205_v32  ;;  %v4174_v31 = vadd.f32 %v4173_v28, %v3988_v63 }
 0x37e   : > { %4271 = vmatpush1.msra.mxu0 %v4204_v6  ;;  %v4175_v5 = vpop.f32.mrf.mxu1 }
 0x37f   : > { %4272 = vmatprep.subr.mxu0 %v4201_v3 }
 0x380   : > { %4273 = vmatpush1.msra.mxu0 %v4200_v42  ;;  %v4179_v16 = vpop.f32.mrf.mxu1 }
 0x381   : > { %4274 = vmatprep.subr.mxu0 %v4197_v38  ;;  %v4180_v3 = vadd.f32 %v4179_v16, %v3993_v52  ;;  %v4176_v38 = vadd.f32 %v4175_v5, %v3988_v63 }
 0x382   : > { %4275 = vmatpush1.msra.mxu0 %v4196_v30  ;;  %v4181_v46 = vpop.f32.mrf.mxu1 }
 0x383   : > { %5340 = vmatmul.mubr.msk.f32.vlgmr.msra.gmra.mxu0 %vm4005_vm11, %v4212_v33  ;;  %v4182_v6 = vadd.f32 %v4181_v46, %v3993_v52  ;;  %v4202_v34 = vmax.f32 %v4180_v3, 0.0 }
 0x384   : > { %4314 = vmatprep.mubr.f32.mxu0 %v5578_v56  ;;  %v4185_v40 = vpop.f32.mrf.mxu1 }
 0x385   : > { %v4186_v32 = vadd.f32 %v4185_v40, %v3998_v25 }
 0x386   : > { %v4187_v0 = vpop.f32.mrf.mxu1 }
 0x387   : > { %5341 = vmatmul.mubr.msk.f32.gmra.mxu0 %vm4005_vm11, %v4213_v36  ;;  %v4188_v43 = vadd.f32 %v4187_v0, %v3998_v25  ;;  %v4206_v30 = vmax.f32 %v4186_v32, 0.0  ;;  %v4198_v25 = vmax.f32 %v4174_v31, 0.0  ;;  %v5580_v31 = vmov 1  }
 0x388   : > { %4320 = vmatprep.mubr.f32.mxu0 %v5578_v56  ;;  %v4191_v55 = vpop.f32.mrf.mxu1  ;;  %5456 = vset.pattern.permute.xlu0 %v5580_v31 }
 0x389   : > { %v4192_v23 = vadd.f32 %v4191_v55, %v4003_v62  ;;  %v4207_v42 = vmax.f32 %v4188_v43, 0.0  ;;  %v4203_v55 = vmax.f32 %v4182_v6, 0.0  ;;  %5457 = vset.pattern.permute.xlu1 %v5580_v31  ;;  %4455 = vperm.xlu0 %5456, %v7313_v57  }
 0x38a   : > { %v4193_v53 = vpop.f32.mrf.mxu1  ;;  %4451 = vperm.xlu1 %5457, %v7325_v10  }
 0x38b   : > { %5342 = vmatmul.mubr.msk.f32.gmra.mxu0 %vm4005_vm11, %v4214_v8  ;;  %v4194_v18 = vadd.f32 %v4193_v53, %v4003_v62  ;;  %v4210_v7 = vmax.f32 %v4192_v23, 0.0  ;;  %v4199_v62 = vmax.f32 %v4176_v38, 0.0  ;;  %v4441_v38 = vld [vmem:[%s7597_s2 + $0x58] sm:$0xff] }
 0x38c   : > { %4326 = vmatprep.mubr.f32.mxu0 %v5578_v56 }
 0x38d   : > { %v4211_v41 = vmax.f32 %v4194_v18, 0.0  ;;  %4443 = vperm.xlu0 %5456, %v7330_v20  }
 0x38e   : > { %4447 = vperm.xlu1 %5457, %v7318_v47  }
 0x38f   : > { %5343 = vmatmul.mubr.msk.f32.gmra.mxu0 %vm4005_vm11, %v4215_v45  ;;  %4357 = vmatprep.subr.mxu1 %v4211_v41 }
 0x390   : > { %4534 = vmatprep.mubr.f32.mxu0 %v5578_v56  ;;  %4358 = vmatpush1.msra.mxu1 %v4210_v7  ;;  %v4440_v7 = vld [vmem:[%s7597_s2 + $0x50] sm:$0xff] }
 0x391   : > { %4359 = vmatprep.subr.mxu1 %v4207_v42 }
 0x392   : > { %4360 = vmatpush1.msra.mxu1 %v4206_v30 }
 0x393   : > { %4361 = vmatprep.subr.mxu1 %v4203_v55 }
 0x394   : > { %4362 = vmatpush1.msra.mxu1 %v4202_v34 }
 0x395   : > { %4363 = vmatprep.subr.mxu1 %v4199_v62 }
 0x396   : > { %4364 = vmatpush1.msra.mxu1 %v4198_v25 }
 0x397   : > { %5344 = vmatmul.mubr.msk.f32.vlgmr.msra.gmra.mxu1 %vm4005_vm11, %v4212_v33 }
 0x398   : > { %4403 = vmatprep.mubr.f32.mxu1 %v5578_v56 }
 0x39b   : > { %5345 = vmatmul.mubr.msk.f32.gmra.mxu1 %vm4005_vm11, %v4213_v36 }
 0x39c   : > { %4409 = vmatprep.mubr.f32.mxu1 %v5578_v56 }
 0x39f   : > { %5346 = vmatmul.mubr.msk.f32.gmra.mxu1 %vm4005_vm11, %v4214_v8 }
 0x3a0   : > { %4415 = vmatprep.mubr.f32.mxu1 %v5578_v56 }
 0x3a3   : > { %5347 = vmatmul.mubr.msk.f32.gmra.mxu1 %vm4005_vm11, %v4215_v45 }
 0x3a4   : > { %4623 = vmatprep.mubr.f32.mxu1 %v5578_v56 }
 0x443   : > { %v4310_v34 = vpop.f32.mrf.mxu0 }
 0x444   : > { %v4311_v18 = vadd.f32 %v4310_v34, %v7362_v59  ;;  %v4439_v59 = vld [vmem:[%s7597_s2 + $0x48] sm:$0xff] }
 0x445   : > { %v4312_v52 = vpop.f32.mrf.mxu0 }
 0x446   : > { %v4313_v23 = vadd.f32 %v4312_v52, %v7364_v61 }
 0x447   : > { %v4316_v63 = vpop.f32.mrf.mxu0 }
 0x448   : > { %v4317_v0 = vadd.f32 %v4316_v63, %v7366_v21  ;;  %v4438_v21 = vld [vmem:[%s7597_s2 + $0x40] sm:$0xff] }
 0x449   : > { %v4318_v28 = vpop.f32.mrf.mxu0 }
 0x44a   : > { %v4319_v47 = vadd.f32 %v4318_v28, %v7368_v1  ;;  %v4422_v1 = vmax.f32 %v4311_v18, 0.0 }
 0x44b   : > { %v4322_v33 = vpop.f32.mrf.mxu0 }
 0x44c   : > { %v4323_v10 = vadd.f32 %v4322_v33, %v7370_v58  ;;  %v4427_v43 = vmax.f32 %v4319_v47, 0.0  ;;  %v4423_v58 = vmax.f32 %v4313_v23, 0.0  ;;  %v4456_v47 = vpop.permute.xlu0 %4455 }
 0x44d   : > { %v4324_v5 = vpop.f32.mrf.mxu0 }
 0x44e   : > { %v4325_v40 = vadd.f32 %v4324_v5, %v7372_v27  ;;  %v4426_v27 = vmax.f32 %v4317_v0, 0.0 }
 0x44f   : > { %v4328_v16 = vpop.f32.mrf.mxu0 }
 0x450   : > { %v4329_v36 = vadd.f32 %v4328_v16, %v7376_v54  ;;  %v4431_v53 = vmax.f32 %v4325_v40, 0.0  ;;  %v4430_v54 = vmax.f32 %v4323_v10, 0.0 }
 0x451   : > { %v4330_v46 = vpop.f32.mrf.mxu0 }
 0x452   : > { %v4331_v57 = vadd.f32 %v4330_v46, %v7380_v44  ;;  %v4434_v45 = vmax.f32 %v4329_v36, 0.0 }
 0x454   : > { %v4435_v8 = vmax.f32 %v4331_v57, 0.0  ;;  %v4452_v57 = vpop.permute.xlu1 %4451 }
 0x456   : > { %4494 = vmatprep.subr.mxu0 %v4435_v8 }
 0x457   : > { %4495 = vmatpush1.msra.mxu0 %v4434_v45  ;;  %v4399_v44 = vpop.f32.mrf.mxu1 }
 0x458   : > { %4496 = vmatprep.subr.mxu0 %v4431_v53  ;;  %v4448_v23 = vpop.permute.xlu1 %4447 }
 0x459   : > { %4497 = vmatpush1.msra.mxu0 %v4430_v54  ;;  %v4401_v61 = vpop.f32.mrf.mxu1  ;;  %v4444_v54 = vpop.permute.xlu0 %4443 }
 0x45a   : > { %4498 = vmatprep.subr.mxu0 %v4427_v43  ;;  %v4402_v33 = vadd.f32 %v4401_v61, %v7378_v35 }
 0x45b   : > { %4499 = vmatpush1.msra.mxu0 %v4426_v27  ;;  %v4405_v32 = vpop.f32.mrf.mxu1 }
 0x45c   : > { %4500 = vmatprep.subr.mxu0 %v4423_v58  ;;  %v4406_v63 = vadd.f32 %v4405_v32, %v7382_v51  ;;  %v4425_v16 = vmax.f32 %v4402_v33, 0.0  ;;  %v4649_v32 = vld [vmem:[%s7597_s2 + $0x68] sm:$0xff]  ;;  %v5581_v33 = vmov 2  }
 0x45d   : > { %4501 = vmatpush1.msra.mxu0 %v4422_v1  ;;  %v4407_v41 = vpop.f32.mrf.mxu1  ;;  %v4648_v1 = vld [vmem:[%s7597_s2 + $0x60] sm:$0xff]  ;;  %5458 = vset.pattern.permute.xlu1 %v5581_v33 }
 0x45e   : > { %5348 = vmatmul.mubr.msk.f32.vlgmr.msra.gmra.mxu0 %vm4005_vm11, %v4438_v21  ;;  %v4408_v34 = vadd.f32 %v4407_v41, %v7386_v9  ;;  %5459 = vset.pattern.permute.xlu0 %v5581_v33 }
 0x45f   : > { %4540 = vmatprep.mubr.f32.mxu0 %v5578_v56  ;;  %v4411_v6 = vpop.f32.mrf.mxu1  ;;  %4876 = vperm.xlu1 %5458, %v7330_v20  }
 0x460   : > { %v4412_v31 = vadd.f32 %v4411_v6, %v7390_v24  ;;  %v4428_v24 = vmax.f32 %v4406_v63, 0.0  ;;  %v4650_v6 = vld [vmem:[%s7597_s2 + $0x70] sm:$0xff] }
 0x461   : > { %v4413_v3 = vpop.f32.mrf.mxu1 }
 0x462   : > { %5349 = vmatmul.mubr.msk.f32.gmra.mxu0 %vm4005_vm11, %v4439_v59  ;;  %v4414_v62 = vadd.f32 %v4413_v3, %v7394_v19  ;;  %v4400_v19 = vadd.f32 %v4399_v44, %v7374_v2  ;;  %v4432_v5 = vmax.f32 %v4412_v31, 0.0 }
 0x463   : > { %4546 = vmatprep.mubr.f32.mxu0 %v5578_v56  ;;  %v4417_v42 = vpop.f32.mrf.mxu1 }
 0x464   : > { %v4418_v30 = vadd.f32 %v4417_v42, %v7398_v50  ;;  %v4433_v50 = vmax.f32 %v4414_v62, 0.0  ;;  %v4424_v9 = vmax.f32 %v4400_v19, 0.0  ;;  %v4651_v42 = vld [vmem:[%s7597_s2 + $0x78] sm:$0xff] }
 0x465   : > { %v4419_v55 = vpop.f32.mrf.mxu1 }
 0x466   : > { %5350 = vmatmul.mubr.msk.f32.gmra.mxu0 %vm4005_vm11, %v4440_v7  ;;  %v4420_v25 = vadd.f32 %v4419_v55, %v7402_v49  ;;  %v4436_v28 = vmax.f32 %v4418_v30, 0.0  ;;  %v4429_v49 = vmax.f32 %v4408_v34, 0.0 }
 0x467   : > { %4552 = vmatprep.mubr.f32.mxu0 %v5578_v56 }
 0x468   : > { %v4437_v52 = vmax.f32 %v4420_v25, 0.0 }
 0x46a   : > { %5351 = vmatmul.mubr.msk.f32.gmra.mxu0 %vm4005_vm11, %v4441_v38  ;;  %4583 = vmatprep.subr.mxu1 %v4437_v52 }
 0x46b   : > { %4744 = vmatprep.mubr.f32.mxu0 %v5578_v56  ;;  %4584 = vmatpush1.msra.mxu1 %v4436_v28 }
 0x46c   : > { %4585 = vmatprep.subr.mxu1 %v4433_v50 }
 0x46d   : > { %4586 = vmatpush1.msra.mxu1 %v4432_v5 }
 0x46e   : > { %4587 = vmatprep.subr.mxu1 %v4429_v49 }
 0x46f   : > { %4588 = vmatpush1.msra.mxu1 %v4428_v24 }
 0x470   : > { %4589 = vmatprep.subr.mxu1 %v4425_v16 }
 0x471   : > { %4590 = vmatpush1.msra.mxu1 %v4424_v9 }
 0x472   : > { %5352 = vmatmul.mubr.msk.f32.vlgmr.msra.gmra.mxu1 %vm4005_vm11, %v4438_v21 }
 0x473   : > { %4629 = vmatprep.mubr.f32.mxu1 %v5578_v56 }
 0x476   : > { %5353 = vmatmul.mubr.msk.f32.gmra.mxu1 %vm4005_vm11, %v4439_v59 }
 0x477   : > { %4635 = vmatprep.mubr.f32.mxu1 %v5578_v56 }
 0x47a   : > { %5354 = vmatmul.mubr.msk.f32.gmra.mxu1 %vm4005_vm11, %v4440_v7 }
 0x47b   : > { %4641 = vmatprep.mubr.f32.mxu1 %v5578_v56 }
 0x47e   : > { %5355 = vmatmul.mubr.msk.f32.gmra.mxu1 %vm4005_vm11, %v4441_v38 }
 0x47f   : > { %4833 = vmatprep.mubr.f32.mxu1 %v5578_v56 }
 0x51e   : > { %v4536_v2 = vpop.f32.mrf.mxu0 }
 0x51f   : > { %v4537_v58 = vadd.f32 %v4536_v2, %v4444_v54 }
 0x520   : > { %v4538_v35 = vpop.f32.mrf.mxu0 }
 0x521   : > { %v4539_v44 = vadd.f32 %v4538_v35, %v4444_v54 }
 0x522   : > { %v4542_v51 = vpop.f32.mrf.mxu0 }
 0x523   : > { %v4543_v27 = vadd.f32 %v4542_v51, %v4448_v23 }
 0x524   : > { %v4544_v36 = vpop.f32.mrf.mxu0 }
 0x525   : > { %v4545_v43 = vadd.f32 %v4544_v36, %v4448_v23 }
 0x526   : > { %v4548_v46 = vpop.f32.mrf.mxu0 }
 0x527   : > { %v4549_v18 = vadd.f32 %v4548_v46, %v4452_v57 }
 0x528   : > { %v4550_v40 = vpop.f32.mrf.mxu0 }
 0x529   : > { %v4551_v53 = vadd.f32 %v4550_v40, %v4452_v57 }
 0x52a   : > { %v4554_v10 = vpop.f32.mrf.mxu0 }
 0x52b   : > { %v4555_v45 = vadd.f32 %v4554_v10, %v4456_v47 }
 0x52c   : > { %v4556_v8 = vpop.f32.mrf.mxu0 }
 0x52d   : > { %v4557_v0 = vadd.f32 %v4556_v8, %v4456_v47 }
 0x52f   : > { %4704 = vmatprep.subr.mxu0 %v4557_v0 }
 0x530   : > { %4705 = vmatpush1.msra.mxu0 %v4555_v45 }
 0x531   : > { %4706 = vmatprep.subr.mxu0 %v4551_v53 }
 0x532   : > { %4707 = vmatpush1.msra.mxu0 %v4549_v18  ;;  %v4625_v21 = vpop.f32.mrf.mxu1 }
 0x533   : > { %4708 = vmatprep.subr.mxu0 %v4545_v43  ;;  %v4626_v28 = vadd.f32 %v4625_v21, %v4444_v54 }
 0x534   : > { %4709 = vmatpush1.msra.mxu0 %v4543_v27  ;;  %v4627_v61 = vpop.f32.mrf.mxu1 }
 0x535   : > { %4710 = vmatprep.subr.mxu0 %v4539_v44  ;;  %v4628_v63 = vadd.f32 %v4627_v61, %v4444_v54 }
 0x536   : > { %4711 = vmatpush1.msra.mxu0 %v4537_v58  ;;  %v4631_v59 = vpop.f32.mrf.mxu1 }
 0x537   : > { %5356 = vmatmul.mubr.msk.f32.vlgmr.msra.gmra.mxu0 %vm4005_vm11, %v4648_v1  ;;  %v4632_v52 = vadd.f32 %v4631_v59, %v4448_v23  ;;  %v7631_v59 = vld [vmem:[#allocation5_spill] sm:$0xff] }
 0x538   : > { %4750 = vmatprep.mubr.f32.mxu0 %v5578_v56  ;;  %v4633_v41 = vpop.f32.mrf.mxu1 }
 0x539   : > { %v4634_v34 = vadd.f32 %v4633_v41, %v4448_v23 }
 0x53a   : > { %v4637_v7 = vpop.f32.mrf.mxu1 }
 0x53b   : > { %5357 = vmatmul.mubr.msk.f32.gmra.mxu0 %vm4005_vm11, %v4649_v32  ;;  %v4638_v31 = vadd.f32 %v4637_v7, %v4452_v57  ;;  %v7632_v7 = vld [vmem:[#allocation4_spill] sm:$0xff] }
 0x53c   : > { %4756 = vmatprep.mubr.f32.mxu0 %v5578_v56  ;;  %v4639_v3 = vpop.f32.mrf.mxu1 }
 0x53d   : > { %v4640_v25 = vadd.f32 %v4639_v3, %v4452_v57 }
 0x53e   : > { %v4643_v38 = vpop.f32.mrf.mxu1 }
 0x53f   : > { %5358 = vmatmul.mubr.msk.f32.gmra.mxu0 %vm4005_vm11, %v4650_v6  ;;  %v4644_v30 = vadd.f32 %v4643_v38, %v4456_v47 }
 0x540   : > { %4762 = vmatprep.mubr.f32.mxu0 %v5578_v56  ;;  %v4645_v55 = vpop.f32.mrf.mxu1 }
 0x541   : > { %v4646_v62 = vadd.f32 %v4645_v55, %v4456_v47 }
 0x543   : > { %5359 = vmatmul.mubr.msk.f32.gmra.mxu0 %vm4005_vm11, %v4651_v42  ;;  %4793 = vmatprep.subr.mxu1 %v4646_v62 }
 0x544   : > { %4946 = vmatprep.mubr.f32.mxu0 %v5578_v56  ;;  %4794 = vmatpush1.msra.mxu1 %v4644_v30 }
 0x545   : > { %4795 = vmatprep.subr.mxu1 %v4640_v25 }
 0x546   : > { %4796 = vmatpush1.msra.mxu1 %v4638_v31 }
 0x547   : > { %4797 = vmatprep.subr.mxu1 %v4634_v34 }
 0x548   : > { %4798 = vmatpush1.msra.mxu1 %v4632_v52 }
 0x549   : > { %4799 = vmatprep.subr.mxu1 %v4628_v63 }
 0x54a   : > { %4800 = vmatpush1.msra.mxu1 %v4626_v28 }
 0x54b   : > { %5360 = vmatmul.mubr.msk.f32.vlgmr.msra.gmra.mxu1 %vm4005_vm11, %v4648_v1 }
 0x54c   : > { %4839 = vmatprep.mubr.f32.mxu1 %v5578_v56 }
 0x54f   : > { %5361 = vmatmul.mubr.msk.f32.gmra.mxu1 %vm4005_vm11, %v4649_v32 }
 0x550   : > { %4845 = vmatprep.mubr.f32.mxu1 %v5578_v56 }
 0x553   : > { %5362 = vmatmul.mubr.msk.f32.gmra.mxu1 %vm4005_vm11, %v4650_v6 }
 0x554   : > { %4851 = vmatprep.mubr.f32.mxu1 %v5578_v56 }
 0x557   : > { %5363 = vmatmul.mubr.msk.f32.gmra.mxu1 %vm4005_vm11, %v4651_v42 }
 0x558   : > { %5017 = vmatprep.mubr.f32.mxu1 %v5578_v56 }
 0x5f7   : > { %v4746_v50 = vpop.f32.mrf.mxu0 }
 0x5f8   : > { %v4747_v8 = vadd.f32 %v4746_v50, %v7384_v15 }
 0x5f9   : > { %v4748_v19 = vpop.f32.mrf.mxu0 }
 0x5fa   : > { %v4749_v10 = vadd.f32 %v4748_v19, %v7388_v12 }
 0x5fb   : > { %v4752_v5 = vpop.f32.mrf.mxu0 }
 0x5fc   : > { %v4753_v20 = vadd.f32 %v4752_v5, %v7392_v4  ;;  %v4874_v4 = vld [vmem:[%s7597_s2 + $0x80] sm:$0xff] }
 0x5fd   : > { %v4754_v49 = vpop.f32.mrf.mxu0 }
 0x5fe   : > { %v4755_v46 = vadd.f32 %v4754_v49, %v7396_v17  ;;  %v4858_v17 = vmax.f32 %v4747_v8, 0.0 }
 0x5ff   : > { %v4758_v24 = vpop.f32.mrf.mxu0 }
 0x600   : > { %v4759_v56 = vadd.f32 %v4758_v24, %v7400_v14  ;;  %v4863_v0 = vmax.f32 %v4755_v46, 0.0  ;;  %v4859_v14 = vmax.f32 %v4749_v10, 0.0  ;;  %v5024_v10 = vlaneseq }
 0x601   : > { %v4760_v16 = vpop.f32.mrf.mxu0 }
 0x602   : > { %v4761_v51 = vadd.f32 %v4760_v16, %v7404_v29  ;;  %v4862_v29 = vmax.f32 %v4753_v20, 0.0 }
 0x603   : > { %v4764_v9 = vpop.f32.mrf.mxu0 }
 0x604   : > { %v4765_v2 = vadd.f32 %v4764_v9, %v7408_v60  ;;  %v4867_v47 = vmax.f32 %v4761_v51, 0.0  ;;  %v4866_v60 = vmax.f32 %v4759_v56, 0.0 }
 0x605   : > { %v4766_v35 = vpop.f32.mrf.mxu0 }
 0x606   : > { %v4767_v36 = vadd.f32 %v4766_v35, %v7412_v26  ;;  %v4870_v57 = vmax.f32 %v4765_v2, 0.0 }
 0x608   : > { %v4871_v40 = vmax.f32 %v4767_v36, 0.0 }
 0x60a   : > { %4906 = vmatprep.subr.mxu0 %v4871_v40 }
 0x60b   : > { %4907 = vmatpush1.msra.mxu0 %v4870_v57  ;;  %v4835_v26 = vpop.f32.mrf.mxu1 }
 0x60c   : > { %4908 = vmatprep.subr.mxu0 %v4867_v47  ;;  %v4836_v3 = vadd.f32 %v4835_v26, %v7632_v7 }
 0x60d   : > { %4909 = vmatpush1.msra.mxu0 %v4866_v60  ;;  %v4837_v12 = vpop.f32.mrf.mxu1 }
 0x60e   : > { %4910 = vmatprep.subr.mxu0 %v4863_v0  ;;  %v4838_v41 = vadd.f32 %v4837_v12, %v7631_v59  ;;  %v7564_v0 = vshrl.u32 %v5024_v10, 7 }
 0x60f   : > { %4911 = vmatpush1.msra.mxu0 %v4862_v29  ;;  %v4841_v45 = vpop.f32.mrf.mxu1 }
 0x610   : > { %4912 = vmatprep.subr.mxu0 %v4859_v14  ;;  %v4842_v61 = vadd.f32 %v4841_v45, %v7414_v37  ;;  %v4877_v37 = vpop.permute.xlu1 %4876  ;;  %vm5082_vm4 = vcmp.lt.s32.totalorder %v7564_v0, 3 }
 0x611   : > { %4913 = vmatpush1.msra.mxu0 %v4858_v17  ;;  %v4843_v15 = vpop.f32.mrf.mxu1 }
 0x612   : > { %5364 = vmatmul.mubr.msk.f32.vlgmr.msra.gmra.mxu0 %vm4005_vm11, %v4874_v4  ;;  %v4844_v1 = vadd.f32 %v4843_v15, %v7416_v22 }
 0x613   : > { %v4847_v23 = vpop.f32.mrf.mxu1 }
 0x614   : > { %v4848_v58 = vadd.f32 %v4847_v23, %v7418_v11  ;;  %v4865_v42 = vmax.f32 %v4844_v1, 0.0  ;;  %v4860_v11 = vmax.f32 %v4836_v3, 0.0 }
 0x615   : > { %v4849_v53 = vpop.f32.mrf.mxu1 }
 0x616   : > { %v4850_v27 = vadd.f32 %v4849_v53, %v7420_v39  ;;  %v4864_v39 = vmax.f32 %v4842_v61, 0.0 }
 0x617   : > { %v4853_v18 = vpop.f32.mrf.mxu1 }
 0x618   : > { %v4854_v54 = vadd.f32 %v4853_v18, %v7422_v48  ;;  %v4869_v6 = vmax.f32 %v4850_v27, 0.0  ;;  %v4868_v48 = vmax.f32 %v4848_v58, 0.0 }
 0x619   : > { %v4855_v43 = vpop.f32.mrf.mxu1 }
 0x61a   : > { %v4856_v44 = vadd.f32 %v4855_v43, %v7424_v13  ;;  %v4872_v32 = vmax.f32 %v4854_v54, 0.0  ;;  %v4861_v13 = vmax.f32 %v4838_v41, 0.0 }
 0x61c   : > { %v4873_v21 = vmax.f32 %v4856_v44, 0.0 }
 0x61e   : > { %4977 = vmatprep.subr.mxu1 %v4873_v21 }
 0x61f   : > { %4978 = vmatpush1.msra.mxu1 %v4872_v32 }
 0x620   : > { %4979 = vmatprep.subr.mxu1 %v4869_v6 }
 0x621   : > { %4980 = vmatpush1.msra.mxu1 %v4868_v48 }
 0x622   : > { %4981 = vmatprep.subr.mxu1 %v4865_v42 }
 0x623   : > { %4982 = vmatpush1.msra.mxu1 %v4864_v39 }
 0x624   : > { %4983 = vmatprep.subr.mxu1 %v4861_v13 }
 0x625   : > { %4984 = vmatpush1.msra.mxu1 %v4860_v11 }
 0x626   : > { %5365 = vmatmul.mubr.msk.f32.vlgmr.msra.gmra.mxu1 %vm4005_vm11, %v4874_v4 }
 0x6d2   : > { %v4948_v22 = vpop.f32.mrf.mxu0 }
 0x6d3   : > { %v4949_v38 = vadd.f32 %v4948_v22, %v4877_v37 }
 0x6d4   : > { %v4950_v30 = vpop.f32.mrf.mxu0 }
 0x6d5   : > { %v5030_v55 = vmin.f32 %v4949_v38, 8.0  ;;  %v5366_v62 = vmul.f32 -1.442695, %v4949_v38  ;;  %v7552_v25 = vadd.f32 %v4950_v30, %v4877_v37  ;;  %vm5026_vm7 = vcmp.gt.f32.partialorder %v4949_v38, 8.0 }
 0x6d7   : > { %v5034_v31 = vmul.f32 1.442695, %v5030_v55  ;;  %v5031_v34 = vmin.f32 %v7552_v25, 8.0  ;;  %5524 = vpow2.f32 %v5366_v62  ;;  %v5367_v52 = vmul.f32 -1.442695, %v7552_v25 }
 0x6d8   : > { %vm5027_vm10 = vcmp.gt.f32.partialorder %v7552_v25, 8.0 }
 0x6d9   : > { %5526 = vpow2.f32 %v5034_v31  ;;  %v5036_v63 = vmul.f32 1.442695, %v5031_v34 }
 0x6da   : > { %5528 = vpow2.f32 %v5367_v52 }
 0x6db   : > { %5530 = vpow2.f32 %v5036_v63 }
 0x6e4   : > { %v5525_v28 = vpop.eup %5524 }
 0x6e5   : > { %v5095_v49 = vadd.f32 1.0, %v5525_v28 }
 0x6e6   : > { %v5527_v33 = vpop.eup %5526  ;;  %v5019_v16 = vpop.f32.mrf.mxu1 }
 0x6e7   : > { %v5529_v50 = vpop.eup %5528  ;;  %v5042_v19 = vadd.f32 1.0, %v5527_v33  ;;  %v7556_v2 = vadd.f32 %v5019_v16, %v4877_v37  ;;  %v5045_v40 = vmul.f32 -0.5, %v5527_v33  ;;  %v5048_v29 = vand.u32 2147483647, %v5527_v33 }
 0x6e8   : > { %v5531_v5 = vpop.eup %5530  ;;  %v5096_v9 = vadd.f32 1.0, %v5529_v50  ;;  %v5021_v35 = vpop.f32.mrf.mxu1 }
 0x6e9   : > { %5532 = vlog2.f32 %v5042_v19  ;;  %v5051_v24 = vadd.f32 1.0, %v5531_v5  ;;  %v5032_v51 = vmin.f32 %v7556_v2, 8.0  ;;  %v5368_v36 = vmul.f32 -1.442695, %v7556_v2 }
 0x6ea   : > { %v7560_v56 = vadd.f32 %v5021_v35, %v4877_v37  ;;  %v5054_v47 = vmul.f32 -0.5, %v5531_v5  ;;  %v5046_v60 = vadd.f32 1.0, %v5045_v40  ;;  %v5057_v17 = vand.u32 2147483647, %v5531_v5 }
 0x6eb   : > { %5534 = vlog2.f32 %v5051_v24  ;;  %v5038_v46 = vmul.f32 1.442695, %v5032_v51  ;;  %vm5049_vm6 = vcmp.lt.f32.partialorder %v5048_v29, 0.0004427343  ;;  %vm5028_vm1 = vcmp.gt.f32.partialorder %v7556_v2, 8.0 }
 0x6ec   : > { %5536 = vrcp.f32 %v5095_v49  ;;  %v5033_v20 = vmin.f32 %v7560_v56, 8.0  ;;  %v5369_v57 = vmul.f32 -1.442695, %v7560_v56  ;;  %v5055_v26 = vadd.f32 1.0, %v5054_v47 }
 0x6ed   : > { %5538 = vrcp.f32 %v5096_v9  ;;  %v5047_v12 = vmul.f32 %v5527_v33, %v5046_v60  ;;  %vm5058_vm0 = vcmp.lt.f32.partialorder %v5057_v17, 0.0004427343  ;;  %vm5029_vm13 = vcmp.gt.f32.partialorder %v7560_v56, 8.0 }
 0x6ee   : > { %5540 = vpow2.f32 %v5368_v36  ;;  %v5040_v8 = vmul.f32 1.442695, %v5033_v20  ;;  %v5056_v53 = vmul.f32 %v5531_v5, %v5055_v26 }
 0x6ef   : > { %5542 = vpow2.f32 %v5038_v46 }
 0x6f0   : > { %5544 = vpow2.f32 %v5369_v57 }
 0x6f1   : > { %5546 = vpow2.f32 %v5040_v8 }
 0x6f6   : > { %v5533_v14 = vpop.eup %5532 }
 0x6f7   : > { %v5044_v4 = vmul.f32 0.6931472, %v5533_v14 }
 0x6f8   : > { %v5535_v45 = vpop.eup %5534 }
 0x6f9   : > { %v5050_v15 = vsel %vm5049_vm6, %v5047_v12, %v5044_v4  ;;  %v5053_v23 = vmul.f32 0.6931472, %v5535_v45  ;;  %v5537_v18 = vpop.eup %5536 }
 0x6fa   : > { %v5078_v54 = vsel %vm5026_vm7, %v4949_v38, %v5050_v15  ;;  %v5539_v43 = vpop.eup %5538 }
 0x6fb   : > { %v5107_v27 = vsel %vm5082_vm4, %v5537_v18, %v5078_v54  ;;  %v5059_v44 = vsel %vm5058_vm0, %v5056_v53, %v5053_v23  ;;  %v5541_v58 = vpop.eup %5540 }
 0x6fc   : > { %5111 = vst [vmem:[%s7572_s13] sm:$0xff] %v5107_v27  ;;  %v5079_v1 = vsel %vm5027_vm10, %v7552_v25, %v5059_v44  ;;  %v5543_v21 = vpop.eup %5542  ;;  %v5097_v6 = vadd.f32 1.0, %v5541_v58 }
 0x6fd   : > { %v5108_v61 = vsel %vm5082_vm4, %v5539_v43, %v5079_v1  ;;  %v5060_v32 = vadd.f32 1.0, %v5543_v21  ;;  %v5545_v59 = vpop.eup %5544  ;;  %v5063_v48 = vmul.f32 -0.5, %v5543_v21  ;;  %v5066_v13 = vand.u32 2147483647, %v5543_v21 }
 0x6fe   : > { %5112 = vst [vmem:[%s7572_s13 + $0x8] sm:$0xff] %v5108_v61  ;;  %v5547_v41 = vpop.eup %5546  ;;  %v5098_v3 = vadd.f32 1.0, %v5545_v59 }
 0x6ff   : > { %5548 = vlog2.f32 %v5060_v32  ;;  %v5069_v7 = vadd.f32 1.0, %v5547_v41  ;;  %v5072_v42 = vmul.f32 -0.5, %v5547_v41  ;;  %v5064_v39 = vadd.f32 1.0, %v5063_v48 }
 0x700   : > { %v5075_v30 = vand.u32 2147483647, %v5547_v41  ;;  %vm5067_vm5 = vcmp.lt.f32.partialorder %v5066_v13, 0.0004427343 }
 0x701   : > { %5550 = vlog2.f32 %v5069_v7  ;;  %v5073_v37 = vadd.f32 1.0, %v5072_v42  ;;  %v5065_v38 = vmul.f32 %v5543_v21, %v5064_v39 }
 0x702   : > { %5552 = vrcp.f32 %v5097_v6  ;;  %vm5076_vm14 = vcmp.lt.f32.partialorder %v5075_v30, 0.0004427343 }
 0x703   : > { %5554 = vrcp.f32 %v5098_v3  ;;  %v5074_v52 = vmul.f32 %v5547_v41, %v5073_v37 }
 0x70c   : > { %v5549_v11 = vpop.eup %5548 }
 0x70d   : > { %v5062_v22 = vmul.f32 0.6931472, %v5549_v11 }
 0x70e   : > { %v5551_v55 = vpop.eup %5550 }
 0x70f   : > { %v5068_v62 = vsel %vm5067_vm5, %v5065_v38, %v5062_v22  ;;  %v5553_v25 = vpop.eup %5552  ;;  %v5071_v34 = vmul.f32 0.6931472, %v5551_v55 }
 0x710   : > { %v5080_v31 = vsel %vm5028_vm1, %v7556_v2, %v5068_v62  ;;  %v5555_v33 = vpop.eup %5554 }
 0x711   : > { %v5109_v63 = vsel %vm5082_vm4, %v5553_v25, %v5080_v31  ;;  %v5077_v28 = vsel %vm5076_vm14, %v5074_v52, %v5071_v34 }
 0x712   : > { %5113 = vst [vmem:[%s7572_s13 + $0x10] sm:$0xff] %v5109_v63  ;;  %v5081_v50 = vsel %vm5029_vm13, %v7560_v56, %v5077_v28 }
 0x713   : > { %v5110_v19 = vsel %vm5082_vm4, %v5555_v33, %v5081_v50 }
 0x714   : > { %5114 = vst [vmem:[%s7572_s13 + $0x18] sm:$0xff] %v5110_v19 }
 0x715 PF: > { %s13_s12 = sadd.s32 1, %s5570_s12  }
 0x716   : > { %p10_p4 = scmp.ge.s32.totalorder %s13_s12, 4  }
 0x718   :  { %12 = sbr.rel (!%p10_p4) target bundleno = 1 (0x1), region = 62 }

</bundles_post_ra>
